<compile_context>
chip_gen: v6e
topology: v6e:2x2x1
jax: 0.10.0
libtpu: 0.0.40
codegen_flags: <defaults>
</compile_context>

<pallas_src>
import heapq

import numpy as np
import jax
import jax.numpy as jnp
from jax.experimental import pallas as pl
from jax.experimental.pallas import tpu as pltpu


# ----------------------------- fused DAG kernel -----------------------------


def _make_fused_kernel(order, in_nodes, strides, input_node, output_node,
                       H, W, Cout):
    """Builds the fused whole-DAG kernel (traced once; Python loops unroll)."""
    H2, W2 = H // 2, W // 2
    # The interior of the padded slab is stored at sublane offset 8 (aligned),
    # so the interior store is an aligned block store; the 9 depthwise taps
    # read at offsets 7/8/9 (cheap static slices).
    OJ = 8

    def kernel(*refs):
        # refs = (x_ref, sel_ref, [w, dw, pw, scale, shift] per node in `order`,
        #         out_ref, pad_ref)
        x_ref, sel_ref = refs[0], refs[1]
        idx = 2
        node_refs = {}
        for node in order:
            node_refs[node] = refs[idx:idx + 5]
            idx += 5
        out_ref, pad_ref = refs[idx], refs[idx + 1]

        processed = {input_node: x_ref[0]}            # (H, W, Cin), NHWC

        for node in order:
            w_ref, dw_ref, pw_ref, sc_ref, sh_ref = node_refs[node]
            parents = [processed[p] for p in in_nodes[node]]
            h, w, c = parents[0].shape

            # sigmoid-weighted aggregation of parents (sigmoid baked into w).
            agg = w_ref[0] * parents[0]
            for k in range(1, len(parents)):
                agg = agg + w_ref[k] * parents[k]

            # ReLU (commutes with the zero padding below and the aggregation).
            xr = jnp.maximum(agg, 0.0)

            # Zero-pad by 1 pixel into the VMEM scratch slab (interior stored
            # sublane-aligned at column OJ; the zeroed frame provides the halo).
            pad_ref[...] = jnp.zeros(pad_ref.shape, jnp.float32)
            pad_ref[1:h + 1, OJ:OJ + w, 0:c] = xr

            # Depthwise 3x3, stride-1 taps (static slices of the scratch ref).
            dw = dw_ref[...]                          # (3, 3, c)
            acc = jnp.zeros((h, w, c), jnp.float32)
            for di in range(3):
                for dj in range(3):
                    tap = pad_ref[di:di + h, OJ - 1 + dj:OJ - 1 + dj + w, 0:c]
                    acc = acc + tap * dw[di, dj]      # (h,w,c) * (c,) broadcast

            acc2 = acc.reshape(h * w, c)              # spatial on sublanes

            if strides[node] == 2:
                # stride-2 == even-subsampled stride-1; select even taps with a
                # tiny 0/1 selection matmul BEFORE the pointwise conv.
                acc2 = jnp.dot(sel_ref[...], acc2,
                               preferred_element_type=jnp.float32)
                oh, ow = h // 2, w // 2
            else:
                oh, ow = h, w

            # Pointwise 1x1 conv + folded BN: one matmul, one assignment.
            y = jnp.dot(acc2, pw_ref[...], preferred_element_type=jnp.float32)
            y = y * sc_ref[...] + sh_ref[...]
            processed[node] = y.reshape(oh, ow, Cout)

        # Mean over the output node's parents, folded into the kernel (linear).
        outs = [processed[p] for p in in_nodes[output_node]]
        m = outs[0]
        for o in outs[1:]:
            m = m + o
        m = m * (1.0 / float(len(outs)))
        out_ref[0] = m.reshape(H2 * W2, Cout)         # single block store

    return kernel


# ------------------------------- parameters --------------------------------


def _init_node_params(key, cin, cout, k_in):
    ks = jax.random.split(key, 6)
    if k_in > 1:
        w_sig = jax.nn.sigmoid(0.1 * jax.random.normal(ks[0], (k_in,), jnp.float32))
    else:
        w_sig = jnp.ones((1,), jnp.float32)   # single-input nodes skip weighting
    dw = 0.2 * jax.random.normal(ks[1], (3, 3, cin), jnp.float32)
    pw = jax.random.normal(ks[2], (cin, cout), jnp.float32) / jnp.sqrt(float(cin))
    gamma = 1.0 + 0.1 * jax.random.normal(ks[3], (1, cout), jnp.float32)
    beta = 0.1 * jax.random.normal(ks[4], (1, cout), jnp.float32)
    running_mean = 0.1 * jax.random.normal(ks[5], (1, cout), jnp.float32)
    running_var = jnp.ones((1, cout), jnp.float32)
    eps = 1e-5
    scale = gamma / jnp.sqrt(running_var + eps)       # eval-mode BN folding
    shift = beta - running_mean * scale
    return dict(w=w_sig, dw=dw, pw=pw, scale=scale, shift=shift)


# --------------------------------- module ----------------------------------


class RandWirePallas:
    """JAX/Pallas equivalent of Rand_Wire.forward on a fixed deterministic DAG,
    fused into a single pallas_call (activations stay resident in VMEM)."""

    def __init__(self, node_num, in_channels, out_channels, key):
        self.input_node = 0
        self.output_node = node_num + 1
        self.in_channels = in_channels
        self.out_channels = out_channels
        # Deterministic DAG (edges low -> high); node 1 is the only node fed by
        # the input node, nodes 3 and 4 feed the output node.
        self.graph = {0: [1], 1: [2, 3], 2: [3, 4], 3: [4, 5], 4: [5]}
        self.in_nodes = self._get_in_nodes()

        self.node_params = {}
        self.node_strides = {}
        self.node_cin = {}
        keys = jax.random.split(key, node_num + 2)
        for node, inputs in self.in_nodes.items():
            if node == self.output_node:
                continue
            if inputs[0] == self.input_node:
                cin, stride = in_channels, 2
            else:
                cin, stride = out_channels, 1
            self.node_params[node] = _init_node_params(keys[node], cin,
                                                       out_channels, len(inputs))
            self.node_strides[node] = stride
            self.node_cin[node] = cin

    def _get_in_nodes(self):
        in_nodes = {}
        for in_, outs in self.graph.items():
            for node in outs:
                in_nodes.setdefault(node, []).append(in_)
        return in_nodes

    def _topo_order(self):
        # Same heap-based traversal as the reference forward (trace-time only).
        heap = [self.input_node]
        heap_set = {self.input_node}
        order = []
        while heap:
            node = heapq.heappop(heap)
            heap_set.remove(node)
            if node != self.input_node:
                order.append(node)
            for nb in self.graph.get(node, []):
                if nb not in heap_set and nb != self.output_node:
                    heapq.heappush(heap, nb)
                    heap_set.add(nb)
        return order

    def __call__(self, x_nchw):
        x = jnp.transpose(x_nchw, (0, 2, 3, 1)).astype(jnp.float32)  # NCHW->NHWC
        N, H, W, Cin = x.shape
        Cout = self.out_channels
        H2, W2 = H // 2, W // 2
        order = self._topo_order()

        # Stride-2 even-tap selection matrix (host constant).
        sel = np.zeros((H2 * W2, H * W), np.float32)
        for hi in range(H2):
            for wi in range(W2):
                sel[hi * W2 + wi, (2 * hi) * W + 2 * wi] = 1.0
        sel = jnp.asarray(sel)

        inputs = [x, sel]
        in_specs = [
            pl.BlockSpec((1, H, W, Cin), lambda n: (n, 0, 0, 0)),
            pl.BlockSpec((H2 * W2, H * W), lambda n: (0, 0)),
        ]
        for node in order:
            p = self.node_params[node]
            c = self.node_cin[node]
            inputs += [p["w"], p["dw"], p["pw"], p["scale"], p["shift"]]
            in_specs += [
                pl.BlockSpec(memory_space=pltpu.MemorySpace.SMEM),   # agg weights
                pl.BlockSpec((3, 3, c), lambda n: (0, 0, 0)),        # depthwise
                pl.BlockSpec((c, Cout), lambda n: (0, 0)),           # pointwise
                pl.BlockSpec((1, Cout), lambda n: (0, 0)),           # BN scale
                pl.BlockSpec((1, Cout), lambda n: (0, 0)),           # BN shift
            ]

        kernel = _make_fused_kernel(order, self.in_nodes, self.node_strides,
                                    self.input_node, self.output_node,
                                    H, W, Cout)

        cmax = max(Cin, Cout)
        y_flat = pl.pallas_call(
            kernel,
            out_shape=jax.ShapeDtypeStruct((N, H2 * W2, Cout), jnp.float32),
            grid=(N,),
            in_specs=in_specs,
            out_specs=pl.BlockSpec((1, H2 * W2, Cout), lambda n: (n, 0, 0)),
            scratch_shapes=[pltpu.VMEM((H + 2, W + 16, cmax), jnp.float32)],
            compiler_params=pltpu.CompilerParams(
                dimension_semantics=("parallel",)),
        )(*inputs)

        y = y_flat.reshape(N, H2, W2, Cout)
        return jnp.transpose(y, (0, 3, 1, 2))          # NHWC -> NCHW


# ---------------------------------- main ------------------------------------


if __name__ == "__main__":
    node_num = 4
    in_channels, out_channels = 4, 8
    N, H, W = 2, 16, 16

    model = RandWirePallas(node_num, in_channels, out_channels,
                           key=jax.random.PRNGKey(1))
    x = jax.random.normal(jax.random.PRNGKey(0), (N, in_channels, H, W),
                          jnp.float32)                 # NCHW, like the PyTorch module

    y = model(x)
    jax.block_until_ready(y)
    assert y.shape == (N, out_channels, H // 2, W // 2)
    print("KERNEL_OK")
</pallas_src>

<mosaic_0001>
module attributes {stable_mosaic.version = 11 : i64} {
  func.func @kernel(%arg0: i32, %arg1: memref<1x16x16x4xf32, #tpu.memory_space<vmem>>, %arg2: memref<64x256xf32, #tpu.memory_space<vmem>>, %arg3: memref<1xf32, #tpu.memory_space<smem>>, %arg4: memref<3x3x4xf32, #tpu.memory_space<vmem>>, %arg5: memref<4x8xf32, #tpu.memory_space<vmem>>, %arg6: memref<1x8xf32, #tpu.memory_space<vmem>>, %arg7: memref<1x8xf32, #tpu.memory_space<vmem>>, %arg8: memref<1xf32, #tpu.memory_space<smem>>, %arg9: memref<3x3x8xf32, #tpu.memory_space<vmem>>, %arg10: memref<8x8xf32, #tpu.memory_space<vmem>>, %arg11: memref<1x8xf32, #tpu.memory_space<vmem>>, %arg12: memref<1x8xf32, #tpu.memory_space<vmem>>, %arg13: memref<2xf32, #tpu.memory_space<smem>>, %arg14: memref<3x3x8xf32, #tpu.memory_space<vmem>>, %arg15: memref<8x8xf32, #tpu.memory_space<vmem>>, %arg16: memref<1x8xf32, #tpu.memory_space<vmem>>, %arg17: memref<1x8xf32, #tpu.memory_space<vmem>>, %arg18: memref<2xf32, #tpu.memory_space<smem>>, %arg19: memref<3x3x8xf32, #tpu.memory_space<vmem>>, %arg20: memref<8x8xf32, #tpu.memory_space<vmem>>, %arg21: memref<1x8xf32, #tpu.memory_space<vmem>>, %arg22: memref<1x8xf32, #tpu.memory_space<vmem>>, %arg23: memref<1x64x8xf32, #tpu.memory_space<vmem>>, %arg24: memref<18x32x8xf32, #tpu.memory_space<vmem>>) attributes {dimension_semantics = [#tpu.dimension_semantics<parallel>], iteration_bounds = array<i64: 2>, scalar_prefetch = 0 : i64, scratch_operands = 1 : i64, tpu.core_type = #tpu.core_type<tc>, window_params = [{transform_indices = @transform_0, window_bounds = array<i64: 1, 16, 16, 4>}, {pipeline_mode = #tpu.pipeline_mode<synchronous>, transform_indices = @transform_1, window_bounds = array<i64: 64, 256>}, {transform_indices = @transform_2, window_bounds = array<i64: 1>}, {pipeline_mode = #tpu.pipeline_mode<synchronous>, transform_indices = @transform_3, window_bounds = array<i64: 3, 3, 4>}, {pipeline_mode = #tpu.pipeline_mode<synchronous>, transform_indices = @transform_4, window_bounds = array<i64: 4, 8>}, {pipeline_mode = #tpu.pipeline_mode<synchronous>, transform_indices = @transform_5, window_bounds = array<i64: 1, 8>}, {pipeline_mode = #tpu.pipeline_mode<synchronous>, transform_indices = @transform_6, window_bounds = array<i64: 1, 8>}, {transform_indices = @transform_7, window_bounds = array<i64: 1>}, {pipeline_mode = #tpu.pipeline_mode<synchronous>, transform_indices = @transform_8, window_bounds = array<i64: 3, 3, 8>}, {pipeline_mode = #tpu.pipeline_mode<synchronous>, transform_indices = @transform_9, window_bounds = array<i64: 8, 8>}, {pipeline_mode = #tpu.pipeline_mode<synchronous>, transform_indices = @transform_10, window_bounds = array<i64: 1, 8>}, {pipeline_mode = #tpu.pipeline_mode<synchronous>, transform_indices = @transform_11, window_bounds = array<i64: 1, 8>}, {transform_indices = @transform_12, window_bounds = array<i64: 2>}, {pipeline_mode = #tpu.pipeline_mode<synchronous>, transform_indices = @transform_13, window_bounds = array<i64: 3, 3, 8>}, {pipeline_mode = #tpu.pipeline_mode<synchronous>, transform_indices = @transform_14, window_bounds = array<i64: 8, 8>}, {pipeline_mode = #tpu.pipeline_mode<synchronous>, transform_indices = @transform_15, window_bounds = array<i64: 1, 8>}, {pipeline_mode = #tpu.pipeline_mode<synchronous>, transform_indices = @transform_16, window_bounds = array<i64: 1, 8>}, {transform_indices = @transform_17, window_bounds = array<i64: 2>}, {pipeline_mode = #tpu.pipeline_mode<synchronous>, transform_indices = @transform_18, window_bounds = array<i64: 3, 3, 8>}, {pipeline_mode = #tpu.pipeline_mode<synchronous>, transform_indices = @transform_19, window_bounds = array<i64: 8, 8>}, {pipeline_mode = #tpu.pipeline_mode<synchronous>, transform_indices = @transform_20, window_bounds = array<i64: 1, 8>}, {pipeline_mode = #tpu.pipeline_mode<synchronous>, transform_indices = @transform_21, window_bounds = array<i64: 1, 8>}, {transform_indices = @transform_22, window_bounds = array<i64: 1, 64, 8>}]} {
    %c0 = arith.constant 0 : index
    %c0_0 = arith.constant 0 : index
    %c0_1 = arith.constant 0 : index
    %c0_2 = arith.constant 0 : index
    %0 = vector.load %arg1[%c0, %c0_0, %c0_1, %c0_2] : memref<1x16x16x4xf32, #tpu.memory_space<vmem>>, vector<1x16x16x4xf32>
    %1 = vector.shape_cast %0 : vector<1x16x16x4xf32> to vector<16x16x4xf32>
    %c0_3 = arith.constant 0 : index
    %2 = memref.load %arg3[%c0_3] : memref<1xf32, #tpu.memory_space<smem>>
    %3 = vector.broadcast %2 : f32 to vector<16x16x4xf32>
    %4 = arith.mulf %3, %1 : vector<16x16x4xf32>
    %cst = arith.constant 0.000000e+00 : f32
    %5 = vector.broadcast %cst : f32 to vector<16x16x4xf32>
    %6 = arith.maximumf %4, %5 : vector<16x16x4xf32>
    %cst_4 = arith.constant 0.000000e+00 : f32
    %7 = vector.broadcast %cst_4 : f32 to vector<18x32x8xf32>
    %c0_5 = arith.constant 0 : index
    %c0_6 = arith.constant 0 : index
    %c0_7 = arith.constant 0 : index
    %8 = vector.load %arg24[%c0_5, %c0_6, %c0_7] : memref<18x32x8xf32, #tpu.memory_space<vmem>>, vector<18x32x8xf32>
    tpu.vector_store %arg24[%c0_5, %c0_6, %c0_7], %7 {strides = array<i32>} : memref<18x32x8xf32, #tpu.memory_space<vmem>>, vector<18x32x8xf32>,
    %c1 = arith.constant 1 : index
    %c8 = arith.constant 8 : index
    %c0_8 = arith.constant 0 : index
    %9 = vector.load %arg24[%c1, %c8, %c0_8] : memref<18x32x8xf32, #tpu.memory_space<vmem>>, vector<16x16x4xf32>
    tpu.vector_store %arg24[%c1, %c8, %c0_8], %6 {strides = array<i32>} : memref<18x32x8xf32, #tpu.memory_space<vmem>>, vector<16x16x4xf32>,
    %c0_9 = arith.constant 0 : index
    %c0_10 = arith.constant 0 : index
    %c0_11 = arith.constant 0 : index
    %10 = vector.load %arg4[%c0_9, %c0_10, %c0_11] : memref<3x3x4xf32, #tpu.memory_space<vmem>>, vector<3x3x4xf32>
    %cst_12 = arith.constant 0.000000e+00 : f32
    %11 = vector.broadcast %cst_12 : f32 to vector<16x16x4xf32>
    %c0_13 = arith.constant 0 : index
    %c7 = arith.constant 7 : index
    %c0_14 = arith.constant 0 : index
    %12 = vector.load %arg24[%c0_13, %c7, %c0_14] : memref<18x32x8xf32, #tpu.memory_space<vmem>>, vector<16x16x4xf32>
    %13 = vector.extract_strided_slice %10 {offsets = [0, 0, 0], sizes = [1, 1, 4], strides = [1, 1, 1]} : vector<3x3x4xf32> to vector<1x1x4xf32>
    %14 = vector.shape_cast %13 : vector<1x1x4xf32> to vector<4xf32>
    %15 = vector.shape_cast %14 : vector<4xf32> to vector<1x1x4xf32>
    %16 = vector.broadcast %15 : vector<1x1x4xf32> to vector<16x16x4xf32>
    %17 = arith.mulf %12, %16 : vector<16x16x4xf32>
    %18 = arith.addf %11, %17 : vector<16x16x4xf32>
    %c0_15 = arith.constant 0 : index
    %c8_16 = arith.constant 8 : index
    %c0_17 = arith.constant 0 : index
    %19 = vector.load %arg24[%c0_15, %c8_16, %c0_17] : memref<18x32x8xf32, #tpu.memory_space<vmem>>, vector<16x16x4xf32>
    %20 = vector.extract_strided_slice %10 {offsets = [0, 1, 0], sizes = [1, 1, 4], strides = [1, 1, 1]} : vector<3x3x4xf32> to vector<1x1x4xf32>
    %21 = vector.shape_cast %20 : vector<1x1x4xf32> to vector<4xf32>
    %22 = vector.shape_cast %21 : vector<4xf32> to vector<1x1x4xf32>
    %23 = vector.broadcast %22 : vector<1x1x4xf32> to vector<16x16x4xf32>
    %24 = arith.mulf %19, %23 : vector<16x16x4xf32>
    %25 = arith.addf %18, %24 : vector<16x16x4xf32>
    %c0_18 = arith.constant 0 : index
    %c9 = arith.constant 9 : index
    %c0_19 = arith.constant 0 : index
    %26 = vector.load %arg24[%c0_18, %c9, %c0_19] : memref<18x32x8xf32, #tpu.memory_space<vmem>>, vector<16x16x4xf32>
    %27 = vector.extract_strided_slice %10 {offsets = [0, 2, 0], sizes = [1, 1, 4], strides = [1, 1, 1]} : vector<3x3x4xf32> to vector<1x1x4xf32>
    %28 = vector.shape_cast %27 : vector<1x1x4xf32> to vector<4xf32>
    %29 = vector.shape_cast %28 : vector<4xf32> to vector<1x1x4xf32>
    %30 = vector.broadcast %29 : vector<1x1x4xf32> to vector<16x16x4xf32>
    %31 = arith.mulf %26, %30 : vector<16x16x4xf32>
    %32 = arith.addf %25, %31 : vector<16x16x4xf32>
    %c1_20 = arith.constant 1 : index
    %c7_21 = arith.constant 7 : index
    %c0_22 = arith.constant 0 : index
    %33 = vector.load %arg24[%c1_20, %c7_21, %c0_22] : memref<18x32x8xf32, #tpu.memory_space<vmem>>, vector<16x16x4xf32>
    %34 = vector.extract_strided_slice %10 {offsets = [1, 0, 0], sizes = [1, 1, 4], strides = [1, 1, 1]} : vector<3x3x4xf32> to vector<1x1x4xf32>
    %35 = vector.shape_cast %34 : vector<1x1x4xf32> to vector<4xf32>
    %36 = vector.shape_cast %35 : vector<4xf32> to vector<1x1x4xf32>
    %37 = vector.broadcast %36 : vector<1x1x4xf32> to vector<16x16x4xf32>
    %38 = arith.mulf %33, %37 : vector<16x16x4xf32>
    %39 = arith.addf %32, %38 : vector<16x16x4xf32>
    %c1_23 = arith.constant 1 : index
    %c8_24 = arith.constant 8 : index
    %c0_25 = arith.constant 0 : index
    %40 = vector.load %arg24[%c1_23, %c8_24, %c0_25] : memref<18x32x8xf32, #tpu.memory_space<vmem>>, vector<16x16x4xf32>
    %41 = vector.extract_strided_slice %10 {offsets = [1, 1, 0], sizes = [1, 1, 4], strides = [1, 1, 1]} : vector<3x3x4xf32> to vector<1x1x4xf32>
    %42 = vector.shape_cast %41 : vector<1x1x4xf32> to vector<4xf32>
    %43 = vector.shape_cast %42 : vector<4xf32> to vector<1x1x4xf32>
    %44 = vector.broadcast %43 : vector<1x1x4xf32> to vector<16x16x4xf32>
    %45 = arith.mulf %40, %44 : vector<16x16x4xf32>
    %46 = arith.addf %39, %45 : vector<16x16x4xf32>
    %c1_26 = arith.constant 1 : index
    %c9_27 = arith.constant 9 : index
    %c0_28 = arith.constant 0 : index
    %47 = vector.load %arg24[%c1_26, %c9_27, %c0_28] : memref<18x32x8xf32, #tpu.memory_space<vmem>>, vector<16x16x4xf32>
    %48 = vector.extract_strided_slice %10 {offsets = [1, 2, 0], sizes = [1, 1, 4], strides = [1, 1, 1]} : vector<3x3x4xf32> to vector<1x1x4xf32>
    %49 = vector.shape_cast %48 : vector<1x1x4xf32> to vector<4xf32>
    %50 = vector.shape_cast %49 : vector<4xf32> to vector<1x1x4xf32>
    %51 = vector.broadcast %50 : vector<1x1x4xf32> to vector<16x16x4xf32>
    %52 = arith.mulf %47, %51 : vector<16x16x4xf32>
    %53 = arith.addf %46, %52 : vector<16x16x4xf32>
    %c2 = arith.constant 2 : index
    %c7_29 = arith.constant 7 : index
    %c0_30 = arith.constant 0 : index
    %54 = vector.load %arg24[%c2, %c7_29, %c0_30] : memref<18x32x8xf32, #tpu.memory_space<vmem>>, vector<16x16x4xf32>
    %55 = vector.extract_strided_slice %10 {offsets = [2, 0, 0], sizes = [1, 1, 4], strides = [1, 1, 1]} : vector<3x3x4xf32> to vector<1x1x4xf32>
    %56 = vector.shape_cast %55 : vector<1x1x4xf32> to vector<4xf32>
    %57 = vector.shape_cast %56 : vector<4xf32> to vector<1x1x4xf32>
    %58 = vector.broadcast %57 : vector<1x1x4xf32> to vector<16x16x4xf32>
    %59 = arith.mulf %54, %58 : vector<16x16x4xf32>
    %60 = arith.addf %53, %59 : vector<16x16x4xf32>
    %c2_31 = arith.constant 2 : index
    %c8_32 = arith.constant 8 : index
    %c0_33 = arith.constant 0 : index
    %61 = vector.load %arg24[%c2_31, %c8_32, %c0_33] : memref<18x32x8xf32, #tpu.memory_space<vmem>>, vector<16x16x4xf32>
    %62 = vector.extract_strided_slice %10 {offsets = [2, 1, 0], sizes = [1, 1, 4], strides = [1, 1, 1]} : vector<3x3x4xf32> to vector<1x1x4xf32>
    %63 = vector.shape_cast %62 : vector<1x1x4xf32> to vector<4xf32>
    %64 = vector.shape_cast %63 : vector<4xf32> to vector<1x1x4xf32>
    %65 = vector.broadcast %64 : vector<1x1x4xf32> to vector<16x16x4xf32>
    %66 = arith.mulf %61, %65 : vector<16x16x4xf32>
    %67 = arith.addf %60, %66 : vector<16x16x4xf32>
    %c2_34 = arith.constant 2 : index
    %c9_35 = arith.constant 9 : index
    %c0_36 = arith.constant 0 : index
    %68 = vector.load %arg24[%c2_34, %c9_35, %c0_36] : memref<18x32x8xf32, #tpu.memory_space<vmem>>, vector<16x16x4xf32>
    %69 = vector.extract_strided_slice %10 {offsets = [2, 2, 0], sizes = [1, 1, 4], strides = [1, 1, 1]} : vector<3x3x4xf32> to vector<1x1x4xf32>
    %70 = vector.shape_cast %69 : vector<1x1x4xf32> to vector<4xf32>
    %71 = vector.shape_cast %70 : vector<4xf32> to vector<1x1x4xf32>
    %72 = vector.broadcast %71 : vector<1x1x4xf32> to vector<16x16x4xf32>
    %73 = arith.mulf %68, %72 : vector<16x16x4xf32>
    %74 = arith.addf %67, %73 : vector<16x16x4xf32>
    %75 = vector.shape_cast %74 : vector<16x16x4xf32> to vector<256x4xf32>
    %c0_37 = arith.constant 0 : index
    %c0_38 = arith.constant 0 : index
    %76 = vector.load %arg2[%c0_37, %c0_38] : memref<64x256xf32, #tpu.memory_space<vmem>>, vector<64x256xf32>
    %cst_39 = arith.constant dense<0.000000e+00> : vector<64x4xf32>
    %77 = tpu.matmul %76, %75, %cst_39 {dimension_numbers = #tpu.dot_dimension_numbers<[1], [0], [0], [1], [0, 0, 1, 1], [], []>} : vector<64x256xf32>, vector<256x4xf32>, vector<64x4xf32> -> vector<64x4xf32>
    %c0_40 = arith.constant 0 : index
    %c0_41 = arith.constant 0 : index
    %78 = vector.load %arg5[%c0_40, %c0_41] : memref<4x8xf32, #tpu.memory_space<vmem>>, vector<4x8xf32>
    %cst_42 = arith.constant dense<0.000000e+00> : vector<64x8xf32>
    %79 = tpu.matmul %77, %78, %cst_42 {dimension_numbers = #tpu.dot_dimension_numbers<[1], [0], [0], [1], [0, 0, 1, 1], [], []>} : vector<64x4xf32>, vector<4x8xf32>, vector<64x8xf32> -> vector<64x8xf32>
    %c0_43 = arith.constant 0 : index
    %c0_44 = arith.constant 0 : index
    %80 = vector.load %arg6[%c0_43, %c0_44] : memref<1x8xf32, #tpu.memory_space<vmem>>, vector<1x8xf32>
    %81 = vector.broadcast %80 : vector<1x8xf32> to vector<64x8xf32>
    %82 = arith.mulf %79, %81 : vector<64x8xf32>
    %c0_45 = arith.constant 0 : index
    %c0_46 = arith.constant 0 : index
    %83 = vector.load %arg7[%c0_45, %c0_46] : memref<1x8xf32, #tpu.memory_space<vmem>>, vector<1x8xf32>
    %84 = vector.broadcast %83 : vector<1x8xf32> to vector<64x8xf32>
    %85 = arith.addf %82, %84 : vector<64x8xf32>
    %86 = vector.shape_cast %85 : vector<64x8xf32> to vector<8x8x8xf32>
    %c0_47 = arith.constant 0 : index
    %87 = memref.load %arg8[%c0_47] : memref<1xf32, #tpu.memory_space<smem>>
    %88 = vector.broadcast %87 : f32 to vector<8x8x8xf32>
    %89 = arith.mulf %88, %86 : vector<8x8x8xf32>
    %cst_48 = arith.constant 0.000000e+00 : f32
    %90 = vector.broadcast %cst_48 : f32 to vector<8x8x8xf32>
    %91 = arith.maximumf %89, %90 : vector<8x8x8xf32>
    %cst_49 = arith.constant 0.000000e+00 : f32
    %92 = vector.broadcast %cst_49 : f32 to vector<18x32x8xf32>
    %c0_50 = arith.constant 0 : index
    %c0_51 = arith.constant 0 : index
    %c0_52 = arith.constant 0 : index
    %93 = vector.load %arg24[%c0_50, %c0_51, %c0_52] : memref<18x32x8xf32, #tpu.memory_space<vmem>>, vector<18x32x8xf32>
    tpu.vector_store %arg24[%c0_50, %c0_51, %c0_52], %92 {strides = array<i32>} : memref<18x32x8xf32, #tpu.memory_space<vmem>>, vector<18x32x8xf32>,
    %c1_53 = arith.constant 1 : index
    %c8_54 = arith.constant 8 : index
    %c0_55 = arith.constant 0 : index
    %94 = vector.load %arg24[%c1_53, %c8_54, %c0_55] : memref<18x32x8xf32, #tpu.memory_space<vmem>>, vector<8x8x8xf32>
    tpu.vector_store %arg24[%c1_53, %c8_54, %c0_55], %91 {strides = array<i32>} : memref<18x32x8xf32, #tpu.memory_space<vmem>>, vector<8x8x8xf32>,
    %c0_56 = arith.constant 0 : index
    %c0_57 = arith.constant 0 : index
    %c0_58 = arith.constant 0 : index
    %95 = vector.load %arg9[%c0_56, %c0_57, %c0_58] : memref<3x3x8xf32, #tpu.memory_space<vmem>>, vector<3x3x8xf32>
    %cst_59 = arith.constant 0.000000e+00 : f32
    %96 = vector.broadcast %cst_59 : f32 to vector<8x8x8xf32>
    %c0_60 = arith.constant 0 : index
    %c7_61 = arith.constant 7 : index
    %c0_62 = arith.constant 0 : index
    %97 = vector.load %arg24[%c0_60, %c7_61, %c0_62] : memref<18x32x8xf32, #tpu.memory_space<vmem>>, vector<8x8x8xf32>
    %98 = vector.extract_strided_slice %95 {offsets = [0, 0, 0], sizes = [1, 1, 8], strides = [1, 1, 1]} : vector<3x3x8xf32> to vector<1x1x8xf32>
    %99 = vector.shape_cast %98 : vector<1x1x8xf32> to vector<8xf32>
    %100 = vector.shape_cast %99 : vector<8xf32> to vector<1x1x8xf32>
    %101 = vector.broadcast %100 : vector<1x1x8xf32> to vector<8x8x8xf32>
    %102 = arith.mulf %97, %101 : vector<8x8x8xf32>
    %103 = arith.addf %96, %102 : vector<8x8x8xf32>
    %c0_63 = arith.constant 0 : index
    %c8_64 = arith.constant 8 : index
    %c0_65 = arith.constant 0 : index
    %104 = vector.load %arg24[%c0_63, %c8_64, %c0_65] : memref<18x32x8xf32, #tpu.memory_space<vmem>>, vector<8x8x8xf32>
    %105 = vector.extract_strided_slice %95 {offsets = [0, 1, 0], sizes = [1, 1, 8], strides = [1, 1, 1]} : vector<3x3x8xf32> to vector<1x1x8xf32>
    %106 = vector.shape_cast %105 : vector<1x1x8xf32> to vector<8xf32>
    %107 = vector.shape_cast %106 : vector<8xf32> to vector<1x1x8xf32>
    %108 = vector.broadcast %107 : vector<1x1x8xf32> to vector<8x8x8xf32>
    %109 = arith.mulf %104, %108 : vector<8x8x8xf32>
    %110 = arith.addf %103, %109 : vector<8x8x8xf32>
    %c0_66 = arith.constant 0 : index
    %c9_67 = arith.constant 9 : index
    %c0_68 = arith.constant 0 : index
    %111 = vector.load %arg24[%c0_66, %c9_67, %c0_68] : memref<18x32x8xf32, #tpu.memory_space<vmem>>, vector<8x8x8xf32>
    %112 = vector.extract_strided_slice %95 {offsets = [0, 2, 0], sizes = [1, 1, 8], strides = [1, 1, 1]} : vector<3x3x8xf32> to vector<1x1x8xf32>
    %113 = vector.shape_cast %112 : vector<1x1x8xf32> to vector<8xf32>
    %114 = vector.shape_cast %113 : vector<8xf32> to vector<1x1x8xf32>
    %115 = vector.broadcast %114 : vector<1x1x8xf32> to vector<8x8x8xf32>
    %116 = arith.mulf %111, %115 : vector<8x8x8xf32>
    %117 = arith.addf %110, %116 : vector<8x8x8xf32>
    %c1_69 = arith.constant 1 : index
    %c7_70 = arith.constant 7 : index
    %c0_71 = arith.constant 0 : index
    %118 = vector.load %arg24[%c1_69, %c7_70, %c0_71] : memref<18x32x8xf32, #tpu.memory_space<vmem>>, vector<8x8x8xf32>
    %119 = vector.extract_strided_slice %95 {offsets = [1, 0, 0], sizes = [1, 1, 8], strides = [1, 1, 1]} : vector<3x3x8xf32> to vector<1x1x8xf32>
    %120 = vector.shape_cast %119 : vector<1x1x8xf32> to vector<8xf32>
    %121 = vector.shape_cast %120 : vector<8xf32> to vector<1x1x8xf32>
    %122 = vector.broadcast %121 : vector<1x1x8xf32> to vector<8x8x8xf32>
    %123 = arith.mulf %118, %122 : vector<8x8x8xf32>
    %124 = arith.addf %117, %123 : vector<8x8x8xf32>
    %c1_72 = arith.constant 1 : index
    %c8_73 = arith.constant 8 : index
    %c0_74 = arith.constant 0 : index
    %125 = vector.load %arg24[%c1_72, %c8_73, %c0_74] : memref<18x32x8xf32, #tpu.memory_space<vmem>>, vector<8x8x8xf32>
    %126 = vector.extract_strided_slice %95 {offsets = [1, 1, 0], sizes = [1, 1, 8], strides = [1, 1, 1]} : vector<3x3x8xf32> to vector<1x1x8xf32>
    %127 = vector.shape_cast %126 : vector<1x1x8xf32> to vector<8xf32>
    %128 = vector.shape_cast %127 : vector<8xf32> to vector<1x1x8xf32>
    %129 = vector.broadcast %128 : vector<1x1x8xf32> to vector<8x8x8xf32>
    %130 = arith.mulf %125, %129 : vector<8x8x8xf32>
    %131 = arith.addf %124, %130 : vector<8x8x8xf32>
    %c1_75 = arith.constant 1 : index
    %c9_76 = arith.constant 9 : index
    %c0_77 = arith.constant 0 : index
    %132 = vector.load %arg24[%c1_75, %c9_76, %c0_77] : memref<18x32x8xf32, #tpu.memory_space<vmem>>, vector<8x8x8xf32>
    %133 = vector.extract_strided_slice %95 {offsets = [1, 2, 0], sizes = [1, 1, 8], strides = [1, 1, 1]} : vector<3x3x8xf32> to vector<1x1x8xf32>
    %134 = vector.shape_cast %133 : vector<1x1x8xf32> to vector<8xf32>
    %135 = vector.shape_cast %134 : vector<8xf32> to vector<1x1x8xf32>
    %136 = vector.broadcast %135 : vector<1x1x8xf32> to vector<8x8x8xf32>
    %137 = arith.mulf %132, %136 : vector<8x8x8xf32>
    %138 = arith.addf %131, %137 : vector<8x8x8xf32>
    %c2_78 = arith.constant 2 : index
    %c7_79 = arith.constant 7 : index
    %c0_80 = arith.constant 0 : index
    %139 = vector.load %arg24[%c2_78, %c7_79, %c0_80] : memref<18x32x8xf32, #tpu.memory_space<vmem>>, vector<8x8x8xf32>
    %140 = vector.extract_strided_slice %95 {offsets = [2, 0, 0], sizes = [1, 1, 8], strides = [1, 1, 1]} : vector<3x3x8xf32> to vector<1x1x8xf32>
    %141 = vector.shape_cast %140 : vector<1x1x8xf32> to vector<8xf32>
    %142 = vector.shape_cast %141 : vector<8xf32> to vector<1x1x8xf32>
    %143 = vector.broadcast %142 : vector<1x1x8xf32> to vector<8x8x8xf32>
    %144 = arith.mulf %139, %143 : vector<8x8x8xf32>
    %145 = arith.addf %138, %144 : vector<8x8x8xf32>
    %c2_81 = arith.constant 2 : index
    %c8_82 = arith.constant 8 : index
    %c0_83 = arith.constant 0 : index
    %146 = vector.load %arg24[%c2_81, %c8_82, %c0_83] : memref<18x32x8xf32, #tpu.memory_space<vmem>>, vector<8x8x8xf32>
    %147 = vector.extract_strided_slice %95 {offsets = [2, 1, 0], sizes = [1, 1, 8], strides = [1, 1, 1]} : vector<3x3x8xf32> to vector<1x1x8xf32>
    %148 = vector.shape_cast %147 : vector<1x1x8xf32> to vector<8xf32>
    %149 = vector.shape_cast %148 : vector<8xf32> to vector<1x1x8xf32>
    %150 = vector.broadcast %149 : vector<1x1x8xf32> to vector<8x8x8xf32>
    %151 = arith.mulf %146, %150 : vector<8x8x8xf32>
    %152 = arith.addf %145, %151 : vector<8x8x8xf32>
    %c2_84 = arith.constant 2 : index
    %c9_85 = arith.constant 9 : index
    %c0_86 = arith.constant 0 : index
    %153 = vector.load %arg24[%c2_84, %c9_85, %c0_86] : memref<18x32x8xf32, #tpu.memory_space<vmem>>, vector<8x8x8xf32>
    %154 = vector.extract_strided_slice %95 {offsets = [2, 2, 0], sizes = [1, 1, 8], strides = [1, 1, 1]} : vector<3x3x8xf32> to vector<1x1x8xf32>
    %155 = vector.shape_cast %154 : vector<1x1x8xf32> to vector<8xf32>
    %156 = vector.shape_cast %155 : vector<8xf32> to vector<1x1x8xf32>
    %157 = vector.broadcast %156 : vector<1x1x8xf32> to vector<8x8x8xf32>
    %158 = arith.mulf %153, %157 : vector<8x8x8xf32>
    %159 = arith.addf %152, %158 : vector<8x8x8xf32>
    %160 = vector.shape_cast %159 : vector<8x8x8xf32> to vector<64x8xf32>
    %c0_87 = arith.constant 0 : index
    %c0_88 = arith.constant 0 : index
    %161 = vector.load %arg10[%c0_87, %c0_88] : memref<8x8xf32, #tpu.memory_space<vmem>>, vector<8x8xf32>
    %cst_89 = arith.constant dense<0.000000e+00> : vector<64x8xf32>
    %162 = tpu.matmul %160, %161, %cst_89 {dimension_numbers = #tpu.dot_dimension_numbers<[1], [0], [0], [1], [0, 0, 1, 1], [], []>} : vector<64x8xf32>, vector<8x8xf32>, vector<64x8xf32> -> vector<64x8xf32>
    %c0_90 = arith.constant 0 : index
    %c0_91 = arith.constant 0 : index
    %163 = vector.load %arg11[%c0_90, %c0_91] : memref<1x8xf32, #tpu.memory_space<vmem>>, vector<1x8xf32>
    %164 = vector.broadcast %163 : vector<1x8xf32> to vector<64x8xf32>
    %165 = arith.mulf %162, %164 : vector<64x8xf32>
    %c0_92 = arith.constant 0 : index
    %c0_93 = arith.constant 0 : index
    %166 = vector.load %arg12[%c0_92, %c0_93] : memref<1x8xf32, #tpu.memory_space<vmem>>, vector<1x8xf32>
    %167 = vector.broadcast %166 : vector<1x8xf32> to vector<64x8xf32>
    %168 = arith.addf %165, %167 : vector<64x8xf32>
    %169 = vector.shape_cast %168 : vector<64x8xf32> to vector<8x8x8xf32>
    %c0_94 = arith.constant 0 : index
    %170 = memref.load %arg13[%c0_94] : memref<2xf32, #tpu.memory_space<smem>>
    %171 = vector.broadcast %170 : f32 to vector<8x8x8xf32>
    %172 = arith.mulf %171, %86 : vector<8x8x8xf32>
    %c1_95 = arith.constant 1 : index
    %173 = memref.load %arg13[%c1_95] : memref<2xf32, #tpu.memory_space<smem>>
    %174 = vector.broadcast %173 : f32 to vector<8x8x8xf32>
    %175 = arith.mulf %174, %169 : vector<8x8x8xf32>
    %176 = arith.addf %172, %175 : vector<8x8x8xf32>
    %cst_96 = arith.constant 0.000000e+00 : f32
    %177 = vector.broadcast %cst_96 : f32 to vector<8x8x8xf32>
    %178 = arith.maximumf %176, %177 : vector<8x8x8xf32>
    %cst_97 = arith.constant 0.000000e+00 : f32
    %179 = vector.broadcast %cst_97 : f32 to vector<18x32x8xf32>
    %c0_98 = arith.constant 0 : index
    %c0_99 = arith.constant 0 : index
    %c0_100 = arith.constant 0 : index
    %180 = vector.load %arg24[%c0_98, %c0_99, %c0_100] : memref<18x32x8xf32, #tpu.memory_space<vmem>>, vector<18x32x8xf32>
    tpu.vector_store %arg24[%c0_98, %c0_99, %c0_100], %179 {strides = array<i32>} : memref<18x32x8xf32, #tpu.memory_space<vmem>>, vector<18x32x8xf32>,
    %c1_101 = arith.constant 1 : index
    %c8_102 = arith.constant 8 : index
    %c0_103 = arith.constant 0 : index
    %181 = vector.load %arg24[%c1_101, %c8_102, %c0_103] : memref<18x32x8xf32, #tpu.memory_space<vmem>>, vector<8x8x8xf32>
    tpu.vector_store %arg24[%c1_101, %c8_102, %c0_103], %178 {strides = array<i32>} : memref<18x32x8xf32, #tpu.memory_space<vmem>>, vector<8x8x8xf32>,
    %c0_104 = arith.constant 0 : index
    %c0_105 = arith.constant 0 : index
    %c0_106 = arith.constant 0 : index
    %182 = vector.load %arg14[%c0_104, %c0_105, %c0_106] : memref<3x3x8xf32, #tpu.memory_space<vmem>>, vector<3x3x8xf32>
    %cst_107 = arith.constant 0.000000e+00 : f32
    %183 = vector.broadcast %cst_107 : f32 to vector<8x8x8xf32>
    %c0_108 = arith.constant 0 : index
    %c7_109 = arith.constant 7 : index
    %c0_110 = arith.constant 0 : index
    %184 = vector.load %arg24[%c0_108, %c7_109, %c0_110] : memref<18x32x8xf32, #tpu.memory_space<vmem>>, vector<8x8x8xf32>
    %185 = vector.extract_strided_slice %182 {offsets = [0, 0, 0], sizes = [1, 1, 8], strides = [1, 1, 1]} : vector<3x3x8xf32> to vector<1x1x8xf32>
    %186 = vector.shape_cast %185 : vector<1x1x8xf32> to vector<8xf32>
    %187 = vector.shape_cast %186 : vector<8xf32> to vector<1x1x8xf32>
    %188 = vector.broadcast %187 : vector<1x1x8xf32> to vector<8x8x8xf32>
    %189 = arith.mulf %184, %188 : vector<8x8x8xf32>
    %190 = arith.addf %183, %189 : vector<8x8x8xf32>
    %c0_111 = arith.constant 0 : index
    %c8_112 = arith.constant 8 : index
    %c0_113 = arith.constant 0 : index
    %191 = vector.load %arg24[%c0_111, %c8_112, %c0_113] : memref<18x32x8xf32, #tpu.memory_space<vmem>>, vector<8x8x8xf32>
    %192 = vector.extract_strided_slice %182 {offsets = [0, 1, 0], sizes = [1, 1, 8], strides = [1, 1, 1]} : vector<3x3x8xf32> to vector<1x1x8xf32>
    %193 = vector.shape_cast %192 : vector<1x1x8xf32> to vector<8xf32>
    %194 = vector.shape_cast %193 : vector<8xf32> to vector<1x1x8xf32>
    %195 = vector.broadcast %194 : vector<1x1x8xf32> to vector<8x8x8xf32>
    %196 = arith.mulf %191, %195 : vector<8x8x8xf32>
    %197 = arith.addf %190, %196 : vector<8x8x8xf32>
    %c0_114 = arith.constant 0 : index
    %c9_115 = arith.constant 9 : index
    %c0_116 = arith.constant 0 : index
    %198 = vector.load %arg24[%c0_114, %c9_115, %c0_116] : memref<18x32x8xf32, #tpu.memory_space<vmem>>, vector<8x8x8xf32>
    %199 = vector.extract_strided_slice %182 {offsets = [0, 2, 0], sizes = [1, 1, 8], strides = [1, 1, 1]} : vector<3x3x8xf32> to vector<1x1x8xf32>
    %200 = vector.shape_cast %199 : vector<1x1x8xf32> to vector<8xf32>
    %201 = vector.shape_cast %200 : vector<8xf32> to vector<1x1x8xf32>
    %202 = vector.broadcast %201 : vector<1x1x8xf32> to vector<8x8x8xf32>
    %203 = arith.mulf %198, %202 : vector<8x8x8xf32>
    %204 = arith.addf %197, %203 : vector<8x8x8xf32>
    %c1_117 = arith.constant 1 : index
    %c7_118 = arith.constant 7 : index
    %c0_119 = arith.constant 0 : index
    %205 = vector.load %arg24[%c1_117, %c7_118, %c0_119] : memref<18x32x8xf32, #tpu.memory_space<vmem>>, vector<8x8x8xf32>
    %206 = vector.extract_strided_slice %182 {offsets = [1, 0, 0], sizes = [1, 1, 8], strides = [1, 1, 1]} : vector<3x3x8xf32> to vector<1x1x8xf32>
    %207 = vector.shape_cast %206 : vector<1x1x8xf32> to vector<8xf32>
    %208 = vector.shape_cast %207 : vector<8xf32> to vector<1x1x8xf32>
    %209 = vector.broadcast %208 : vector<1x1x8xf32> to vector<8x8x8xf32>
    %210 = arith.mulf %205, %209 : vector<8x8x8xf32>
    %211 = arith.addf %204, %210 : vector<8x8x8xf32>
    %c1_120 = arith.constant 1 : index
    %c8_121 = arith.constant 8 : index
    %c0_122 = arith.constant 0 : index
    %212 = vector.load %arg24[%c1_120, %c8_121, %c0_122] : memref<18x32x8xf32, #tpu.memory_space<vmem>>, vector<8x8x8xf32>
    %213 = vector.extract_strided_slice %182 {offsets = [1, 1, 0], sizes = [1, 1, 8], strides = [1, 1, 1]} : vector<3x3x8xf32> to vector<1x1x8xf32>
    %214 = vector.shape_cast %213 : vector<1x1x8xf32> to vector<8xf32>
    %215 = vector.shape_cast %214 : vector<8xf32> to vector<1x1x8xf32>
    %216 = vector.broadcast %215 : vector<1x1x8xf32> to vector<8x8x8xf32>
    %217 = arith.mulf %212, %216 : vector<8x8x8xf32>
    %218 = arith.addf %211, %217 : vector<8x8x8xf32>
    %c1_123 = arith.constant 1 : index
    %c9_124 = arith.constant 9 : index
    %c0_125 = arith.constant 0 : index
    %219 = vector.load %arg24[%c1_123, %c9_124, %c0_125] : memref<18x32x8xf32, #tpu.memory_space<vmem>>, vector<8x8x8xf32>
    %220 = vector.extract_strided_slice %182 {offsets = [1, 2, 0], sizes = [1, 1, 8], strides = [1, 1, 1]} : vector<3x3x8xf32> to vector<1x1x8xf32>
    %221 = vector.shape_cast %220 : vector<1x1x8xf32> to vector<8xf32>
    %222 = vector.shape_cast %221 : vector<8xf32> to vector<1x1x8xf32>
    %223 = vector.broadcast %222 : vector<1x1x8xf32> to vector<8x8x8xf32>
    %224 = arith.mulf %219, %223 : vector<8x8x8xf32>
    %225 = arith.addf %218, %224 : vector<8x8x8xf32>
    %c2_126 = arith.constant 2 : index
    %c7_127 = arith.constant 7 : index
    %c0_128 = arith.constant 0 : index
    %226 = vector.load %arg24[%c2_126, %c7_127, %c0_128] : memref<18x32x8xf32, #tpu.memory_space<vmem>>, vector<8x8x8xf32>
    %227 = vector.extract_strided_slice %182 {offsets = [2, 0, 0], sizes = [1, 1, 8], strides = [1, 1, 1]} : vector<3x3x8xf32> to vector<1x1x8xf32>
    %228 = vector.shape_cast %227 : vector<1x1x8xf32> to vector<8xf32>
    %229 = vector.shape_cast %228 : vector<8xf32> to vector<1x1x8xf32>
    %230 = vector.broadcast %229 : vector<1x1x8xf32> to vector<8x8x8xf32>
    %231 = arith.mulf %226, %230 : vector<8x8x8xf32>
    %232 = arith.addf %225, %231 : vector<8x8x8xf32>
    %c2_129 = arith.constant 2 : index
    %c8_130 = arith.constant 8 : index
    %c0_131 = arith.constant 0 : index
    %233 = vector.load %arg24[%c2_129, %c8_130, %c0_131] : memref<18x32x8xf32, #tpu.memory_space<vmem>>, vector<8x8x8xf32>
    %234 = vector.extract_strided_slice %182 {offsets = [2, 1, 0], sizes = [1, 1, 8], strides = [1, 1, 1]} : vector<3x3x8xf32> to vector<1x1x8xf32>
    %235 = vector.shape_cast %234 : vector<1x1x8xf32> to vector<8xf32>
    %236 = vector.shape_cast %235 : vector<8xf32> to vector<1x1x8xf32>
    %237 = vector.broadcast %236 : vector<1x1x8xf32> to vector<8x8x8xf32>
    %238 = arith.mulf %233, %237 : vector<8x8x8xf32>
    %239 = arith.addf %232, %238 : vector<8x8x8xf32>
    %c2_132 = arith.constant 2 : index
    %c9_133 = arith.constant 9 : index
    %c0_134 = arith.constant 0 : index
    %240 = vector.load %arg24[%c2_132, %c9_133, %c0_134] : memref<18x32x8xf32, #tpu.memory_space<vmem>>, vector<8x8x8xf32>
    %241 = vector.extract_strided_slice %182 {offsets = [2, 2, 0], sizes = [1, 1, 8], strides = [1, 1, 1]} : vector<3x3x8xf32> to vector<1x1x8xf32>
    %242 = vector.shape_cast %241 : vector<1x1x8xf32> to vector<8xf32>
    %243 = vector.shape_cast %242 : vector<8xf32> to vector<1x1x8xf32>
    %244 = vector.broadcast %243 : vector<1x1x8xf32> to vector<8x8x8xf32>
    %245 = arith.mulf %240, %244 : vector<8x8x8xf32>
    %246 = arith.addf %239, %245 : vector<8x8x8xf32>
    %247 = vector.shape_cast %246 : vector<8x8x8xf32> to vector<64x8xf32>
    %c0_135 = arith.constant 0 : index
    %c0_136 = arith.constant 0 : index
    %248 = vector.load %arg15[%c0_135, %c0_136] : memref<8x8xf32, #tpu.memory_space<vmem>>, vector<8x8xf32>
    %cst_137 = arith.constant dense<0.000000e+00> : vector<64x8xf32>
    %249 = tpu.matmul %247, %248, %cst_137 {dimension_numbers = #tpu.dot_dimension_numbers<[1], [0], [0], [1], [0, 0, 1, 1], [], []>} : vector<64x8xf32>, vector<8x8xf32>, vector<64x8xf32> -> vector<64x8xf32>
    %c0_138 = arith.constant 0 : index
    %c0_139 = arith.constant 0 : index
    %250 = vector.load %arg16[%c0_138, %c0_139] : memref<1x8xf32, #tpu.memory_space<vmem>>, vector<1x8xf32>
    %251 = vector.broadcast %250 : vector<1x8xf32> to vector<64x8xf32>
    %252 = arith.mulf %249, %251 : vector<64x8xf32>
    %c0_140 = arith.constant 0 : index
    %c0_141 = arith.constant 0 : index
    %253 = vector.load %arg17[%c0_140, %c0_141] : memref<1x8xf32, #tpu.memory_space<vmem>>, vector<1x8xf32>
    %254 = vector.broadcast %253 : vector<1x8xf32> to vector<64x8xf32>
    %255 = arith.addf %252, %254 : vector<64x8xf32>
    %256 = vector.shape_cast %255 : vector<64x8xf32> to vector<8x8x8xf32>
    %c0_142 = arith.constant 0 : index
    %257 = memref.load %arg18[%c0_142] : memref<2xf32, #tpu.memory_space<smem>>
    %258 = vector.broadcast %257 : f32 to vector<8x8x8xf32>
    %259 = arith.mulf %258, %169 : vector<8x8x8xf32>
    %c1_143 = arith.constant 1 : index
    %260 = memref.load %arg18[%c1_143] : memref<2xf32, #tpu.memory_space<smem>>
    %261 = vector.broadcast %260 : f32 to vector<8x8x8xf32>
    %262 = arith.mulf %261, %256 : vector<8x8x8xf32>
    %263 = arith.addf %259, %262 : vector<8x8x8xf32>
    %cst_144 = arith.constant 0.000000e+00 : f32
    %264 = vector.broadcast %cst_144 : f32 to vector<8x8x8xf32>
    %265 = arith.maximumf %263, %264 : vector<8x8x8xf32>
    %cst_145 = arith.constant 0.000000e+00 : f32
    %266 = vector.broadcast %cst_145 : f32 to vector<18x32x8xf32>
    %c0_146 = arith.constant 0 : index
    %c0_147 = arith.constant 0 : index
    %c0_148 = arith.constant 0 : index
    %267 = vector.load %arg24[%c0_146, %c0_147, %c0_148] : memref<18x32x8xf32, #tpu.memory_space<vmem>>, vector<18x32x8xf32>
    tpu.vector_store %arg24[%c0_146, %c0_147, %c0_148], %266 {strides = array<i32>} : memref<18x32x8xf32, #tpu.memory_space<vmem>>, vector<18x32x8xf32>,
    %c1_149 = arith.constant 1 : index
    %c8_150 = arith.constant 8 : index
    %c0_151 = arith.constant 0 : index
    %268 = vector.load %arg24[%c1_149, %c8_150, %c0_151] : memref<18x32x8xf32, #tpu.memory_space<vmem>>, vector<8x8x8xf32>
    tpu.vector_store %arg24[%c1_149, %c8_150, %c0_151], %265 {strides = array<i32>} : memref<18x32x8xf32, #tpu.memory_space<vmem>>, vector<8x8x8xf32>,
    %c0_152 = arith.constant 0 : index
    %c0_153 = arith.constant 0 : index
    %c0_154 = arith.constant 0 : index
    %269 = vector.load %arg19[%c0_152, %c0_153, %c0_154] : memref<3x3x8xf32, #tpu.memory_space<vmem>>, vector<3x3x8xf32>
    %cst_155 = arith.constant 0.000000e+00 : f32
    %270 = vector.broadcast %cst_155 : f32 to vector<8x8x8xf32>
    %c0_156 = arith.constant 0 : index
    %c7_157 = arith.constant 7 : index
    %c0_158 = arith.constant 0 : index
    %271 = vector.load %arg24[%c0_156, %c7_157, %c0_158] : memref<18x32x8xf32, #tpu.memory_space<vmem>>, vector<8x8x8xf32>
    %272 = vector.extract_strided_slice %269 {offsets = [0, 0, 0], sizes = [1, 1, 8], strides = [1, 1, 1]} : vector<3x3x8xf32> to vector<1x1x8xf32>
    %273 = vector.shape_cast %272 : vector<1x1x8xf32> to vector<8xf32>
    %274 = vector.shape_cast %273 : vector<8xf32> to vector<1x1x8xf32>
    %275 = vector.broadcast %274 : vector<1x1x8xf32> to vector<8x8x8xf32>
    %276 = arith.mulf %271, %275 : vector<8x8x8xf32>
    %277 = arith.addf %270, %276 : vector<8x8x8xf32>
    %c0_159 = arith.constant 0 : index
    %c8_160 = arith.constant 8 : index
    %c0_161 = arith.constant 0 : index
    %278 = vector.load %arg24[%c0_159, %c8_160, %c0_161] : memref<18x32x8xf32, #tpu.memory_space<vmem>>, vector<8x8x8xf32>
    %279 = vector.extract_strided_slice %269 {offsets = [0, 1, 0], sizes = [1, 1, 8], strides = [1, 1, 1]} : vector<3x3x8xf32> to vector<1x1x8xf32>
    %280 = vector.shape_cast %279 : vector<1x1x8xf32> to vector<8xf32>
    %281 = vector.shape_cast %280 : vector<8xf32> to vector<1x1x8xf32>
    %282 = vector.broadcast %281 : vector<1x1x8xf32> to vector<8x8x8xf32>
    %283 = arith.mulf %278, %282 : vector<8x8x8xf32>
    %284 = arith.addf %277, %283 : vector<8x8x8xf32>
    %c0_162 = arith.constant 0 : index
    %c9_163 = arith.constant 9 : index
    %c0_164 = arith.constant 0 : index
    %285 = vector.load %arg24[%c0_162, %c9_163, %c0_164] : memref<18x32x8xf32, #tpu.memory_space<vmem>>, vector<8x8x8xf32>
    %286 = vector.extract_strided_slice %269 {offsets = [0, 2, 0], sizes = [1, 1, 8], strides = [1, 1, 1]} : vector<3x3x8xf32> to vector<1x1x8xf32>
    %287 = vector.shape_cast %286 : vector<1x1x8xf32> to vector<8xf32>
    %288 = vector.shape_cast %287 : vector<8xf32> to vector<1x1x8xf32>
    %289 = vector.broadcast %288 : vector<1x1x8xf32> to vector<8x8x8xf32>
    %290 = arith.mulf %285, %289 : vector<8x8x8xf32>
    %291 = arith.addf %284, %290 : vector<8x8x8xf32>
    %c1_165 = arith.constant 1 : index
    %c7_166 = arith.constant 7 : index
    %c0_167 = arith.constant 0 : index
    %292 = vector.load %arg24[%c1_165, %c7_166, %c0_167] : memref<18x32x8xf32, #tpu.memory_space<vmem>>, vector<8x8x8xf32>
    %293 = vector.extract_strided_slice %269 {offsets = [1, 0, 0], sizes = [1, 1, 8], strides = [1, 1, 1]} : vector<3x3x8xf32> to vector<1x1x8xf32>
    %294 = vector.shape_cast %293 : vector<1x1x8xf32> to vector<8xf32>
    %295 = vector.shape_cast %294 : vector<8xf32> to vector<1x1x8xf32>
    %296 = vector.broadcast %295 : vector<1x1x8xf32> to vector<8x8x8xf32>
    %297 = arith.mulf %292, %296 : vector<8x8x8xf32>
    %298 = arith.addf %291, %297 : vector<8x8x8xf32>
    %c1_168 = arith.constant 1 : index
    %c8_169 = arith.constant 8 : index
    %c0_170 = arith.constant 0 : index
    %299 = vector.load %arg24[%c1_168, %c8_169, %c0_170] : memref<18x32x8xf32, #tpu.memory_space<vmem>>, vector<8x8x8xf32>
    %300 = vector.extract_strided_slice %269 {offsets = [1, 1, 0], sizes = [1, 1, 8], strides = [1, 1, 1]} : vector<3x3x8xf32> to vector<1x1x8xf32>
    %301 = vector.shape_cast %300 : vector<1x1x8xf32> to vector<8xf32>
    %302 = vector.shape_cast %301 : vector<8xf32> to vector<1x1x8xf32>
    %303 = vector.broadcast %302 : vector<1x1x8xf32> to vector<8x8x8xf32>
    %304 = arith.mulf %299, %303 : vector<8x8x8xf32>
    %305 = arith.addf %298, %304 : vector<8x8x8xf32>
    %c1_171 = arith.constant 1 : index
    %c9_172 = arith.constant 9 : index
    %c0_173 = arith.constant 0 : index
    %306 = vector.load %arg24[%c1_171, %c9_172, %c0_173] : memref<18x32x8xf32, #tpu.memory_space<vmem>>, vector<8x8x8xf32>
    %307 = vector.extract_strided_slice %269 {offsets = [1, 2, 0], sizes = [1, 1, 8], strides = [1, 1, 1]} : vector<3x3x8xf32> to vector<1x1x8xf32>
    %308 = vector.shape_cast %307 : vector<1x1x8xf32> to vector<8xf32>
    %309 = vector.shape_cast %308 : vector<8xf32> to vector<1x1x8xf32>
    %310 = vector.broadcast %309 : vector<1x1x8xf32> to vector<8x8x8xf32>
    %311 = arith.mulf %306, %310 : vector<8x8x8xf32>
    %312 = arith.addf %305, %311 : vector<8x8x8xf32>
    %c2_174 = arith.constant 2 : index
    %c7_175 = arith.constant 7 : index
    %c0_176 = arith.constant 0 : index
    %313 = vector.load %arg24[%c2_174, %c7_175, %c0_176] : memref<18x32x8xf32, #tpu.memory_space<vmem>>, vector<8x8x8xf32>
    %314 = vector.extract_strided_slice %269 {offsets = [2, 0, 0], sizes = [1, 1, 8], strides = [1, 1, 1]} : vector<3x3x8xf32> to vector<1x1x8xf32>
    %315 = vector.shape_cast %314 : vector<1x1x8xf32> to vector<8xf32>
    %316 = vector.shape_cast %315 : vector<8xf32> to vector<1x1x8xf32>
    %317 = vector.broadcast %316 : vector<1x1x8xf32> to vector<8x8x8xf32>
    %318 = arith.mulf %313, %317 : vector<8x8x8xf32>
    %319 = arith.addf %312, %318 : vector<8x8x8xf32>
    %c2_177 = arith.constant 2 : index
    %c8_178 = arith.constant 8 : index
    %c0_179 = arith.constant 0 : index
    %320 = vector.load %arg24[%c2_177, %c8_178, %c0_179] : memref<18x32x8xf32, #tpu.memory_space<vmem>>, vector<8x8x8xf32>
    %321 = vector.extract_strided_slice %269 {offsets = [2, 1, 0], sizes = [1, 1, 8], strides = [1, 1, 1]} : vector<3x3x8xf32> to vector<1x1x8xf32>
    %322 = vector.shape_cast %321 : vector<1x1x8xf32> to vector<8xf32>
    %323 = vector.shape_cast %322 : vector<8xf32> to vector<1x1x8xf32>
    %324 = vector.broadcast %323 : vector<1x1x8xf32> to vector<8x8x8xf32>
    %325 = arith.mulf %320, %324 : vector<8x8x8xf32>
    %326 = arith.addf %319, %325 : vector<8x8x8xf32>
    %c2_180 = arith.constant 2 : index
    %c9_181 = arith.constant 9 : index
    %c0_182 = arith.constant 0 : index
    %327 = vector.load %arg24[%c2_180, %c9_181, %c0_182] : memref<18x32x8xf32, #tpu.memory_space<vmem>>, vector<8x8x8xf32>
    %328 = vector.extract_strided_slice %269 {offsets = [2, 2, 0], sizes = [1, 1, 8], strides = [1, 1, 1]} : vector<3x3x8xf32> to vector<1x1x8xf32>
    %329 = vector.shape_cast %328 : vector<1x1x8xf32> to vector<8xf32>
    %330 = vector.shape_cast %329 : vector<8xf32> to vector<1x1x8xf32>
    %331 = vector.broadcast %330 : vector<1x1x8xf32> to vector<8x8x8xf32>
    %332 = arith.mulf %327, %331 : vector<8x8x8xf32>
    %333 = arith.addf %326, %332 : vector<8x8x8xf32>
    %334 = vector.shape_cast %333 : vector<8x8x8xf32> to vector<64x8xf32>
    %c0_183 = arith.constant 0 : index
    %c0_184 = arith.constant 0 : index
    %335 = vector.load %arg20[%c0_183, %c0_184] : memref<8x8xf32, #tpu.memory_space<vmem>>, vector<8x8xf32>
    %cst_185 = arith.constant dense<0.000000e+00> : vector<64x8xf32>
    %336 = tpu.matmul %334, %335, %cst_185 {dimension_numbers = #tpu.dot_dimension_numbers<[1], [0], [0], [1], [0, 0, 1, 1], [], []>} : vector<64x8xf32>, vector<8x8xf32>, vector<64x8xf32> -> vector<64x8xf32>
    %c0_186 = arith.constant 0 : index
    %c0_187 = arith.constant 0 : index
    %337 = vector.load %arg21[%c0_186, %c0_187] : memref<1x8xf32, #tpu.memory_space<vmem>>, vector<1x8xf32>
    %338 = vector.broadcast %337 : vector<1x8xf32> to vector<64x8xf32>
    %339 = arith.mulf %336, %338 : vector<64x8xf32>
    %c0_188 = arith.constant 0 : index
    %c0_189 = arith.constant 0 : index
    %340 = vector.load %arg22[%c0_188, %c0_189] : memref<1x8xf32, #tpu.memory_space<vmem>>, vector<1x8xf32>
    %341 = vector.broadcast %340 : vector<1x8xf32> to vector<64x8xf32>
    %342 = arith.addf %339, %341 : vector<64x8xf32>
    %343 = vector.shape_cast %342 : vector<64x8xf32> to vector<8x8x8xf32>
    %344 = arith.addf %256, %343 : vector<8x8x8xf32>
    %cst_190 = arith.constant 5.000000e-01 : f32
    %345 = vector.broadcast %cst_190 : f32 to vector<8x8x8xf32>
    %346 = arith.mulf %344, %345 : vector<8x8x8xf32>
    %347 = vector.shape_cast %346 : vector<8x8x8xf32> to vector<64x8xf32>
    %c0_191 = arith.constant 0 : index
    %c0_192 = arith.constant 0 : index
    %c0_193 = arith.constant 0 : index
    %348 = vector.load %arg23[%c0_191, %c0_192, %c0_193] : memref<1x64x8xf32, #tpu.memory_space<vmem>>, vector<1x64x8xf32>
    %349 = vector.shape_cast %348 : vector<1x64x8xf32> to vector<64x8xf32>
    %350 = vector.shape_cast %347 : vector<64x8xf32> to vector<1x64x8xf32>
    tpu.vector_store %arg23[%c0_191, %c0_192, %c0_193], %350 {strides = array<i32>} : memref<1x64x8xf32, #tpu.memory_space<vmem>>, vector<1x64x8xf32>,
    return
  }
  func.func @transform_0(%arg0: i32) -> (i32, i32, i32, i32) {
    %c0_i32 = arith.constant 0 : i32
    %c0_i32_0 = arith.constant 0 : i32
    %c0_i32_1 = arith.constant 0 : i32
    %c0_i32_2 = arith.constant 0 : i32
    return %arg0, %c0_i32, %c0_i32_0, %c0_i32_1 : i32, i32, i32, i32
  }
  func.func @transform_1(%arg0: i32) -> (i32, i32) {
    %c0_i32 = arith.constant 0 : i32
    %c0_i32_0 = arith.constant 0 : i32
    %c0_i32_1 = arith.constant 0 : i32
    return %c0_i32, %c0_i32_0 : i32, i32
  }
  func.func @transform_2(%arg0: i32) -> i32 {
    %c0_i32 = arith.constant 0 : i32
    %c0_i32_0 = arith.constant 0 : i32
    return %c0_i32 : i32
  }
  func.func @transform_3(%arg0: i32) -> (i32, i32, i32) {
    %c0_i32 = arith.constant 0 : i32
    %c0_i32_0 = arith.constant 0 : i32
    %c0_i32_1 = arith.constant 0 : i32
    %c0_i32_2 = arith.constant 0 : i32
    return %c0_i32, %c0_i32_0, %c0_i32_1 : i32, i32, i32
  }
  func.func @transform_4(%arg0: i32) -> (i32, i32) {
    %c0_i32 = arith.constant 0 : i32
    %c0_i32_0 = arith.constant 0 : i32
    %c0_i32_1 = arith.constant 0 : i32
    return %c0_i32, %c0_i32_0 : i32, i32
  }
  func.func @transform_5(%arg0: i32) -> (i32, i32) {
    %c0_i32 = arith.constant 0 : i32
    %c0_i32_0 = arith.constant 0 : i32
    %c0_i32_1 = arith.constant 0 : i32
    return %c0_i32, %c0_i32_0 : i32, i32
  }
  func.func @transform_6(%arg0: i32) -> (i32, i32) {
    %c0_i32 = arith.constant 0 : i32
    %c0_i32_0 = arith.constant 0 : i32
    %c0_i32_1 = arith.constant 0 : i32
    return %c0_i32, %c0_i32_0 : i32, i32
  }
  func.func @transform_7(%arg0: i32) -> i32 {
    %c0_i32 = arith.constant 0 : i32
    %c0_i32_0 = arith.constant 0 : i32
    return %c0_i32 : i32
  }
  func.func @transform_8(%arg0: i32) -> (i32, i32, i32) {
    %c0_i32 = arith.constant 0 : i32
    %c0_i32_0 = arith.constant 0 : i32
    %c0_i32_1 = arith.constant 0 : i32
    %c0_i32_2 = arith.constant 0 : i32
    return %c0_i32, %c0_i32_0, %c0_i32_1 : i32, i32, i32
  }
  func.func @transform_9(%arg0: i32) -> (i32, i32) {
    %c0_i32 = arith.constant 0 : i32
    %c0_i32_0 = arith.constant 0 : i32
    %c0_i32_1 = arith.constant 0 : i32
    return %c0_i32, %c0_i32_0 : i32, i32
  }
  func.func @transform_10(%arg0: i32) -> (i32, i32) {
    %c0_i32 = arith.constant 0 : i32
    %c0_i32_0 = arith.constant 0 : i32
    %c0_i32_1 = arith.constant 0 : i32
    return %c0_i32, %c0_i32_0 : i32, i32
  }
  func.func @transform_11(%arg0: i32) -> (i32, i32) {
    %c0_i32 = arith.constant 0 : i32
    %c0_i32_0 = arith.constant 0 : i32
    %c0_i32_1 = arith.constant 0 : i32
    return %c0_i32, %c0_i32_0 : i32, i32
  }
  func.func @transform_12(%arg0: i32) -> i32 {
    %c0_i32 = arith.constant 0 : i32
    %c0_i32_0 = arith.constant 0 : i32
    return %c0_i32 : i32
  }
  func.func @transform_13(%arg0: i32) -> (i32, i32, i32) {
    %c0_i32 = arith.constant 0 : i32
    %c0_i32_0 = arith.constant 0 : i32
    %c0_i32_1 = arith.constant 0 : i32
    %c0_i32_2 = arith.constant 0 : i32
    return %c0_i32, %c0_i32_0, %c0_i32_1 : i32, i32, i32
  }
  func.func @transform_14(%arg0: i32) -> (i32, i32) {
    %c0_i32 = arith.constant 0 : i32
    %c0_i32_0 = arith.constant 0 : i32
    %c0_i32_1 = arith.constant 0 : i32
    return %c0_i32, %c0_i32_0 : i32, i32
  }
  func.func @transform_15(%arg0: i32) -> (i32, i32) {
    %c0_i32 = arith.constant 0 : i32
    %c0_i32_0 = arith.constant 0 : i32
    %c0_i32_1 = arith.constant 0 : i32
    return %c0_i32, %c0_i32_0 : i32, i32
  }
  func.func @transform_16(%arg0: i32) -> (i32, i32) {
    %c0_i32 = arith.constant 0 : i32
    %c0_i32_0 = arith.constant 0 : i32
    %c0_i32_1 = arith.constant 0 : i32
    return %c0_i32, %c0_i32_0 : i32, i32
  }
  func.func @transform_17(%arg0: i32) -> i32 {
    %c0_i32 = arith.constant 0 : i32
    %c0_i32_0 = arith.constant 0 : i32
    return %c0_i32 : i32
  }
  func.func @transform_18(%arg0: i32) -> (i32, i32, i32) {
    %c0_i32 = arith.constant 0 : i32
    %c0_i32_0 = arith.constant 0 : i32
    %c0_i32_1 = arith.constant 0 : i32
    %c0_i32_2 = arith.constant 0 : i32
    return %c0_i32, %c0_i32_0, %c0_i32_1 : i32, i32, i32
  }
  func.func @transform_19(%arg0: i32) -> (i32, i32) {
    %c0_i32 = arith.constant 0 : i32
    %c0_i32_0 = arith.constant 0 : i32
    %c0_i32_1 = arith.constant 0 : i32
    return %c0_i32, %c0_i32_0 : i32, i32
  }
  func.func @transform_20(%arg0: i32) -> (i32, i32) {
    %c0_i32 = arith.constant 0 : i32
    %c0_i32_0 = arith.constant 0 : i32
    %c0_i32_1 = arith.constant 0 : i32
    return %c0_i32, %c0_i32_0 : i32, i32
  }
  func.func @transform_21(%arg0: i32) -> (i32, i32) {
    %c0_i32 = arith.constant 0 : i32
    %c0_i32_0 = arith.constant 0 : i32
    %c0_i32_1 = arith.constant 0 : i32
    return %c0_i32, %c0_i32_0 : i32, i32
  }
  func.func @transform_22(%arg0: i32) -> (i32, i32, i32) {
    %c0_i32 = arith.constant 0 : i32
    %c0_i32_0 = arith.constant 0 : i32
    %c0_i32_1 = arith.constant 0 : i32
    return %arg0, %c0_i32, %c0_i32_0 : i32, i32, i32
  }
}

</mosaic_0001>

<bundles_post_ra>
// kernel: tpu_custom_call.1
= control target key start
LH: loop header
LB: loop body
LE: loop exit
PB: predicated region body
PF: predicated region fallthrough
CT: control target
= control target key end

     0   :  { %s6801_s0 = inlined_call_operand.vmem [shape: f32[2,16,16,4], index: 0, kind: input, shape index: {}]   ;;  %s6802_s1 = inlined_call_operand.vmem [shape: f32[64,256], index: 1, kind: input, shape index: {}]   ;;  %s6803_s2 = inlined_call_operand.<no memory space> [shape: f32[1], index: 2, kind: input, shape index: {}]   ;;  %s6804_s3 = inlined_call_operand.vmem [shape: f32[3,3,4], index: 3, kind: input, shape index: {}]   ;;  %s6805_s4 = inlined_call_operand.vmem [shape: f32[4,8], index: 4, kind: input, shape index: {}]   ;;  %s6806_s5 = inlined_call_operand.vmem [shape: f32[1,8], index: 5, kind: input, shape index: {}]   ;;  %s6807_s6 = inlined_call_operand.vmem [shape: f32[1,8], index: 6, kind: input, shape index: {}]   ;;  %s6808_s7 = inlined_call_operand.<no memory space> [shape: f32[1], index: 7, kind: input, shape index: {}]   ;;  %s6809_s8 = inlined_call_operand.vmem [shape: f32[3,3,8], index: 8, kind: input, shape index: {}]   ;;  %s6810_s9 = inlined_call_operand.vmem [shape: f32[8,8], index: 9, kind: input, shape index: {}]   ;;  %s6811_s10 = inlined_call_operand.vmem [shape: f32[1,8], index: 10, kind: input, shape index: {}]   ;;  %s6812_s11 = inlined_call_operand.vmem [shape: f32[1,8], index: 11, kind: input, shape index: {}]   ;;  %s6813_s12 = inlined_call_operand.vmem [shape: f32[2], index: 12, kind: input, shape index: {}]   ;;  %s6814_s13 = inlined_call_operand.vmem [shape: f32[3,3,8], index: 13, kind: input, shape index: {}]   ;;  %s6815_s14 = inlined_call_operand.vmem [shape: f32[8,8], index: 14, kind: input, shape index: {}]   ;;  %s6816_s15 = inlined_call_operand.vmem [shape: f32[1,8], index: 15, kind: input, shape index: {}]   ;;  %s6817_s16 = inlined_call_operand.vmem [shape: f32[1,8], index: 16, kind: input, shape index: {}]   ;;  %s6818_s17 = inlined_call_operand.vmem [shape: f32[2], index: 17, kind: input, shape index: {}]   ;;  %s6819_s18 = inlined_call_operand.vmem [shape: f32[3,3,8], index: 18, kind: input, shape index: {}]   ;;  %s6820_s19 = inlined_call_operand.vmem [shape: f32[8,8], index: 19, kind: input, shape index: {}]   ;;  %s6821_s20 = inlined_call_operand.vmem [shape: f32[1,8], index: 20, kind: input, shape index: {}]   ;;  %s6822_s21 = inlined_call_operand.vmem [shape: f32[1,8], index: 21, kind: input, shape index: {}]   ;;  %s6823_s22 = inlined_call_operand.vmem [shape: f32[2,64,8], index: 22, kind: output, shape index: {}]  }
   0x1   :  { %6908 = sst [smem:[#allocation57_spill]] %s6801_s0 }
   0x2   :  { %6909 = sst [smem:[#allocation58_spill]] %s6802_s1 }
   0x3   :  { %6910 = sst [smem:[#allocation59_spill]] %s6803_s2 }
   0x4   :  { %6911 = sst [smem:[#allocation60_spill]] %s6804_s3 }
   0x5   :  { %6912 = sst [smem:[#allocation61_spill]] %s6805_s4 }
   0x6   :  { %6913 = sst [smem:[#allocation62_spill]] %s6806_s5 }
   0x7   :  { %6914 = sst [smem:[#allocation63_spill]] %s6807_s6 }
   0x8   :  { %s6915_s29 = sld [smem:[#allocation59_spill]] }
   0x9   :  { %28 = sst [smem:[#allocation4]] %s6808_s7 }
   0xe   :  { %27 = sst [smem:[#allocation3]] %s6915_s29 }
   0xf   :  { %29 = vsyncpa [#allocation6], 0 }
  0x10   :  { %30 = vsyncpa [#allocation8], 0  ;;  %s4191_s0 = smov 0  }
  0x11 LB: > { %s4197_s23 = sadd.s32 4294967295, %s4065_s0   ;;  %p3785_p0 = scmp.ge.s32.totalorder %s4065_s0, 1  ;;  %s4065_s0 = sphi %s4191_s0, %s36_s0  }
  0x12   : > { %p534_p1 = scmp.lt.s32.totalorder %s4065_s0, 3  ;;  %s580_s5 = sshll.u32 %s6813_s12, 4  ;;  %s581_s5 = int_to_ptr.vmem [resolvable:$true] %s580_s5 }
  0x13   : > { %p6826_p3 = scmp.eq.s32.totalorder %s4197_s23, 0  ;;  %s603_s26 = sshll.u32 %s6818_s17, 4  ;;  %s604_s26 = int_to_ptr.vmem [resolvable:$true] %s603_s26 }
  0x14   : > { %p4204_p2 = pnand %p3785_p0, %p534_p1  ;;  %s4021_s27 = scalar_lea.vmem %s581_s5, 16 }
  0x15   : > { %p4022_p6 = scmp.ne.s32.totalorder %s581_s5, %s4021_s27  ;;  %p4029_p10 = scmp.lt.s32.totalorder %s581_s5, %s581_s5 }
  0x16   : > { %s6916_s24 = scalar_select %p4204_p2, 1, 0 }
  0x17   : > { %p3999_p4 = pneg %p4204_p2  ;;  %p4030_p11 = scmp.lt.s32.totalorder %s4021_s27, %s4021_s27 }
  0x19   : > { %p4216_p5 = pnand %p6826_p3, %p3999_p4  ;;  %p4031_p12 = por %p4030_p11, %p4029_p10 }
  0x1b   : > { %p4023_p7 = pneg %p4216_p5 }
  0x1d   : > { %p4024_p8 = pnand %p4023_p7, %p4022_p6 }
  0x1f   : > { %p4025_p9 = pneg %p4024_p8 }
  0x21   : > { %p4032_p13 = pnand %p4031_p12, %p4025_p9 }
  0x23   : > { %4035 = shalt.err (!%p4032_p13)
}
  0x24   : > { %s4067_s3 = smov [#allocation5]   ;;  %s4036_s28 = scalar_lea.vmem %s604_s26, 16 }
  0x25   : > { %4002 = dma.vmem_to_smem (!%p4216_p5), %s581_s5, 16, %s4067_s3, [#allocation6]  }
  0x26   : > { %p4037_p0 = scmp.ne.s32.totalorder %s604_s26, %s4036_s28  ;;  %p4044_p3 = scmp.lt.s32.totalorder %s604_s26, %s604_s26 }
  0x27   : > { %p4045_p2 = scmp.lt.s32.totalorder %s4036_s28, %s4036_s28 }
  0x28   : > { %p4039_p1 = pnand %p4037_p0, %p4023_p7 }
  0x29   : > { %p4046_p6 = por %p4045_p2, %p4044_p3 }
  0x2a   : > { %p4040_p4 = pneg %p4039_p1 }
  0x2c   : > { %p4047_p8 = pnand %p4046_p6, %p4040_p4 }
  0x2e   : > { %4050 = shalt.err (!%p4047_p8)
}
  0x2f   : > { %s4068_s29 = smov [#allocation7]   ;;  %p6918_p9 = scmp.ne.s32.totalorder %s6916_s24, 0 }
  0x30   : > { %4005 = dma.vmem_to_smem (!%p4216_p5), %s604_s26, 16, %s4068_s29, [#allocation8]  }
  0x31   : > { %636 = sbr.rel (%p6918_p9) target bundleno = 1443 (0x5a3), region = 108 }
  0x36   : > { %p6919_p10 = scmp.eq.s32.totalorder %s4197_s23, 0 }
  0x38   : > { %4056 = dma.done.wait (%p6919_p10), [#allocation6], 16   ;;  %p6920_p11 = pmov %p6919_p10 }
  0x39   : > { %p6921_p7 = pmov %p6919_p10 }
  0x3a   : > { %4058 = vsyncadd (%p6920_p11), [#allocation6], 4294967280 }
  0x3b   : > { %4060 = dma.done.wait (%p6921_p7), [#allocation8], 16   ;;  %p6922_p2 = pmov %p6921_p7 }
  0x3d   : > { %4062 = vsyncadd (%p6922_p2), [#allocation8], 4294967280 }
  0x3e   : > { %646 = sfence }
  0x3f   : > { %p703_p3 = scmp.lt.s32.totalorder %s4197_s23, 1  ;;  %s4237_s30 = sld [smem:[#allocation3]]  ;;  %vm811_vm0 = vcmask 64512   ;;  %v953_v0 = vlaneseq  ;;  %v6839_v1 = vmov 0.0   ;;  %vm885_vm1 = vcmask 31744  }
  0x40   : > { %873 = vst.msk [vmem:[#allocation2 + $0x1e8] sm:$0xff] %vm811_vm0, %v6839_v1  ;;  %874 = vst.msk [vmem:[#allocation2 + $0x1f0] sm:$0xff] %vm811_vm0, %v6839_v1  ;;  %s6926_s5 = sld [smem:[#allocation57_spill]]  ;;  %vm1968_vm2 = vcmask 1043456  }
  0x41   : > { %875 = vst.msk [vmem:[#allocation2 + $0x1f8] sm:$0xff] %vm811_vm0, %v6839_v1  ;;  %877 = vst.msk [vmem:[#allocation2 + $0x208] sm:$0xff] %vm811_vm0, %v6839_v1  ;;  %s7087_s23 = smov (!%p703_p3, %s4197_s23), 1  ;;  %v954_v2 = vshrl.u32 %v953_v0, 7  ;;  %s6927_s26 = sld [smem:[#allocation60_spill]] }
  0x42   : > { %878 = vst.msk [vmem:[#allocation2 + $0x210] sm:$0xff] %vm811_vm0, %v6839_v1  ;;  %879 = vst.msk [vmem:[#allocation2 + $0x218] sm:$0xff] %vm811_vm0, %v6839_v1  ;;  %s3841_s4 = sshll.u32 %s7087_s23, 8  ;;  %s7080_s3 = sld [smem:[#allocation61_spill]] }
  0x43   : > { %881 = vst.msk [vmem:[#allocation2 + $0x228] sm:$0xff] %vm811_vm0, %v6839_v1  ;;  %882 = vst.msk [vmem:[#allocation2 + $0x230] sm:$0xff] %vm811_vm0, %v6839_v1  ;;  %v4390_v3 = vsub.s32 0, %v954_v2  ;;  %v4392_v4 = vsub.s32 1, %v954_v2  ;;  %v4394_v5 = vsub.s32 2, %v954_v2  ;;  %s7082_s25 = sld [smem:[#allocation63_spill]] }
  0x44   : > { %883 = vst.msk [vmem:[#allocation2 + $0x238] sm:$0xff] %vm811_vm0, %v6839_v1  ;;  %812 = vst.msk [vmem:[#allocation2] sm:$0xff] %vm811_vm0, %v6839_v1  ;;  %s2620_s6 = sld [smem:[#allocation5]] }
  0x45   : > { %813 = vst.msk [vmem:[#allocation2 + $0x8] sm:$0xff] %vm811_vm0, %v6839_v1  ;;  %814 = vst.msk [vmem:[#allocation2 + $0x10] sm:$0xff] %vm811_vm0, %v6839_v1  ;;  %v4414_v12 = vstv %s4237_s30  ;;  %s2107_s30 = sld [smem:[#allocation4]] }
  0x46   : > { %815 = vst.msk [vmem:[#allocation2 + $0x18] sm:$0xff] %vm811_vm0, %v6839_v1  ;;  %816 = vst.msk [vmem:[#allocation2 + $0x20] sm:$0xff] %vm811_vm0, %v6839_v1  ;;  %s4399_s24 = scalar_lea.vmem %s6926_s5, %s3841_s4  ;;  %s6972_s4 = sld [smem:[#allocation58_spill]] }
  0x47   : > { %817 = vst.msk [vmem:[#allocation2 + $0x28] sm:$0xff] %vm811_vm0, %v6839_v1  ;;  %818 = vst.msk [vmem:[#allocation2 + $0x30] sm:$0xff] %vm811_vm0, %v6839_v1  ;;  %v918_v6 = vld [vmem:[%s6927_s26] sm:$0x7]  ;;  %v919_v7 = vld [vmem:[%s6927_s26 + $0x4] sm:$0x7] }
  0x48   : > { %819 = vst.msk [vmem:[#allocation2 + $0x38] sm:$0xff] %vm811_vm0, %v6839_v1  ;;  %820 = vst.msk [vmem:[#allocation2 + $0x40] sm:$0xff] %vm811_vm0, %v6839_v1  ;;  %v920_v8 = vld [vmem:[%s6927_s26 + $0x8] sm:$0x7]  ;;  %v741_v9 = vld [vmem:[%s4399_s24 + $0xe0] sm:$0xff]  ;;  %v4424_v20 = vrot.slane %v918_v6, %v4390_v3  ;;  %v4427_v21 = vrot.slane %v918_v6, %v4392_v4  ;;  %v4430_v22 = vrot.slane %v918_v6, %v4394_v5  ;;  %s7081_s5 = sld [smem:[#allocation62_spill]] }
  0x49   : > { %821 = vst.msk [vmem:[#allocation2 + $0x48] sm:$0xff] %vm811_vm0, %v6839_v1  ;;  %822 = vst.msk [vmem:[#allocation2 + $0x50] sm:$0xff] %vm811_vm0, %v6839_v1  ;;  %v742_v10 = vld [vmem:[%s4399_s24 + $0xe8] sm:$0xff]  ;;  %v743_v11 = vld [vmem:[%s4399_s24 + $0xf0] sm:$0xff]  ;;  %v775_v14 = vmul.f32 %v4414_v12, %v741_v9  ;;  %v4435_v29 = vrot.slane %v919_v7, %v4390_v3  ;;  %v4440_v34 = vrot.slane %v920_v8, %v4390_v3 }
  0x4a   : > { %823 = vst.msk [vmem:[#allocation2 + $0x58] sm:$0xff] %vm811_vm0, %v6839_v1  ;;  %824 = vst.msk [vmem:[#allocation2 + $0x60] sm:$0xff] %vm811_vm0, %v6839_v1  ;;  %v744_v13 = vld [vmem:[%s4399_s24 + $0xf8] sm:$0xff]  ;;  %v776_v15 = vmul.f32 %v4414_v12, %v742_v10  ;;  %v777_v16 = vmul.f32 %v4414_v12, %v743_v11  ;;  %v725_v17 = vld [vmem:[%s4399_s24 + $0x60] sm:$0xff]  ;;  %v4443_v35 = vrot.slane %v920_v8, %v4392_v4 }
  0x4b   : > { %825 = vst.msk [vmem:[#allocation2 + $0x68] sm:$0xff] %vm811_vm0, %v6839_v1  ;;  %826 = vst.msk [vmem:[#allocation2 + $0x70] sm:$0xff] %vm811_vm0, %v6839_v1  ;;  %v726_v18 = vld [vmem:[%s4399_s24 + $0x68] sm:$0xff]  ;;  %v778_v19 = vmul.f32 %v4414_v12, %v744_v13  ;;  %v1653_v24 = vld [vmem:[#allocation2 + $0x230] sm:$0xff]  ;;  %v807_v26 = vmax.f32 %v775_v14, 0.0  ;;  %v759_v38 = vmul.f32 %v4414_v12, %v725_v17  ;;  %v4456_v40 = vrot.slane %v919_v7, %v4392_v4 }
  0x4c   : > { %827 = vst.msk [vmem:[#allocation2 + $0x78] sm:$0xff] %vm811_vm0, %v6839_v1  ;;  %828 = vst.msk [vmem:[#allocation2 + $0x80] sm:$0xff] %vm811_vm0, %v6839_v1  ;;  %v1553_v23 = vld [vmem:[#allocation2 + $0x22f] sm:$0xff]  ;;  %v808_v27 = vmax.f32 %v776_v15, 0.0  ;;  %v809_v28 = vmax.f32 %v777_v16, 0.0  ;;  %v728_v32 = vld [vmem:[%s4399_s24 + $0x78] sm:$0xff]  ;;  %v760_v41 = vmul.f32 %v4414_v12, %v726_v18  ;;  %v4470_v46 = vrot.slane %v920_v8, %v4394_v5 }
  0x4d   : > { %829 = vst.msk [vmem:[#allocation2 + $0x88] sm:$0xff] %vm811_vm0, %v6839_v1  ;;  %830 = vst.msk [vmem:[#allocation2 + $0x90] sm:$0xff] %vm811_vm0, %v6839_v1  ;;  %v4432_v25 = vld [vmem:[#allocation2 + $0x229] sm:$0xff]  ;;  %v1753_v30 = vld [vmem:[#allocation2 + $0x231] sm:$0xff]  ;;  %v810_v33 = vmax.f32 %v778_v19, 0.0  ;;  %v762_v43 = vmul.f32 %v4414_v12, %v728_v32  ;;  %v791_v49 = vmax.f32 %v759_v38, 0.0  ;;  %v4486_v53 = vrot.slane %v919_v7, %v4394_v5 }
  0x4e   : > { %831 = vst.msk [vmem:[#allocation2 + $0x98] sm:$0xff] %vm811_vm0, %v6839_v1  ;;  %832 = vst.msk [vmem:[#allocation2 + $0xa0] sm:$0xff] %vm811_vm0, %v6839_v1  ;;  %v727_v31 = vld [vmem:[%s4399_s24 + $0x70] sm:$0xff]  ;;  %v729_v36 = vld [vmem:[%s4399_s24 + $0x80] sm:$0xff]  ;;  %v792_v54 = vmax.f32 %v760_v41, 0.0  ;;  %v4496_v60 = vmul.f32 %v4440_v34, %v1553_v23  ;;  %v4499_v61 = vmul.f32 %v4443_v35, %v1653_v24  ;;  %v4512_v8 = vmul.f32 %v4470_v46, %v1753_v30 }
  0x4f   : > { %833 = vst.msk [vmem:[#allocation2 + $0xa8] sm:$0xff] %vm811_vm0, %v6839_v1  ;;  %834 = vst.msk [vmem:[#allocation2 + $0xb0] sm:$0xff] %vm811_vm0, %v6839_v1  ;;  %v730_v37 = vld [vmem:[%s4399_s24 + $0x88] sm:$0xff]  ;;  %v761_v42 = vmul.f32 %v4414_v12, %v727_v31  ;;  %v739_v45 = vld [vmem:[%s4399_s24 + $0xd0] sm:$0xff]  ;;  %v763_v47 = vmul.f32 %v4414_v12, %v729_v36  ;;  %v794_v56 = vmax.f32 %v762_v43, 0.0 }
  0x50   : > { %835 = vst.msk [vmem:[#allocation2 + $0xb8] sm:$0xff] %vm811_vm0, %v6839_v1  ;;  %836 = vst.msk [vmem:[#allocation2 + $0xc0] sm:$0xff] %vm811_vm0, %v6839_v1  ;;  %v1652_v44 = vld [vmem:[#allocation2 + $0x228] sm:$0xff]  ;;  %v764_v48 = vmul.f32 %v4414_v12, %v730_v37  ;;  %v740_v50 = vld [vmem:[%s4399_s24 + $0xd8] sm:$0xff]  ;;  %v773_v0 = vmul.f32 %v4414_v12, %v739_v45 }
  0x51   : > { %837 = vst.msk [vmem:[#allocation2 + $0xc8] sm:$0xff] %vm811_vm0, %v6839_v1  ;;  %838 = vst.msk [vmem:[#allocation2 + $0xd0] sm:$0xff] %vm811_vm0, %v6839_v1  ;;  %v723_v51 = vld [vmem:[%s4399_s24 + $0x50] sm:$0xff]  ;;  %v724_v52 = vld [vmem:[%s4399_s24 + $0x58] sm:$0xff]  ;;  %v793_v55 = vmax.f32 %v761_v42, 0.0  ;;  %v795_v62 = vmax.f32 %v763_v47, 0.0  ;;  %v774_v2 = vmul.f32 %v4414_v12, %v740_v50 }
  0x52   : > { %839 = vst.msk [vmem:[#allocation2 + $0xd8] sm:$0xff] %vm811_vm0, %v6839_v1  ;;  %840 = vst.msk [vmem:[#allocation2 + $0xe0] sm:$0xff] %vm811_vm0, %v6839_v1  ;;  %v737_v57 = vld [vmem:[%s4399_s24 + $0xc0] sm:$0xff]  ;;  %v738_v58 = vld [vmem:[%s4399_s24 + $0xc8] sm:$0xff]  ;;  %v796_v63 = vmax.f32 %v764_v48, 0.0  ;;  %v757_v6 = vmul.f32 %v4414_v12, %v723_v51  ;;  %v758_v7 = vmul.f32 %v4414_v12, %v724_v52  ;;  %v805_v13 = vmax.f32 %v773_v0, 0.0 }
  0x53   : > { %841 = vst.msk [vmem:[#allocation2 + $0xe8] sm:$0xff] %vm811_vm0, %v6839_v1  ;;  %842 = vst.msk [vmem:[#allocation2 + $0xf0] sm:$0xff] %vm811_vm0, %v6839_v1  ;;  %v721_v59 = vld [vmem:[%s4399_s24 + $0x40] sm:$0xff]  ;;  %v771_v9 = vmul.f32 %v4414_v12, %v737_v57  ;;  %v772_v10 = vmul.f32 %v4414_v12, %v738_v58  ;;  %v806_v14 = vmax.f32 %v774_v2, 0.0  ;;  %v722_v17 = vld [vmem:[%s4399_s24 + $0x48] sm:$0xff] }
  0x54   : > { %843 = vst.msk [vmem:[#allocation2 + $0xf8] sm:$0xff] %vm811_vm0, %v6839_v1  ;;  %844 = vst.msk [vmem:[#allocation2 + $0x100] sm:$0xff] %vm811_vm0, %v6839_v1  ;;  %v755_v11 = vmul.f32 %v4414_v12, %v721_v59  ;;  %v789_v15 = vmax.f32 %v757_v6, 0.0  ;;  %v790_v16 = vmax.f32 %v758_v7, 0.0  ;;  %v735_v18 = vld [vmem:[%s4399_s24 + $0xb0] sm:$0xff]  ;;  %v4572_v47 = vmul.f32 %v4414_v12, %v722_v17 }
  0x55   : > { %845 = vst.msk [vmem:[#allocation2 + $0x108] sm:$0xff] %vm811_vm0, %v6839_v1  ;;  %846 = vst.msk [vmem:[#allocation2 + $0x110] sm:$0xff] %vm811_vm0, %v6839_v1 }
  0x56   : > { %847 = vst.msk [vmem:[#allocation2 + $0x118] sm:$0xff] %vm811_vm0, %v6839_v1  ;;  %848 = vst.msk [vmem:[#allocation2 + $0x120] sm:$0xff] %vm811_vm0, %v6839_v1  ;;  %v787_v30 = vmax.f32 %v755_v11, 0.0 }
  0x57   : > { %849 = vst.msk [vmem:[#allocation2 + $0x128] sm:$0xff] %vm811_vm0, %v6839_v1  ;;  %850 = vst.msk [vmem:[#allocation2 + $0x130] sm:$0xff] %vm811_vm0, %v6839_v1 }
  0x58   : > { %851 = vst.msk [vmem:[#allocation2 + $0x138] sm:$0xff] %vm811_vm0, %v6839_v1  ;;  %852 = vst.msk [vmem:[#allocation2 + $0x140] sm:$0xff] %vm811_vm0, %v6839_v1 }
  0x59   : > { %853 = vst.msk [vmem:[#allocation2 + $0x148] sm:$0xff] %vm811_vm0, %v6839_v1  ;;  %854 = vst.msk [vmem:[#allocation2 + $0x150] sm:$0xff] %vm811_vm0, %v6839_v1 }
  0x5a   : > { %855 = vst.msk [vmem:[#allocation2 + $0x158] sm:$0xff] %vm811_vm0, %v6839_v1  ;;  %856 = vst.msk [vmem:[#allocation2 + $0x160] sm:$0xff] %vm811_vm0, %v6839_v1 }
  0x5b   : > { %857 = vst.msk [vmem:[#allocation2 + $0x168] sm:$0xff] %vm811_vm0, %v6839_v1  ;;  %858 = vst.msk [vmem:[#allocation2 + $0x170] sm:$0xff] %vm811_vm0, %v6839_v1 }
  0x5c   : > { %859 = vst.msk [vmem:[#allocation2 + $0x178] sm:$0xff] %vm811_vm0, %v6839_v1  ;;  %860 = vst.msk [vmem:[#allocation2 + $0x180] sm:$0xff] %vm811_vm0, %v6839_v1 }
  0x5d   : > { %861 = vst.msk [vmem:[#allocation2 + $0x188] sm:$0xff] %vm811_vm0, %v6839_v1  ;;  %862 = vst.msk [vmem:[#allocation2 + $0x190] sm:$0xff] %vm811_vm0, %v6839_v1 }
  0x5e   : > { %863 = vst.msk [vmem:[#allocation2 + $0x198] sm:$0xff] %vm811_vm0, %v6839_v1  ;;  %864 = vst.msk [vmem:[#allocation2 + $0x1a0] sm:$0xff] %vm811_vm0, %v6839_v1 }
  0x5f   : > { %865 = vst.msk [vmem:[#allocation2 + $0x1a8] sm:$0xff] %vm811_vm0, %v6839_v1  ;;  %866 = vst.msk [vmem:[#allocation2 + $0x1b0] sm:$0xff] %vm811_vm0, %v6839_v1 }
  0x60   : > { %867 = vst.msk [vmem:[#allocation2 + $0x1b8] sm:$0xff] %vm811_vm0, %v6839_v1  ;;  %868 = vst.msk [vmem:[#allocation2 + $0x1c0] sm:$0xff] %vm811_vm0, %v6839_v1 }
  0x61   : > { %869 = vst.msk [vmem:[#allocation2 + $0x1c8] sm:$0xff] %vm811_vm0, %v6839_v1  ;;  %870 = vst.msk [vmem:[#allocation2 + $0x1d0] sm:$0xff] %vm811_vm0, %v6839_v1 }
  0x62   : > { %871 = vst.msk [vmem:[#allocation2 + $0x1d8] sm:$0xff] %vm811_vm0, %v6839_v1  ;;  %872 = vst.msk [vmem:[#allocation2 + $0x1e0] sm:$0xff] %vm811_vm0, %v6839_v1 }
  0x63   : > { %876 = vst.msk [vmem:[#allocation2 + $0x200] sm:$0xff] %vm811_vm0, %v6839_v1  ;;  %880 = vst.msk [vmem:[#allocation2 + $0x220] sm:$0xff] %vm811_vm0, %v6839_v1 }
  0x64   : > { %6923 = vst [vmem:[#allocation11_spill] sm:$0xff] %v4390_v3  ;;  %6924 = vst [vmem:[#allocation12_spill] sm:$0xff] %v4392_v4 }
  0x65   : > { %6925 = vst [vmem:[#allocation13_spill] sm:$0xff] %v4394_v5  ;;  %6928 = vst [vmem:[#allocation14_spill] sm:$0xff] %v4414_v12 }
  0x66   : > { %6929 = vst [vmem:[#allocation15_spill] sm:$0xff] %v4430_v22  ;;  %2195 = vst.msk [vmem:[#allocation2 + $0x230] sm:$0xff] %vm811_vm0, %v6839_v1 }
  0x67   : > { %2196 = vst.msk [vmem:[#allocation2 + $0x238] sm:$0xff] %vm811_vm0, %v6839_v1  ;;  %2726 = vst.msk [vmem:[#allocation2 + $0x230] sm:$0xff] %vm811_vm0, %v6839_v1 }
  0x68   : > { %914 = vst.msk [vmem:[#allocation2 + $0x1e8] sm:$0xff] %vm885_vm1, %v807_v26  ;;  %915 = vst.msk [vmem:[#allocation2 + $0x1f0] sm:$0xff] %vm885_vm1, %v808_v27  ;;  %v803_v27 = vmax.f32 %v771_v9, 0.0 }
  0x69   : > { %916 = vst.msk [vmem:[#allocation2 + $0x208] sm:$0xff] %vm885_vm1, %v809_v28  ;;  %917 = vst.msk [vmem:[#allocation2 + $0x210] sm:$0xff] %vm885_vm1, %v810_v33  ;;  %v804_v28 = vmax.f32 %v772_v10, 0.0 }
  0x6a   : > { %v1552_v39 = vld [vmem:[#allocation2 + $0x227] sm:$0xff]  ;;  %2727 = vst.msk [vmem:[#allocation2 + $0x238] sm:$0xff] %vm811_vm0, %v6839_v1  ;;  %3257 = vst.msk [vmem:[#allocation2 + $0x230] sm:$0xff] %vm811_vm0, %v6839_v1 }
  0x6b   : > { %2193 = vst.msk [vmem:[#allocation2 + $0x220] sm:$0xff] %vm811_vm0, %v6839_v1  ;;  %3258 = vst.msk [vmem:[#allocation2 + $0x238] sm:$0xff] %vm811_vm0, %v6839_v1  ;;  %v4528_v26 = vmul.f32 %v4440_v34, %v1552_v39  ;;  %v4543_v39 = vmul.f32 %v4443_v35, %v1652_v44  ;;  %v4559_v44 = vmul.f32 %v4470_v46, %v4432_v25 }
  0x6c   : > { %2194 = vst.msk [vmem:[#allocation2 + $0x228] sm:$0xff] %vm811_vm0, %v6839_v1  ;;  %2724 = vst.msk [vmem:[#allocation2 + $0x220] sm:$0xff] %vm811_vm0, %v6839_v1  ;;  %v4576_v25 = vmul.f32 %v4414_v12, %v735_v18 }
  0x6d   : > { %2725 = vst.msk [vmem:[#allocation2 + $0x228] sm:$0xff] %vm811_vm0, %v6839_v1  ;;  %3255 = vst.msk [vmem:[#allocation2 + $0x220] sm:$0xff] %vm811_vm0, %v6839_v1 }
  0x6e   : > { %898 = vst.msk [vmem:[#allocation2 + $0xe8] sm:$0xff] %vm885_vm1, %v791_v49  ;;  %899 = vst.msk [vmem:[#allocation2 + $0xf0] sm:$0xff] %vm885_vm1, %v792_v54 }
  0x6f   : > { %3256 = vst.msk [vmem:[#allocation2 + $0x228] sm:$0xff] %vm811_vm0, %v6839_v1  ;;  %v4521_v19 = vld [vmem:[#allocation2 + $0x1ef] sm:$0xff]  ;;  %v4551_v41 = vld [vmem:[#allocation2 + $0x1e7] sm:$0xff]  ;;  %6933 = vst [vmem:[#allocation19_spill] sm:$0xff] %v4572_v47 }
  0x70   : > { %900 = vst.msk [vmem:[#allocation2 + $0x108] sm:$0xff] %vm885_vm1, %v793_v55  ;;  %901 = vst.msk [vmem:[#allocation2 + $0x110] sm:$0xff] %vm885_vm1, %v794_v56  ;;  %v4523_v23 = vld [vmem:[#allocation2 + $0x1f0] sm:$0xff]  ;;  %v988_v31 = vmul.f32 %v4424_v20, %v4521_v19  ;;  %v4553_v42 = vld [vmem:[#allocation2 + $0x1e8] sm:$0xff]  ;;  %v4563_v45 = vmul.f32 %v4435_v29, %v4521_v19  ;;  %v987_v50 = vmul.f32 %v4424_v20, %v4551_v41 }
  0x71   : > { %902 = vst.msk [vmem:[#allocation2 + $0x128] sm:$0xff] %vm885_vm1, %v795_v62  ;;  %903 = vst.msk [vmem:[#allocation2 + $0x130] sm:$0xff] %vm885_vm1, %v796_v63  ;;  %v4525_v24 = vld [vmem:[#allocation2 + $0x1f1] sm:$0xff]  ;;  %v1088_v32 = vmul.f32 %v4427_v21, %v4523_v23  ;;  %v4555_v43 = vld [vmem:[#allocation2 + $0x1e9] sm:$0xff]  ;;  %v1087_v51 = vmul.f32 %v4427_v21, %v4553_v42  ;;  %v4616_v0 = vmul.f32 %v4456_v40, %v4523_v23 }
  0x72   : > { %6930 = vst [vmem:[#allocation16_spill] sm:$0xff] %v4521_v19  ;;  %6931 = vst [vmem:[#allocation17_spill] sm:$0xff] %v4523_v23  ;;  %v1188_v33 = vmul.f32 %v4430_v22, %v4525_v24  ;;  %v4536_v36 = vld [vmem:[#allocation2 + $0x20f] sm:$0xff]  ;;  %v4584_v52 = vld [vmem:[#allocation2 + $0x207] sm:$0xff]  ;;  %v1187_v63 = vmul.f32 %v4430_v22, %v4555_v43 }
  0x73   : > { %6932 = vst [vmem:[#allocation18_spill] sm:$0xff] %v4525_v24  ;;  %v4538_v37 = vld [vmem:[#allocation2 + $0x210] sm:$0xff]  ;;  %912 = vst.msk [vmem:[#allocation2 + $0x1c8] sm:$0xff] %vm885_vm1, %v805_v13  ;;  %v1120_v48 = vadd.f32 %v1088_v32, %v988_v31  ;;  %v1288_v49 = vmul.f32 %v4435_v29, %v4536_v36  ;;  %v4586_v54 = vld [vmem:[#allocation2 + $0x208] sm:$0xff] }
  0x74   : > { %v4540_v38 = vld [vmem:[#allocation2 + $0x211] sm:$0xff]  ;;  %913 = vst.msk [vmem:[#allocation2 + $0x1d0] sm:$0xff] %vm885_vm1, %v806_v14  ;;  %896 = vst.msk [vmem:[#allocation2 + $0xc8] sm:$0xff] %vm885_vm1, %v789_v15  ;;  %v4588_v55 = vld [vmem:[#allocation2 + $0x209] sm:$0xff]  ;;  %v1388_v56 = vmul.f32 %v4456_v40, %v4538_v37  ;;  %v1119_v15 = vadd.f32 %v1087_v51, %v987_v50  ;;  %v1387_v17 = vmul.f32 %v4456_v40, %v4586_v54 }
  0x75   : > { %897 = vst.msk [vmem:[#allocation2 + $0xd0] sm:$0xff] %vm885_vm1, %v790_v16  ;;  %910 = vst.msk [vmem:[#allocation2 + $0x1a8] sm:$0xff] %vm885_vm1, %v803_v27  ;;  %v4604_v57 = vmul.f32 %v4486_v53, %v4540_v38  ;;  %v4606_v58 = vld [vmem:[#allocation2 + $0xef] sm:$0xff]  ;;  %v1220_v2 = vadd.f32 %v1188_v33, %v1120_v48  ;;  %v1287_v16 = vmul.f32 %v4435_v29, %v4584_v52  ;;  %v4676_v31 = vld [vmem:[#allocation2 + $0xe7] sm:$0xff] }
  0x76   : > { %2188 = vst.msk [vmem:[#allocation2 + $0x1f8] sm:$0xff] %vm811_vm0, %v6839_v1  ;;  %2192 = vst.msk [vmem:[#allocation2 + $0x218] sm:$0xff] %vm811_vm0, %v6839_v1  ;;  %v4608_v59 = vld [vmem:[#allocation2 + $0xf0] sm:$0xff]  ;;  %v972_v6 = vmul.f32 %v4424_v20, %v4606_v58  ;;  %v4664_v18 = vmul.f32 %v4486_v53, %v4588_v55  ;;  %v4678_v32 = vld [vmem:[#allocation2 + $0xe8] sm:$0xff]  ;;  %v4684_v48 = vmul.f32 %v4486_v53, %v4525_v24 }
  0x77   : > { %911 = vst.msk [vmem:[#allocation2 + $0x1b0] sm:$0xff] %vm885_vm1, %v804_v28  ;;  %894 = vst.msk [vmem:[#allocation2 + $0xa8] sm:$0xff] %vm885_vm1, %v787_v30  ;;  %v4610_v62 = vld [vmem:[#allocation2 + $0xf1] sm:$0xff]  ;;  %v1072_v7 = vmul.f32 %v4427_v21, %v4608_v59  ;;  %v1320_v27 = vadd.f32 %v1288_v49, %v1220_v2  ;;  %v4680_v33 = vld [vmem:[#allocation2 + $0xe9] sm:$0xff]  ;;  %v1219_v2 = vadd.f32 %v1187_v63, %v1119_v15 }
  0x78   : > { %2719 = vst.msk [vmem:[#allocation2 + $0x1f8] sm:$0xff] %vm811_vm0, %v6839_v1  ;;  %6934 = vst [vmem:[#allocation20_spill] sm:$0xff] %v4576_v25  ;;  %v1172_v9 = vmul.f32 %v4430_v22, %v4610_v62  ;;  %v4638_v10 = vld [vmem:[#allocation2 + $0x10f] sm:$0xff]  ;;  %v4694_v5 = vld [vmem:[#allocation2 + $0x107] sm:$0xff]  ;;  %v1171_v15 = vmul.f32 %v4430_v22, %v4680_v33 }
  0x79   : > { %6935 = vst [vmem:[#allocation21_spill] sm:$0xff] %v4586_v54  ;;  %6936 = vst [vmem:[#allocation22_spill] sm:$0xff] %v4588_v55  ;;  %v4640_v11 = vld [vmem:[#allocation2 + $0x110] sm:$0xff]  ;;  %v1104_v28 = vadd.f32 %v1072_v7, %v972_v6  ;;  %v1272_v30 = vmul.f32 %v4435_v29, %v4638_v10  ;;  %v971_v6 = vmul.f32 %v4424_v20, %v4676_v31  ;;  %v4706_v25 = vld [vmem:[#allocation2 + $0x108] sm:$0xff] }
  0x7a   : > { %2723 = vst.msk [vmem:[#allocation2 + $0x218] sm:$0xff] %vm811_vm0, %v6839_v1  ;;  %3250 = vst.msk [vmem:[#allocation2 + $0x1f8] sm:$0xff] %vm811_vm0, %v6839_v1  ;;  %v4656_v13 = vld [vmem:[#allocation2 + $0x111] sm:$0xff]  ;;  %v1372_v49 = vmul.f32 %v4456_v40, %v4640_v11  ;;  %v1071_v7 = vmul.f32 %v4427_v21, %v4678_v32  ;;  %v1420_v4 = vadd.f32 %v1388_v56, %v1320_v27  ;;  %v4708_v12 = vld [vmem:[#allocation2 + $0x109] sm:$0xff] }
  0x7b   : > { %2185 = vst.msk [vmem:[#allocation2 + $0x1e0] sm:$0xff] %vm811_vm0, %v6839_v1  ;;  %2186 = vst.msk [vmem:[#allocation2 + $0x1e8] sm:$0xff] %vm811_vm0, %v6839_v1  ;;  %v1537_v14 = vld [vmem:[#allocation2 + $0x12f] sm:$0xff]  ;;  %v1204_v3 = vadd.f32 %v1172_v9, %v1104_v28  ;;  %v1472_v63 = vmul.f32 %v4486_v53, %v4656_v13  ;;  %v1536_v24 = vld [vmem:[#allocation2 + $0x127] sm:$0xff]  ;;  %v1319_v19 = vadd.f32 %v1287_v16, %v1219_v2 }
  0x7c   : > { %2187 = vst.msk [vmem:[#allocation2 + $0x1f0] sm:$0xff] %vm811_vm0, %v6839_v1  ;;  %3254 = vst.msk [vmem:[#allocation2 + $0x218] sm:$0xff] %vm811_vm0, %v6839_v1  ;;  %v1637_v50 = vld [vmem:[#allocation2 + $0x130] sm:$0xff]  ;;  %v4711_v23 = vmul.f32 %v4440_v34, %v1537_v14  ;;  %v1103_v47 = vadd.f32 %v1071_v7, %v971_v6  ;;  %v1271_v56 = vmul.f32 %v4435_v29, %v4694_v5  ;;  %v1636_v9 = vld [vmem:[#allocation2 + $0x128] sm:$0xff]  ;;  %v6946_v7 = vmov 0.0  }
  0x7d   : > { %2189 = vst.msk [vmem:[#allocation2 + $0x200] sm:$0xff] %vm811_vm0, %v6839_v1  ;;  %2190 = vst.msk [vmem:[#allocation2 + $0x208] sm:$0xff] %vm811_vm0, %v6839_v1  ;;  %v1737_v51 = vld [vmem:[#allocation2 + $0x131] sm:$0xff]  ;;  %v4723_v55 = vmul.f32 %v4443_v35, %v1637_v50  ;;  %v4744_v50 = vld [vmem:[#allocation2 + $0x1c9] sm:$0xff] }
  0x7e   : > { %2191 = vst.msk [vmem:[#allocation2 + $0x210] sm:$0xff] %vm811_vm0, %v6839_v1  ;;  %2716 = vst.msk [vmem:[#allocation2 + $0x1e0] sm:$0xff] %vm811_vm0, %v6839_v1  ;;  %v4715_v27 = vld [vmem:[#allocation2 + $0x1cf] sm:$0xff]  ;;  %v4726_v14 = vmul.f32 %v4470_v46, %v1737_v51  ;;  %v1203_v54 = vadd.f32 %v1171_v15, %v1103_v47  ;;  %v4755_v15 = vld [vmem:[#allocation2 + $0xc7] sm:$0xff] }
  0x7f   : > { %2717 = vst.msk [vmem:[#allocation2 + $0x1e8] sm:$0xff] %vm811_vm0, %v6839_v1  ;;  %2718 = vst.msk [vmem:[#allocation2 + $0x1f0] sm:$0xff] %vm811_vm0, %v6839_v1  ;;  %v4717_v28 = vld [vmem:[#allocation2 + $0x1d0] sm:$0xff] }
  0x80   : > { %2720 = vst.msk [vmem:[#allocation2 + $0x200] sm:$0xff] %vm811_vm0, %v6839_v1  ;;  %2721 = vst.msk [vmem:[#allocation2 + $0x208] sm:$0xff] %vm811_vm0, %v6839_v1  ;;  %v4728_v16 = vld [vmem:[#allocation2 + $0xcf] sm:$0xff] }
  0x81   : > { %2722 = vst.msk [vmem:[#allocation2 + $0x210] sm:$0xff] %vm811_vm0, %v6839_v1  ;;  %2156 = vst.msk [vmem:[#allocation2 + $0xf8] sm:$0xff] %vm811_vm0, %v6839_v1  ;;  %v4730_v2 = vld [vmem:[#allocation2 + $0xd0] sm:$0xff] }
  0x82   : > { %3247 = vst.msk [vmem:[#allocation2 + $0x1e0] sm:$0xff] %vm811_vm0, %v6839_v1  ;;  %3248 = vst.msk [vmem:[#allocation2 + $0x1e8] sm:$0xff] %vm811_vm0, %v6839_v1  ;;  %v4732_v6 = vld [vmem:[#allocation2 + $0xd1] sm:$0xff] }
  0x83   : > { %3249 = vst.msk [vmem:[#allocation2 + $0x1f0] sm:$0xff] %vm811_vm0, %v6839_v1  ;;  %3251 = vst.msk [vmem:[#allocation2 + $0x200] sm:$0xff] %vm811_vm0, %v6839_v1 }
  0x84   : > { %3252 = vst.msk [vmem:[#allocation2 + $0x208] sm:$0xff] %vm811_vm0, %v6839_v1  ;;  %3253 = vst.msk [vmem:[#allocation2 + $0x210] sm:$0xff] %vm811_vm0, %v6839_v1 }
  0x85   : > { %2687 = vst.msk [vmem:[#allocation2 + $0xf8] sm:$0xff] %vm811_vm0, %v6839_v1  ;;  %6937 = vst [vmem:[#allocation23_spill] sm:$0xff] %v4676_v31  ;;  %v4781_v31 = vld [vmem:[#allocation2 + $0x1b1] sm:$0xff] }
  0x86   : > { %6938 = vst [vmem:[#allocation24_spill] sm:$0xff] %v4678_v32  ;;  %6939 = vst [vmem:[#allocation25_spill] sm:$0xff] %v4680_v33  ;;  %v1520_v33 = vadd.f32 %v4604_v57, %v1420_v4  ;;  %v1304_v32 = vadd.f32 %v1272_v30, %v1204_v3  ;;  %v1371_v3 = vmul.f32 %v4456_v40, %v4706_v25  ;;  %v4740_v57 = vld [vmem:[#allocation2 + $0x1c7] sm:$0xff] }
  0x87   : > { %3218 = vst.msk [vmem:[#allocation2 + $0xf8] sm:$0xff] %vm811_vm0, %v6839_v1  ;;  %6940 = vst [vmem:[#allocation26_spill] sm:$0xff] %v4694_v5  ;;  %v1419_v5 = vadd.f32 %v1387_v17, %v1319_v19  ;;  %v986_v4 = vmul.f32 %v4424_v20, %v4715_v27  ;;  %v4742_v30 = vld [vmem:[#allocation2 + $0x1c8] sm:$0xff]  ;;  %v1086_v17 = vmul.f32 %v4427_v21, %v4717_v28 }
  0x88   : > { %2154 = vst.msk [vmem:[#allocation2 + $0xe8] sm:$0xff] %vm811_vm0, %v6839_v1  ;;  %2153 = vst.msk [vmem:[#allocation2 + $0xe0] sm:$0xff] %vm811_vm0, %v6839_v1  ;;  %v1621_v19 = vadd.f32 %v4496_v60, %v1520_v33  ;;  %v1404_v47 = vadd.f32 %v1372_v49, %v1304_v32  ;;  %v1303_v32 = vadd.f32 %v1271_v56, %v1203_v54  ;;  %v4801_v56 = vld [vmem:[#allocation2 + $0x1a7] sm:$0xff] }
  0x89   : > { %2155 = vst.msk [vmem:[#allocation2 + $0xf0] sm:$0xff] %vm811_vm0, %v6839_v1  ;;  %6941 = vst [vmem:[#allocation27_spill] sm:$0xff] %v4706_v25  ;;  %v4719_v1 = vld [vmem:[#allocation2 + $0x1d1] sm:$0xff]  ;;  %v4759_v25 = vld [vmem:[#allocation2 + $0xc9] sm:$0xff]  ;;  %v1519_v60 = vadd.f32 %v4664_v18, %v1419_v5  ;;  %v1471_v33 = vmul.f32 %v4486_v53, %v4708_v12  ;;  %v4775_v49 = vmul.f32 %v4440_v34, %v1536_v24 }
  0x8a   : > { %6942 = vst [vmem:[#allocation28_spill] sm:$0xff] %v4708_v12  ;;  %6943 = vst [vmem:[#allocation29_spill] sm:$0xff] %v4715_v27  ;;  %v1186_v51 = vmul.f32 %v4430_v22, %v4719_v1  ;;  %v4757_v27 = vld [vmem:[#allocation2 + $0xc8] sm:$0xff]  ;;  %v1721_v5 = vadd.f32 %v4499_v61, %v1621_v19  ;;  %v1504_v24 = vadd.f32 %v1472_v63, %v1404_v47 }
  0x8b   : > { %6944 = vst [vmem:[#allocation30_spill] sm:$0xff] %v4717_v28  ;;  %6945 = vst [vmem:[#allocation31_spill] sm:$0xff] %v4719_v1  ;;  %v4777_v1 = vld [vmem:[#allocation2 + $0x1af] sm:$0xff]  ;;  %v4799_v54 = vmul.f32 %v4443_v35, %v1636_v9  ;;  %v1118_v18 = vadd.f32 %v1086_v17, %v986_v4  ;;  %v1620_v61 = vadd.f32 %v4528_v26, %v1519_v60  ;;  %v4820_v47 = vld [vmem:[#allocation2 + $0xa7] sm:$0xff] }
  0x8c   : > { %2184 = vst.msk [vmem:[#allocation2 + $0x1d8] sm:$0xff] %vm811_vm0, %v6946_v7  ;;  %2152 = vst.msk [vmem:[#allocation2 + $0xd8] sm:$0xff] %vm811_vm0, %v6946_v7  ;;  %v4779_v28 = vld [vmem:[#allocation2 + $0x1b0] sm:$0xff]  ;;  %v4803_v12 = vld [vmem:[#allocation2 + $0x1a8] sm:$0xff]  ;;  %v1403_v63 = vadd.f32 %v1371_v3, %v1303_v32  ;;  %v970_v4 = vmul.f32 %v4424_v20, %v4728_v16  ;;  %v1070_v19 = vmul.f32 %v4427_v21, %v4730_v2 }
  0x8d   : > { %2715 = vst.msk [vmem:[#allocation2 + $0x1d8] sm:$0xff] %vm811_vm0, %v6946_v7  ;;  %6947 = vst [vmem:[#allocation32_spill] sm:$0xff] %v4755_v15  ;;  %v1736_v9 = vld [vmem:[#allocation2 + $0x129] sm:$0xff]  ;;  %v1821_v26 = vadd.f32 %v4512_v8, %v1721_v5  ;;  %v1605_v3 = vadd.f32 %v4711_v23, %v1504_v24  ;;  %v1218_v17 = vadd.f32 %v1186_v51, %v1118_v18  ;;  %v4844_v8 = vld [vmem:[#allocation2 + $0x131] sm:$0xff] }
  0x8e   : > { %6948 = vst [vmem:[#allocation33_spill] sm:$0xff] %v4757_v27  ;;  %3246 = vst.msk [vmem:[#allocation2 + $0x1d8] sm:$0xff] %vm811_vm0, %v6946_v7  ;;  %v1170_v60 = vmul.f32 %v4430_v22, %v4732_v6  ;;  %v1720_v23 = vadd.f32 %v4543_v39, %v1620_v61  ;;  %v1503_v51 = vadd.f32 %v1471_v33, %v1403_v63  ;;  %v4855_v24 = vld [vmem:[#allocation2 + $0x12f] sm:$0xff]  ;;  %v4857_v18 = vld [vmem:[#allocation2 + $0x127] sm:$0xff] }
  0x8f   : > { %2683 = vst.msk [vmem:[#allocation2 + $0xd8] sm:$0xff] %vm811_vm0, %v6946_v7  ;;  %2181 = vst.msk [vmem:[#allocation2 + $0x1c0] sm:$0xff] %vm811_vm0, %v6946_v7  ;;  %v1102_v32 = vadd.f32 %v1070_v19, %v970_v4  ;;  %v1270_v5 = vmul.f32 %v4435_v29, %v4606_v58  ;;  %3843 = vmatprep.subr.mxu0 %v1821_v26  ;;  %v1705_v39 = vadd.f32 %v4723_v55, %v1605_v3  ;;  %v4866_v4 = vld [vmem:[#allocation2 + $0x130] sm:$0xff]  ;;  %v4868_v19 = vld [vmem:[#allocation2 + $0x128] sm:$0xff] }
  0x90   : > { %2182 = vst.msk [vmem:[#allocation2 + $0x1c8] sm:$0xff] %vm811_vm0, %v6946_v7  ;;  %2183 = vst.msk [vmem:[#allocation2 + $0x1d0] sm:$0xff] %vm811_vm0, %v6946_v7  ;;  %v1772_v33 = vmul.f32 %v4470_v46, %v1736_v9  ;;  %v1318_v61 = vadd.f32 %v4563_v45, %v1218_v17  ;;  %v1587_v63 = vmul.f32 %v4440_v34, %v4536_v36  ;;  %v4880_v26 = vld [vmem:[#allocation2 + $0x10f] sm:$0xff] }
  0x91   : > { %6949 = vst [vmem:[#allocation34_spill] sm:$0xff] %v4781_v31  ;;  %3214 = vst.msk [vmem:[#allocation2 + $0xd8] sm:$0xff] %vm811_vm0, %v6946_v7  ;;  %v4805_v31 = vld [vmem:[#allocation2 + $0x1a9] sm:$0xff]  ;;  %v1820_v55 = vadd.f32 %v4559_v44, %v1720_v23  ;;  %v1604_v9 = vadd.f32 %v4775_v49, %v1503_v51  ;;  %v1202_v45 = vadd.f32 %v1170_v60, %v1102_v32  ;;  %v4884_v17 = vld [vmem:[#allocation2 + $0x111] sm:$0xff] }
  0x92   : > { %2712 = vst.msk [vmem:[#allocation2 + $0x1c0] sm:$0xff] %vm811_vm0, %v6946_v7  ;;  %2713 = vst.msk [vmem:[#allocation2 + $0x1c8] sm:$0xff] %vm811_vm0, %v6946_v7  ;;  %v1370_v36 = vmul.f32 %v4456_v40, %v4608_v59  ;;  %v4882_v3 = vld [vmem:[#allocation2 + $0x110] sm:$0xff]  ;;  %v1805_v44 = vadd.f32 %v4726_v14, %v1705_v39  ;;  %v1418_v49 = vadd.f32 %v4616_v0, %v1318_v61  ;;  %v4915_v39 = vld [vmem:[#allocation2 + $0x108] sm:$0xff] }
  0x93   : > { %2714 = vst.msk [vmem:[#allocation2 + $0x1d0] sm:$0xff] %vm811_vm0, %v6946_v7  ;;  %2150 = vst.msk [vmem:[#allocation2 + $0xc8] sm:$0xff] %vm811_vm0, %v6946_v7  ;;  %v1687_v60 = vmul.f32 %v4443_v35, %v4538_v37  ;;  %v1470_v23 = vmul.f32 %v4486_v53, %v4610_v62  ;;  %v4900_v51 = vld [vmem:[#allocation2 + $0xf] sm:$0xff]  ;;  %v1302_v14 = vadd.f32 %v1270_v5, %v1202_v45 }
  0x94   : > { %2149 = vst.msk [vmem:[#allocation2 + $0xc0] sm:$0xff] %vm811_vm0, %v6946_v7  ;;  %2151 = vst.msk [vmem:[#allocation2 + $0xd0] sm:$0xff] %vm811_vm0, %v6946_v7  ;;  %v4902_v32 = vld [vmem:[#allocation2 + $0x11] sm:$0xff]  ;;  %v985_v0 = vmul.f32 %v4424_v20, %v4740_v57  ;;  %v1085_v37 = vmul.f32 %v4427_v21, %v4742_v30  ;;  %v4917_v61 = vld [vmem:[#allocation2 + $0x109] sm:$0xff]  ;;  %3844 = vmatpush3.msra.mxu0 %v1805_v44  ;;  %v1518_v5 = vadd.f32 %v4684_v48, %v1418_v49 }
  0x95   : > { %6950 = vst [vmem:[#allocation35_spill] sm:$0xff] %v4801_v56  ;;  %6951 = vst [vmem:[#allocation36_spill] sm:$0xff] %v4803_v12  ;;  %v1571_v45 = vmul.f32 %v4440_v34, %v4638_v10  ;;  %v4942_v10 = vld [vmem:[#allocation2 + $0x9] sm:$0xff]  ;;  %3845 = vmatprep.subr.mxu0 %v1820_v55  ;;  %v1402_v44 = vadd.f32 %v1370_v36, %v1302_v14  ;;  %v1385_v55 = vmul.f32 %v4456_v40, %v4553_v42 }
  0x96   : > { %6952 = vst [vmem:[#allocation37_spill] sm:$0xff] %v4805_v31  ;;  %3243 = vst.msk [vmem:[#allocation2 + $0x1c0] sm:$0xff] %vm811_vm0, %v6946_v7  ;;  %v1117_v49 = vadd.f32 %v1085_v37, %v985_v0  ;;  %v1823_v36 = vld [vmem:[%s6972_s4 + $0x8] sm:$0xff]  ;;  %v969_v0 = vmul.f32 %v4424_v20, %v4755_v15  ;;  %v1586_v37 = vmul.f32 %v4440_v34, %v4584_v52 }
  0x97   : > { %3244 = vst.msk [vmem:[#allocation2 + $0x1c8] sm:$0xff] %vm811_vm0, %v6946_v7  ;;  %3245 = vst.msk [vmem:[#allocation2 + $0x1d0] sm:$0xff] %vm811_vm0, %v6946_v7  ;;  %1902 = vmatprep.mubr.f32.mxu0 %v1823_v36 }
  0x98   : > { %2180 = vst.msk [vmem:[#allocation2 + $0x1b8] sm:$0xff] %vm811_vm0, %v6946_v7  ;;  %6953 = vst [vmem:[#allocation38_spill] sm:$0xff] %v4820_v47 }
  0x99   : > { %2711 = vst.msk [vmem:[#allocation2 + $0x1b8] sm:$0xff] %vm811_vm0, %v6946_v7  ;;  %2177 = vst.msk [vmem:[#allocation2 + $0x1a0] sm:$0xff] %vm811_vm0, %v6946_v7 }
  0x9a   : > { %2178 = vst.msk [vmem:[#allocation2 + $0x1a8] sm:$0xff] %vm811_vm0, %v6946_v7  ;;  %2179 = vst.msk [vmem:[#allocation2 + $0x1b0] sm:$0xff] %vm811_vm0, %v6946_v7 }
  0x9b   : > { %3242 = vst.msk [vmem:[#allocation2 + $0x1b8] sm:$0xff] %vm811_vm0, %v6946_v7  ;;  %2708 = vst.msk [vmem:[#allocation2 + $0x1a0] sm:$0xff] %vm811_vm0, %v6946_v7 }
  0x9c   : > { %2709 = vst.msk [vmem:[#allocation2 + $0x1a8] sm:$0xff] %vm811_vm0, %v6946_v7  ;;  %2710 = vst.msk [vmem:[#allocation2 + $0x1b0] sm:$0xff] %vm811_vm0, %v6946_v7 }
  0x9d   : > { %2145 = vst.msk [vmem:[#allocation2 + $0xa0] sm:$0xff] %vm811_vm0, %v6946_v7  ;;  %6954 = vst [vmem:[#allocation39_spill] sm:$0xff] %v4844_v8  ;;  %v4870_v8 = vld [vmem:[#allocation2 + $0x129] sm:$0xff] }
  0x9e   : > { %3239 = vst.msk [vmem:[#allocation2 + $0x1a0] sm:$0xff] %vm811_vm0, %v6946_v7  ;;  %3240 = vst.msk [vmem:[#allocation2 + $0x1a8] sm:$0xff] %vm811_vm0, %v6946_v7 }
  0x9f   : > { %3241 = vst.msk [vmem:[#allocation2 + $0x1b0] sm:$0xff] %vm811_vm0, %v6946_v7  ;;  %6955 = vst [vmem:[#allocation40_spill] sm:$0xff] %v4855_v24 }
  0xa0   : > { %6956 = vst [vmem:[#allocation41_spill] sm:$0xff] %v4857_v18  ;;  %2164 = vst.msk [vmem:[#allocation2 + $0x138] sm:$0xff] %vm811_vm0, %v6946_v7 }
  0xa1   : > { %6957 = vst [vmem:[#allocation42_spill] sm:$0xff] %v4866_v4  ;;  %6958 = vst [vmem:[#allocation43_spill] sm:$0xff] %v4868_v19 }
  0xa2   : > { %6959 = vst [vmem:[#allocation44_spill] sm:$0xff] %v4870_v8  ;;  %2695 = vst.msk [vmem:[#allocation2 + $0x138] sm:$0xff] %vm811_vm0, %v6946_v7 }
  0xa3   : > { %2161 = vst.msk [vmem:[#allocation2 + $0x120] sm:$0xff] %vm811_vm0, %v6946_v7  ;;  %6960 = vst [vmem:[#allocation45_spill] sm:$0xff] %v4880_v26 }
  0xa4   : > { %6961 = vst [vmem:[#allocation46_spill] sm:$0xff] %v4882_v3  ;;  %6962 = vst [vmem:[#allocation47_spill] sm:$0xff] %v4884_v17  ;;  %v4904_v17 = vld [vmem:[#allocation2 + $0x107] sm:$0xff]  ;;  %v1704_v3 = vadd.f32 %v4799_v54, %v1604_v9  ;;  %v1787_v9 = vmul.f32 %v4470_v46, %v4540_v38 }
  0xa5   : > { %3226 = vst.msk [vmem:[#allocation2 + $0x138] sm:$0xff] %vm811_vm0, %v6946_v7  ;;  %2162 = vst.msk [vmem:[#allocation2 + $0x128] sm:$0xff] %vm811_vm0, %v6946_v7  ;;  %v4921_v54 = vld [vmem:[#allocation2 + $0x7] sm:$0xff] }
  0xa6   : > { %2163 = vst.msk [vmem:[#allocation2 + $0x130] sm:$0xff] %vm811_vm0, %v6946_v7  ;;  %2160 = vst.msk [vmem:[#allocation2 + $0x118] sm:$0xff] %vm811_vm0, %v6946_v7  ;;  %v4940_v38 = vld [vmem:[#allocation2 + $0x8] sm:$0xff]  ;;  %v1804_v48 = vadd.f32 %v1772_v33, %v1704_v3  ;;  %v1771_v33 = vmul.f32 %v4470_v46, %v4656_v13  ;;  %v1502_v3 = vadd.f32 %v1470_v23, %v1402_v44  ;;  %v6973_v44 = vld [vmem:[#allocation23_spill] sm:$0xff] }
  0xa7   : > { %6963 = vst [vmem:[#allocation48_spill] sm:$0xff] %v4900_v51  ;;  %6964 = vst [vmem:[#allocation49_spill] sm:$0xff] %v4902_v32  ;;  %v1485_v13 = vmul.f32 %v4486_v53, %v4555_v43  ;;  %v6974_v32 = vld [vmem:[#allocation21_spill] sm:$0xff]  ;;  %v6976_v51 = vld [vmem:[#allocation24_spill] sm:$0xff] }
  0xa8   : > { %6965 = vst [vmem:[#allocation50_spill] sm:$0xff] %v4904_v17  ;;  %2691 = vst.msk [vmem:[#allocation2 + $0x118] sm:$0xff] %vm811_vm0, %v6946_v7  ;;  %v1185_v17 = vmul.f32 %v4430_v22, %v4744_v50  ;;  %3846 = vmatpush3.msra.mxu0 %v1804_v48  ;;  %v1603_v48 = vadd.f32 %v1571_v45, %v1502_v3  ;;  %v1369_v52 = vmul.f32 %v4456_v40, %v6976_v51  ;;  %v6977_v45 = vld [vmem:[#allocation25_spill] sm:$0xff] }
  0xa9   : > { %2128 = vst.msk [vmem:[#allocation2 + $0x18] sm:$0xff] %vm811_vm0, %v6946_v7  ;;  %6966 = vst [vmem:[#allocation51_spill] sm:$0xff] %v4915_v39  ;;  %v1469_v36 = vmul.f32 %v4486_v53, %v6977_v45 }
  0xaa   : > { %6967 = vst [vmem:[#allocation52_spill] sm:$0xff] %v4917_v61  ;;  %2157 = vst.msk [vmem:[#allocation2 + $0x100] sm:$0xff] %vm811_vm0, %v6946_v7  ;;  %v4932_v61 = vld [vmem:[#allocation2 + $0x10] sm:$0xff]  ;;  %v1217_v14 = vadd.f32 %v1185_v17, %v1117_v49  ;;  %v1269_v49 = vmul.f32 %v4435_v29, %v6973_v44 }
  0xab   : > { %6968 = vst [vmem:[#allocation53_spill] sm:$0xff] %v4921_v54  ;;  %3222 = vst.msk [vmem:[#allocation2 + $0x118] sm:$0xff] %vm811_vm0, %v6946_v7  ;;  %v1285_v54 = vmul.f32 %v4435_v29, %v4551_v41 }
  0xac   : > { %6969 = vst [vmem:[#allocation54_spill] sm:$0xff] %v4932_v61  ;;  %2659 = vst.msk [vmem:[#allocation2 + $0x18] sm:$0xff] %vm811_vm0, %v6946_v7 }
  0xad   : > { %2158 = vst.msk [vmem:[#allocation2 + $0x108] sm:$0xff] %vm811_vm0, %v6946_v7  ;;  %2159 = vst.msk [vmem:[#allocation2 + $0x110] sm:$0xff] %vm811_vm0, %v6946_v7  ;;  %v1317_v23 = vadd.f32 %v1285_v54, %v1217_v14  ;;  %v984_v54 = vmul.f32 %v4424_v20, %v4777_v1  ;;  %v6979_v14 = vld [vmem:[#allocation34_spill] sm:$0xff] }
  0xae   : > { %6970 = vst [vmem:[#allocation55_spill] sm:$0xff] %v4940_v38  ;;  %6971 = vst [vmem:[#allocation56_spill] sm:$0xff] %v4942_v10  ;;  %v1619_v10 = vadd.f32 %v1587_v63, %v1518_v5  ;;  %v1671_v38 = vmul.f32 %v4443_v35, %v4640_v11  ;;  %v1069_v63 = vmul.f32 %v4427_v21, %v4757_v27 }
  0xaf   : > { %2125 = vst.msk [vmem:[#allocation2] sm:$0xff] %vm811_vm0, %v6946_v7  ;;  %3190 = vst.msk [vmem:[#allocation2 + $0x18] sm:$0xff] %vm811_vm0, %v6946_v7  ;;  %v1169_v5 = vmul.f32 %v4430_v22, %v4759_v25  ;;  %v1417_v8 = vadd.f32 %v1385_v55, %v1317_v23 }
  0xb0   : > { %2126 = vst.msk [vmem:[#allocation2 + $0x8] sm:$0xff] %vm811_vm0, %v6946_v7  ;;  %2127 = vst.msk [vmem:[#allocation2 + $0x10] sm:$0xff] %vm811_vm0, %v6946_v7  ;;  %v1719_v11 = vadd.f32 %v1687_v60, %v1619_v10  ;;  %v1101_v17 = vadd.f32 %v1069_v63, %v969_v0  ;;  %v1686_v60 = vmul.f32 %v4443_v35, %v6974_v32  ;;  %v6975_v10 = vld [vmem:[#allocation22_spill] sm:$0xff] }
  0xb1   : > { %v1786_v61 = vmul.f32 %v4470_v46, %v6975_v10  ;;  %v1703_v26 = vadd.f32 %v1671_v38, %v1603_v48  ;;  %v1084_v32 = vmul.f32 %v4427_v21, %v4779_v28  ;;  %v1184_v0 = vmul.f32 %v4430_v22, %v6979_v14  ;;  %v6981_v48 = vld [vmem:[#allocation28_spill] sm:$0xff]  ;;  %v6984_v14 = vld [vmem:[#allocation31_spill] sm:$0xff] }
  0xb2   : > { %v1819_v39 = vadd.f32 %v1787_v9, %v1719_v11  ;;  %v1201_v19 = vadd.f32 %v1169_v5, %v1101_v17  ;;  %v6978_v9 = vld [vmem:[#allocation26_spill] sm:$0xff]  ;;  %v1517_v38 = vadd.f32 %v1485_v13, %v1417_v8  ;;  %v6980_v11 = vld [vmem:[#allocation27_spill] sm:$0xff]  ;;  %v6982_v17 = vld [vmem:[#allocation29_spill] sm:$0xff]  ;;  %v1484_v8 = vmul.f32 %v4486_v53, %v6984_v14 }
  0xb3   : > { %v1570_v3 = vmul.f32 %v4440_v34, %v6978_v9  ;;  %v1803_v63 = vadd.f32 %v1771_v33, %v1703_v26  ;;  %v1670_v5 = vmul.f32 %v4443_v35, %v6980_v11  ;;  %v1116_v23 = vadd.f32 %v1084_v32, %v984_v54  ;;  %v6983_v9 = vld [vmem:[#allocation30_spill] sm:$0xff]  ;;  %v6986_v13 = vld [vmem:[#allocation16_spill] sm:$0xff]  ;;  %v6987_v11 = vld [vmem:[#allocation17_spill] sm:$0xff] }
  0xb4   : > { %3847 = vmatprep.subr.mxu0 %v1819_v39  ;;  %v1301_v55 = vadd.f32 %v1269_v49, %v1201_v19  ;;  %v1770_v39 = vmul.f32 %v4470_v46, %v6981_v48  ;;  %v1284_v10 = vmul.f32 %v4435_v29, %v6982_v17  ;;  %v1384_v18 = vmul.f32 %v4456_v40, %v6983_v9  ;;  %v6985_v19 = vld [vmem:[#allocation19_spill] sm:$0xff]  ;;  %v6988_v32 = vld [vmem:[#allocation18_spill] sm:$0xff] }
  0xb5   : > { %3848 = vmatpush3.msra.mxu0 %v1803_v63  ;;  %v1618_v4 = vadd.f32 %v1586_v37, %v1517_v38  ;;  %v788_v26 = vmax.f32 %v6985_v19, 0.0  ;;  %v1216_v33 = vadd.f32 %v1184_v0, %v1116_v23  ;;  %v1585_v49 = vmul.f32 %v4440_v34, %v6986_v13  ;;  %v5031_v23 = vld [vmem:[#allocation2 + $0xa8] sm:$0xff] }
  0xb6   : > { %v1401_v24 = vadd.f32 %v1369_v52, %v1301_v55  ;;  %v1685_v54 = vmul.f32 %v4443_v35, %v6987_v11  ;;  %v1785_v48 = vmul.f32 %v4470_v46, %v6988_v32  ;;  %v5011_v37 = vmul.f32 %v4435_v29, %v4728_v16  ;;  %6989 = vst [vmem:[#allocation23_spill] sm:$0xff] %v5031_v23 }
  0xb7   : > { %v1718_v17 = vadd.f32 %v1686_v60, %v1618_v4  ;;  %895 = vst.msk [vmem:[#allocation2 + $0xb0] sm:$0xff] %vm885_vm1, %v788_v26  ;;  %v5015_v52 = vmul.f32 %v4456_v40, %v4730_v2  ;;  %v1316_v0 = vadd.f32 %v1284_v10, %v1216_v33  ;;  %v983_v63 = vmul.f32 %v4424_v20, %v4801_v56 }
  0xb8   : > { %v1501_v9 = vadd.f32 %v1469_v36, %v1401_v24  ;;  %v1083_v38 = vmul.f32 %v4427_v21, %v4803_v12  ;;  %v1183_v24 = vmul.f32 %v4430_v22, %v4805_v31  ;;  %v5025_v36 = vmul.f32 %v4486_v53, %v4732_v6 }
  0xb9   : > { %v1818_v4 = vadd.f32 %v1786_v61, %v1718_v17  ;;  %v5029_v55 = vmul.f32 %v4440_v34, %v4606_v58  ;;  %v1416_v10 = vadd.f32 %v1384_v18, %v1316_v0  ;;  %v5035_v19 = vmul.f32 %v4443_v35, %v4608_v59  ;;  %v736_v0 = vld [vmem:[%s4399_s24 + $0xb8] sm:$0xff] }
  0xba   : > { %v1602_v60 = vadd.f32 %v1570_v3, %v1501_v9  ;;  %v1115_v26 = vadd.f32 %v1083_v38, %v983_v63  ;;  %v1283_v61 = vmul.f32 %v4435_v29, %v4740_v57  ;;  %v5041_v17 = vmul.f32 %v4470_v46, %v4610_v62 }
  0xbb   : > { %3849 = vmatprep.subr.mxu0 %v1818_v4  ;;  %v1383_v58 = vmul.f32 %v4456_v40, %v4742_v30  ;;  %v967_v18 = vmul.f32 %v4424_v20, %v4820_v47  ;;  %v1516_v9 = vadd.f32 %v1484_v8, %v1416_v10  ;;  %v1483_v33 = vmul.f32 %v4486_v53, %v4744_v50 }
  0xbc   : > { %v1702_v3 = vadd.f32 %v1670_v5, %v1602_v60  ;;  %6990 = vst [vmem:[#allocation21_spill] sm:$0xff] %v5041_v17  ;;  %v1215_v59 = vadd.f32 %v1183_v24, %v1115_v26  ;;  %v1067_v13 = vmul.f32 %v4427_v21, %v5031_v23  ;;  %v1584_v5 = vmul.f32 %v4440_v34, %v4551_v41 }
  0xbd   : > { %v1684_v62 = vmul.f32 %v4443_v35, %v4553_v42  ;;  %v5057_v32 = vmul.f32 %v4470_v46, %v4555_v43  ;;  %v1617_v8 = vadd.f32 %v1585_v49, %v1516_v9  ;;  %v1267_v41 = vmul.f32 %v4435_v29, %v4755_v15 }
  0xbe   : > { %v1802_v11 = vadd.f32 %v1770_v39, %v1702_v3  ;;  %v5060_v63 = vld [vmem:[#allocation2 + $0xaf] sm:$0xff]  ;;  %v1315_v4 = vadd.f32 %v1283_v61, %v1215_v59  ;;  %v1099_v39 = vadd.f32 %v1067_v13, %v967_v18  ;;  %v1367_v10 = vmul.f32 %v4456_v40, %v4757_v27  ;;  %v6992_v18 = vld [vmem:[#allocation14_spill] sm:$0xff] }
  0xbf   : > { %v5062_v38 = vld [vmem:[#allocation2 + $0xb0] sm:$0xff]  ;;  %v968_v42 = vmul.f32 %v4424_v20, %v5060_v63  ;;  %v1717_v26 = vadd.f32 %v1685_v54, %v1617_v8  ;;  %v770_v9 = vmul.f32 %v6992_v18, %v736_v0  ;;  %v1467_v54 = vmul.f32 %v4486_v53, %v4759_v25  ;;  %v6993_v13 = vld [vmem:[#allocation20_spill] sm:$0xff] }
  0xc0   : > { %v5064_v24 = vld [vmem:[#allocation2 + $0xb1] sm:$0xff]  ;;  %3850 = vmatpush3.msra.mxu0 %v1802_v11  ;;  %v1068_v43 = vmul.f32 %v4427_v21, %v5062_v38  ;;  %v5074_v60 = vld [vmem:[#allocation2 + $0xa9] sm:$0xff]  ;;  %v1415_v61 = vadd.f32 %v1383_v58, %v1315_v4  ;;  %v1568_v58 = vmul.f32 %v4440_v34, %v6973_v44  ;;  %v801_v11 = vmax.f32 %v6993_v13, 0.0 }
  0xc1   : > { %v1168_v49 = vmul.f32 %v4430_v22, %v5064_v24  ;;  %6991 = vst [vmem:[#allocation22_spill] sm:$0xff] %v5074_v60  ;;  %2148 = vst.msk [vmem:[#allocation2 + $0xb8] sm:$0xff] %vm811_vm0, %v6946_v7  ;;  %v1167_v3 = vmul.f32 %v4430_v22, %v5074_v60  ;;  %v719_v8 = vld [vmem:[%s4399_s24 + $0x30] sm:$0xff]  ;;  %v1817_v0 = vadd.f32 %v1785_v48, %v1717_v26  ;;  %v802_v15 = vmax.f32 %v770_v9, 0.0  ;;  %v720_v60 = vld [vmem:[%s4399_s24 + $0x38] sm:$0xff] }
  0xc2   : > { %2679 = vst.msk [vmem:[#allocation2 + $0xb8] sm:$0xff] %vm811_vm0, %v6946_v7  ;;  %2146 = vst.msk [vmem:[#allocation2 + $0xa8] sm:$0xff] %vm811_vm0, %v6946_v7  ;;  %v1100_v59 = vadd.f32 %v1068_v43, %v968_v42  ;;  %v1515_v4 = vadd.f32 %v1483_v33, %v1415_v61  ;;  %v1668_v42 = vmul.f32 %v4443_v35, %v6976_v51  ;;  %v6995_v61 = vld [vmem:[#allocation29_spill] sm:$0xff] }
  0xc3   : > { %2147 = vst.msk [vmem:[#allocation2 + $0xb0] sm:$0xff] %vm811_vm0, %v6946_v7  ;;  %3210 = vst.msk [vmem:[#allocation2 + $0xb8] sm:$0xff] %vm811_vm0, %v6946_v7  ;;  %v1199_v27 = vadd.f32 %v1167_v3, %v1099_v39  ;;  %v5102_v43 = vmul.f32 %v4470_v46, %v6977_v45  ;;  %v5107_v44 = vmul.f32 %v4435_v29, %v4777_v1  ;;  %3851 = vmatprep.subr.mxu0 %v1817_v0 }
  0xc4   : > { %v1200_v17 = vadd.f32 %v1168_v49, %v1100_v59  ;;  %908 = vst.msk [vmem:[#allocation2 + $0x188] sm:$0xff] %vm885_vm1, %v801_v11  ;;  %v1616_v48 = vadd.f32 %v1584_v5, %v1515_v4  ;;  %909 = vst.msk [vmem:[#allocation2 + $0x190] sm:$0xff] %vm885_vm1, %v802_v15  ;;  %v5112_v39 = vmul.f32 %v4456_v40, %v4779_v28  ;;  %v6994_v49 = vld [vmem:[#allocation34_spill] sm:$0xff] }
  0xc5   : > { %v1299_v33 = vadd.f32 %v1267_v41, %v1199_v27  ;;  %v753_v51 = vmul.f32 %v6992_v18, %v719_v8  ;;  %v5118_v26 = vmul.f32 %v4486_v53, %v6994_v49  ;;  %v5122_v3 = vmul.f32 %v4440_v34, %v6995_v61  ;;  %v6996_v41 = vld [vmem:[#allocation30_spill] sm:$0xff] }
  0xc6   : > { %v1300_v45 = vadd.f32 %v5011_v37, %v1200_v17  ;;  %v754_v27 = vmul.f32 %v6992_v18, %v720_v60  ;;  %v1716_v5 = vadd.f32 %v1684_v62, %v1616_v48  ;;  %v5127_v9 = vmul.f32 %v4443_v35, %v6996_v41 }
  0xc7   : > { %v1399_v15 = vadd.f32 %v1367_v10, %v1299_v33  ;;  %v785_v59 = vmax.f32 %v753_v51, 0.0  ;;  %v5132_v37 = vmul.f32 %v4470_v46, %v6984_v14  ;;  %v5136_v11 = vmul.f32 %v4435_v29, %v5060_v63 }
  0xc8   : > { %v1400_v13 = vadd.f32 %v5015_v52, %v1300_v45  ;;  %v786_v17 = vmax.f32 %v754_v27, 0.0  ;;  %v5141_v62 = vmul.f32 %v4456_v40, %v5062_v38  ;;  %v5145_v60 = vmul.f32 %v4486_v53, %v5064_v24 }
  0xc9   : > { %v1499_v8 = vadd.f32 %v1467_v54, %v1399_v15  ;;  %892 = vst.msk [vmem:[#allocation2 + $0x88] sm:$0xff] %vm885_vm1, %v785_v59  ;;  %v5149_v14 = vmul.f32 %v4440_v34, %v4728_v16  ;;  %v5153_v10 = vadd.f32 %v5057_v32, %v1716_v5  ;;  %v5158_v54 = vmul.f32 %v4443_v35, %v4730_v2 }
  0xca   : > { %v1500_v52 = vadd.f32 %v5025_v36, %v1400_v13  ;;  %893 = vst.msk [vmem:[#allocation2 + $0x90] sm:$0xff] %vm885_vm1, %v786_v17  ;;  %v5162_v0 = vmul.f32 %v4470_v46, %v4732_v6  ;;  %v1281_v36 = vmul.f32 %v4435_v29, %v4801_v56  ;;  %v5172_v32 = vmul.f32 %v4456_v40, %v4803_v12  ;;  %v733_v13 = vld [vmem:[%s4399_s24 + $0xa0] sm:$0xff] }
  0xcb   : > { %v1600_v4 = vadd.f32 %v1568_v58, %v1499_v8  ;;  %v5164_v48 = vld [vmem:[#allocation2 + $0x187] sm:$0xff]  ;;  %v5176_v2 = vmul.f32 %v4486_v53, %v4805_v31  ;;  %v5179_v33 = vld [vmem:[#allocation2 + $0x18f] sm:$0xff]  ;;  %v5191_v27 = vmul.f32 %v4440_v34, %v4740_v57  ;;  %v5213_v8 = vmul.f32 %v4443_v35, %v4742_v30 }
  0xcc   : > { %6997 = vst [vmem:[#allocation24_spill] sm:$0xff] %v5162_v0  ;;  %v5166_v16 = vld [vmem:[#allocation2 + $0x188] sm:$0xff]  ;;  %v1601_v6 = vadd.f32 %v5029_v55, %v1500_v52  ;;  %v5181_v58 = vld [vmem:[#allocation2 + $0x190] sm:$0xff]  ;;  %v981_v45 = vmul.f32 %v4424_v20, %v5164_v48  ;;  %2173 = vst.msk [vmem:[#allocation2 + $0x180] sm:$0xff] %vm811_vm0, %v6946_v7  ;;  %v982_v5 = vmul.f32 %v4424_v20, %v5179_v33 }
  0xcd   : > { %6998 = vst [vmem:[#allocation25_spill] sm:$0xff] %v5166_v16  ;;  %v5183_v51 = vld [vmem:[#allocation2 + $0x191] sm:$0xff]  ;;  %v1081_v61 = vmul.f32 %v4427_v21, %v5166_v16  ;;  %v1700_v55 = vadd.f32 %v1668_v42, %v1600_v4  ;;  %v1082_v15 = vmul.f32 %v4427_v21, %v5181_v58  ;;  %v5201_v59 = vld [vmem:[#allocation2 + $0x189] sm:$0xff]  ;;  %2704 = vst.msk [vmem:[#allocation2 + $0x180] sm:$0xff] %vm811_vm0, %v6946_v7 }
  0xce   : > { %v1182_v41 = vmul.f32 %v4430_v22, %v5183_v51  ;;  %6999 = vst [vmem:[#allocation26_spill] sm:$0xff] %v5201_v59  ;;  %2176 = vst.msk [vmem:[#allocation2 + $0x198] sm:$0xff] %vm811_vm0, %v6946_v7  ;;  %v1701_v57 = vadd.f32 %v5035_v19, %v1601_v6  ;;  %v1181_v17 = vmul.f32 %v4430_v22, %v5201_v59  ;;  %v734_v52 = vld [vmem:[%s4399_s24 + $0xa8] sm:$0xff]  ;;  %v7006_v59 = vld [vmem:[#allocation33_spill] sm:$0xff] }
  0xcf   : > { %v1113_v42 = vadd.f32 %v1081_v61, %v981_v45  ;;  %2707 = vst.msk [vmem:[#allocation2 + $0x198] sm:$0xff] %vm811_vm0, %v6946_v7  ;;  %2174 = vst.msk [vmem:[#allocation2 + $0x188] sm:$0xff] %vm811_vm0, %v6946_v7  ;;  %v1114_v19 = vadd.f32 %v1082_v15, %v982_v5  ;;  %v5226_v4 = vmul.f32 %v4470_v46, %v4744_v50  ;;  %v7000_v45 = vld [vmem:[#allocation21_spill] sm:$0xff] }
  0xd0   : > { %2175 = vst.msk [vmem:[#allocation2 + $0x190] sm:$0xff] %vm811_vm0, %v6946_v7  ;;  %3235 = vst.msk [vmem:[#allocation2 + $0x180] sm:$0xff] %vm811_vm0, %v6946_v7  ;;  %v1265_v30 = vmul.f32 %v4435_v29, %v4820_v47  ;;  %v1365_v6 = vmul.f32 %v4456_v40, %v5031_v23  ;;  %v1801_v61 = vadd.f32 %v7000_v45, %v1701_v57  ;;  %v5240_v15 = vld [vmem:[#allocation2 + $0x87] sm:$0xff] }
  0xd1   : > { %3238 = vst.msk [vmem:[#allocation2 + $0x198] sm:$0xff] %vm811_vm0, %v6946_v7  ;;  %2705 = vst.msk [vmem:[#allocation2 + $0x188] sm:$0xff] %vm811_vm0, %v6946_v7  ;;  %v1800_v50 = vadd.f32 %v5102_v43, %v1700_v55  ;;  %v1213_v5 = vadd.f32 %v1181_v17, %v1113_v42  ;;  %v5242_v47 = vld [vmem:[#allocation2 + $0x88] sm:$0xff]  ;;  %v767_v23 = vmul.f32 %v6992_v18, %v733_v13  ;;  %v5251_v56 = vld [vmem:[#allocation2 + $0x90] sm:$0xff] }
  0xd2   : > { %2706 = vst.msk [vmem:[#allocation2 + $0x190] sm:$0xff] %vm811_vm0, %v6946_v7  ;;  %7001 = vst [vmem:[#allocation27_spill] sm:$0xff] %v5240_v15  ;;  %v1214_v31 = vadd.f32 %v1182_v41, %v1114_v19  ;;  %v5249_v12 = vld [vmem:[#allocation2 + $0x8f] sm:$0xff]  ;;  %v965_v43 = vmul.f32 %v4424_v20, %v5240_v15  ;;  %v1065_v55 = vmul.f32 %v4427_v21, %v5242_v47  ;;  %3852 = vmatpush3.msra.mxu0 %v1801_v61 }
  0xd3   : > { %7002 = vst [vmem:[#allocation28_spill] sm:$0xff] %v5242_v47  ;;  %3236 = vst.msk [vmem:[#allocation2 + $0x188] sm:$0xff] %vm811_vm0, %v6946_v7  ;;  %v5253_v57 = vld [vmem:[#allocation2 + $0x91] sm:$0xff]  ;;  %v768_v13 = vmul.f32 %v6992_v18, %v734_v52  ;;  %v966_v41 = vmul.f32 %v4424_v20, %v5249_v12  ;;  %v1066_v42 = vmul.f32 %v4427_v21, %v5251_v56  ;;  %v5268_v45 = vld [vmem:[#allocation2 + $0x89] sm:$0xff]  ;;  %3853 = vmatprep.subr.mxu0 %v5153_v10 }
  0xd4   : > { %3237 = vst.msk [vmem:[#allocation2 + $0x190] sm:$0xff] %vm811_vm0, %v6946_v7  ;;  %2141 = vst.msk [vmem:[#allocation2 + $0x80] sm:$0xff] %vm811_vm0, %v6946_v7  ;;  %v1166_v17 = vmul.f32 %v4430_v22, %v5253_v57  ;;  %v1313_v19 = vadd.f32 %v1281_v36, %v1213_v5  ;;  %v1314_v52 = vadd.f32 %v5107_v44, %v1214_v31  ;;  %v799_v15 = vmax.f32 %v767_v23, 0.0  ;;  %v7004_v31 = vld [vmem:[#allocation22_spill] sm:$0xff] }
  0xd5   : > { %7003 = vst [vmem:[#allocation31_spill] sm:$0xff] %v5268_v45  ;;  %2144 = vst.msk [vmem:[#allocation2 + $0x98] sm:$0xff] %vm811_vm0, %v6946_v7  ;;  %v1097_v61 = vadd.f32 %v1065_v55, %v965_v43  ;;  %v1165_v47 = vmul.f32 %v4430_v22, %v5268_v45  ;;  %3854 = vmatpush3.msra.mxu0 %v1800_v50  ;;  %v1098_v36 = vadd.f32 %v1066_v42, %v966_v41  ;;  %v717_v43 = vld [vmem:[%s4399_s24 + $0x20] sm:$0xff]  ;;  %v7005_v45 = vld [vmem:[#allocation32_spill] sm:$0xff] }
  0xd6   : > { %2675 = vst.msk [vmem:[#allocation2 + $0x98] sm:$0xff] %vm811_vm0, %v6946_v7  ;;  %2142 = vst.msk [vmem:[#allocation2 + $0x88] sm:$0xff] %vm811_vm0, %v6946_v7  ;;  %v1413_v10 = vadd.f32 %v5172_v32, %v1313_v19  ;;  %v1465_v44 = vmul.f32 %v4486_v53, %v7004_v31  ;;  %v800_v5 = vmax.f32 %v768_v13, 0.0  ;;  %v1414_v23 = vadd.f32 %v5112_v39, %v1314_v52  ;;  %v718_v32 = vld [vmem:[%s4399_s24 + $0x28] sm:$0xff] }
  0xd7   : > { %2143 = vst.msk [vmem:[#allocation2 + $0x90] sm:$0xff] %vm811_vm0, %v6946_v7  ;;  %3206 = vst.msk [vmem:[#allocation2 + $0x98] sm:$0xff] %vm811_vm0, %v6946_v7  ;;  %v1197_v55 = vadd.f32 %v1165_v47, %v1097_v61  ;;  %v1566_v0 = vmul.f32 %v4440_v34, %v7005_v45  ;;  %v1666_v50 = vmul.f32 %v4443_v35, %v7006_v59 }
  0xd8   : > { %906 = vst.msk [vmem:[#allocation2 + $0x168] sm:$0xff] %vm885_vm1, %v799_v15  ;;  %v1198_v41 = vadd.f32 %v1166_v17, %v1098_v36  ;;  %v1513_v42 = vadd.f32 %v5176_v2, %v1413_v10  ;;  %v5298_v13 = vmul.f32 %v4470_v46, %v4759_v25  ;;  %907 = vst.msk [vmem:[#allocation2 + $0x170] sm:$0xff] %vm885_vm1, %v800_v5 }
  0xd9   : > { %v5303_v47 = vmul.f32 %v4435_v29, %v5179_v33  ;;  %v1514_v39 = vadd.f32 %v5118_v26, %v1414_v23  ;;  %v1297_v19 = vadd.f32 %v1265_v30, %v1197_v55  ;;  %v5308_v59 = vmul.f32 %v4456_v40, %v5181_v58 }
  0xda   : > { %v751_v15 = vmul.f32 %v6992_v18, %v717_v43  ;;  %v1298_v2 = vadd.f32 %v5136_v11, %v1198_v41  ;;  %v1614_v25 = vadd.f32 %v5191_v27, %v1513_v42  ;;  %v5315_v17 = vmul.f32 %v4486_v53, %v5183_v51 }
  0xdb   : > { %v752_v45 = vmul.f32 %v6992_v18, %v718_v32  ;;  %v1615_v52 = vadd.f32 %v5122_v3, %v1514_v39  ;;  %v1397_v26 = vadd.f32 %v1365_v6, %v1297_v19  ;;  %v5321_v30 = vmul.f32 %v4440_v34, %v4777_v1 }
  0xdc   : > { %v783_v61 = vmax.f32 %v751_v15, 0.0  ;;  %v1398_v36 = vadd.f32 %v5141_v62, %v1298_v2  ;;  %v5326_v11 = vmul.f32 %v4443_v35, %v4779_v28  ;;  %v5330_v27 = vmul.f32 %v4470_v46, %v6994_v49 }
  0xdd   : > { %v784_v10 = vmax.f32 %v752_v45, 0.0  ;;  %v1715_v5 = vadd.f32 %v5127_v9, %v1615_v52  ;;  %v1497_v3 = vadd.f32 %v1465_v44, %v1397_v26  ;;  %v5336_v1 = vmul.f32 %v4435_v29, %v5249_v12 }
  0xde   : > { %890 = vst.msk [vmem:[#allocation2 + $0x68] sm:$0xff] %vm885_vm1, %v783_v61  ;;  %v5340_v62 = vmul.f32 %v4456_v40, %v5251_v56  ;;  %v1498_v28 = vadd.f32 %v5145_v60, %v1398_v36  ;;  %v1714_v6 = vadd.f32 %v5213_v8, %v1614_v25  ;;  %v5347_v49 = vmul.f32 %v4486_v53, %v5253_v57  ;;  %v7011_v36 = vld [vmem:[#allocation26_spill] sm:$0xff] }
  0xdf   : > { %891 = vst.msk [vmem:[#allocation2 + $0x70] sm:$0xff] %vm885_vm1, %v784_v10  ;;  %v5351_v9 = vmul.f32 %v4440_v34, %v5060_v63  ;;  %v5353_v44 = vld [vmem:[#allocation2 + $0x167] sm:$0xff]  ;;  %v1815_v23 = vadd.f32 %v5132_v37, %v1715_v5  ;;  %v1598_v55 = vadd.f32 %v1566_v0, %v1497_v3  ;;  %v5358_v60 = vld [vmem:[#allocation2 + $0x16f] sm:$0xff]  ;;  %v1279_v25 = vmul.f32 %v4435_v29, %v5164_v48 }
  0xe0   : > { %7007 = vst [vmem:[#allocation19_spill] sm:$0xff] %v5353_v44  ;;  %v5355_v43 = vld [vmem:[#allocation2 + $0x168] sm:$0xff]  ;;  %v5360_v8 = vld [vmem:[#allocation2 + $0x170] sm:$0xff]  ;;  %v979_v41 = vmul.f32 %v4424_v20, %v5353_v44  ;;  %2169 = vst.msk [vmem:[#allocation2 + $0x160] sm:$0xff] %vm811_vm0, %v6946_v7  ;;  %v1599_v42 = vadd.f32 %v5149_v14, %v1498_v28  ;;  %v980_v37 = vmul.f32 %v4424_v20, %v5358_v60 }
  0xe1   : > { %7008 = vst [vmem:[#allocation16_spill] sm:$0xff] %v5355_v43  ;;  %v5362_v32 = vld [vmem:[#allocation2 + $0x171] sm:$0xff]  ;;  %v1079_v63 = vmul.f32 %v4427_v21, %v5355_v43  ;;  %v1080_v0 = vmul.f32 %v4427_v21, %v5360_v8  ;;  %v5377_v19 = vld [vmem:[#allocation2 + $0x169] sm:$0xff]  ;;  %2700 = vst.msk [vmem:[#allocation2 + $0x160] sm:$0xff] %vm811_vm0, %v6946_v7  ;;  %3855 = vmatprep.subr.mxu0 %v1815_v23  ;;  %v1698_v15 = vadd.f32 %v1666_v50, %v1598_v55 }
  0xe2   : > { %v1180_v39 = vmul.f32 %v4430_v22, %v5362_v32  ;;  %7009 = vst [vmem:[#allocation17_spill] sm:$0xff] %v5377_v19  ;;  %2172 = vst.msk [vmem:[#allocation2 + $0x178] sm:$0xff] %vm811_vm0, %v6946_v7  ;;  %v1179_v2 = vmul.f32 %v4430_v22, %v5377_v19  ;;  %v1699_v50 = vadd.f32 %v5158_v54, %v1599_v42  ;;  %v7012_v10 = vld [vmem:[#allocation24_spill] sm:$0xff] }
  0xe3   : > { %v1111_v14 = vadd.f32 %v1079_v63, %v979_v41  ;;  %2703 = vst.msk [vmem:[#allocation2 + $0x178] sm:$0xff] %vm811_vm0, %v6946_v7  ;;  %2170 = vst.msk [vmem:[#allocation2 + $0x168] sm:$0xff] %vm811_vm0, %v6946_v7  ;;  %v1814_v45 = vadd.f32 %v5226_v4, %v1714_v6  ;;  %v1112_v52 = vadd.f32 %v1080_v0, %v980_v37  ;;  %v7017_v0 = vld [vmem:[#allocation36_spill] sm:$0xff] }
  0xe4   : > { %2171 = vst.msk [vmem:[#allocation2 + $0x170] sm:$0xff] %vm811_vm0, %v6946_v7  ;;  %3231 = vst.msk [vmem:[#allocation2 + $0x160] sm:$0xff] %vm811_vm0, %v6946_v7  ;;  %v5399_v26 = vmul.f32 %v4443_v35, %v5062_v38  ;;  %v5409_v61 = vmul.f32 %v4470_v46, %v5064_v24  ;;  %v1379_v4 = vmul.f32 %v4456_v40, %v5166_v16  ;;  %v7013_v24 = vld [vmem:[#allocation35_spill] sm:$0xff] }
  0xe5   : > { %3234 = vst.msk [vmem:[#allocation2 + $0x178] sm:$0xff] %vm811_vm0, %v6946_v7  ;;  %2701 = vst.msk [vmem:[#allocation2 + $0x168] sm:$0xff] %vm811_vm0, %v6946_v7  ;;  %v1211_v54 = vadd.f32 %v1179_v2, %v1111_v14  ;;  %v1479_v38 = vmul.f32 %v4486_v53, %v7011_v36  ;;  %v1799_v5 = vadd.f32 %v7012_v10, %v1699_v50  ;;  %v5423_v23 = vld [vmem:[#allocation2 + $0x67] sm:$0xff]  ;;  %v732_v10 = vld [vmem:[%s4399_s24 + $0x98] sm:$0xff] }
  0xe6   : > { %2702 = vst.msk [vmem:[#allocation2 + $0x170] sm:$0xff] %vm811_vm0, %v6946_v7  ;;  %7010 = vst [vmem:[#allocation18_spill] sm:$0xff] %v5409_v61  ;;  %v1798_v3 = vadd.f32 %v5298_v13, %v1698_v15  ;;  %v1212_v28 = vadd.f32 %v1180_v39, %v1112_v52  ;;  %v1580_v6 = vmul.f32 %v4440_v34, %v7013_v24  ;;  %v5425_v55 = vld [vmem:[#allocation2 + $0x68] sm:$0xff]  ;;  %v5429_v63 = vld [vmem:[#allocation2 + $0x70] sm:$0xff] }
  0xe7   : > { %3232 = vst.msk [vmem:[#allocation2 + $0x168] sm:$0xff] %vm811_vm0, %v6946_v7  ;;  %3233 = vst.msk [vmem:[#allocation2 + $0x170] sm:$0xff] %vm811_vm0, %v6946_v7  ;;  %v5427_v41 = vld [vmem:[#allocation2 + $0x6f] sm:$0xff]  ;;  %v1311_v37 = vadd.f32 %v1279_v25, %v1211_v54  ;;  %v1680_v13 = vmul.f32 %v4443_v35, %v7017_v0  ;;  %v963_v39 = vmul.f32 %v4424_v20, %v5423_v23  ;;  %3856 = vmatpush3.msra.mxu0 %v1799_v5 }
  0xe8   : > { %7014 = vst [vmem:[#allocation14_spill] sm:$0xff] %v5423_v23  ;;  %7015 = vst [vmem:[#allocation20_spill] sm:$0xff] %v5425_v55  ;;  %v5431_v42 = vld [vmem:[#allocation2 + $0x71] sm:$0xff]  ;;  %v1063_v15 = vmul.f32 %v4427_v21, %v5425_v55  ;;  %v1312_v14 = vadd.f32 %v5303_v47, %v1212_v28  ;;  %v964_v2 = vmul.f32 %v4424_v20, %v5427_v41  ;;  %v5448_v52 = vld [vmem:[#allocation2 + $0x69] sm:$0xff]  ;;  %3857 = vmatprep.subr.mxu0 %v1814_v45 }
  0xe9   : > { %7016 = vst [vmem:[#allocation34_spill] sm:$0xff] %v5431_v42  ;;  %2137 = vst.msk [vmem:[#allocation2 + $0x60] sm:$0xff] %vm811_vm0, %v6946_v7  ;;  %v1064_v25 = vmul.f32 %v4427_v21, %v5429_v63  ;;  %v1164_v50 = vmul.f32 %v4430_v22, %v5431_v42  ;;  %v731_v54 = vld [vmem:[%s4399_s24 + $0x90] sm:$0xff]  ;;  %v1411_v5 = vadd.f32 %v1379_v4, %v1311_v37  ;;  %v7019_v28 = vld [vmem:[#allocation27_spill] sm:$0xff]  ;;  %3858 = vmatpush3.msra.mxu0 %v1798_v3 }
  0xea   : > { %7018 = vst [vmem:[#allocation29_spill] sm:$0xff] %v5448_v52  ;;  %2140 = vst.msk [vmem:[#allocation2 + $0x78] sm:$0xff] %vm811_vm0, %v6946_v7  ;;  %v1095_v24 = vadd.f32 %v1063_v15, %v963_v39  ;;  %v1163_v47 = vmul.f32 %v4430_v22, %v5448_v52  ;;  %v1263_v0 = vmul.f32 %v4435_v29, %v7019_v28  ;;  %v7020_v37 = vld [vmem:[#allocation37_spill] sm:$0xff]  ;;  %v7021_v15 = vld [vmem:[#allocation28_spill] sm:$0xff] }
  0xeb   : > { %2671 = vst.msk [vmem:[#allocation2 + $0x78] sm:$0xff] %vm811_vm0, %v6946_v7  ;;  %2138 = vst.msk [vmem:[#allocation2 + $0x68] sm:$0xff] %vm811_vm0, %v6946_v7  ;;  %v1412_v45 = vadd.f32 %v5308_v59, %v1312_v14  ;;  %v1096_v4 = vadd.f32 %v1064_v25, %v964_v2  ;;  %v1780_v39 = vmul.f32 %v4470_v46, %v7020_v37  ;;  %v7022_v2 = vld [vmem:[#allocation31_spill] sm:$0xff]  ;;  %v7023_v37 = vld [vmem:[#allocation38_spill] sm:$0xff] }
  0xec   : > { %2139 = vst.msk [vmem:[#allocation2 + $0x70] sm:$0xff] %vm811_vm0, %v6946_v7  ;;  %v1363_v28 = vmul.f32 %v4456_v40, %v7021_v15  ;;  %3202 = vst.msk [vmem:[#allocation2 + $0x78] sm:$0xff] %vm811_vm0, %v6946_v7  ;;  %v1511_v52 = vadd.f32 %v1479_v38, %v1411_v5  ;;  %v1195_v55 = vadd.f32 %v1163_v47, %v1095_v24  ;;  %v715_v7 = vld [vmem:[%s4399_s24 + $0x10] sm:$0xff]  ;;  %v716_v38 = vld [vmem:[%s4399_s24 + $0x18] sm:$0xff] }
  0xed   : > { %v765_v23 = vmul.f32 %v6992_v18, %v731_v54  ;;  %v766_v3 = vmul.f32 %v6992_v18, %v732_v10  ;;  %v1512_v59 = vadd.f32 %v5315_v17, %v1412_v45  ;;  %v1196_v14 = vadd.f32 %v1164_v50, %v1096_v4  ;;  %v7024_v10 = vld [vmem:[#allocation23_spill] sm:$0xff] }
  0xee   : > { %v1463_v25 = vmul.f32 %v4486_v53, %v7022_v2  ;;  %v1564_v36 = vmul.f32 %v4440_v34, %v7023_v37  ;;  %v1612_v16 = vadd.f32 %v1580_v6, %v1511_v52  ;;  %v1295_v15 = vadd.f32 %v1263_v0, %v1195_v55 }
  0xef   : > { %v797_v61 = vmax.f32 %v765_v23, 0.0  ;;  %v798_v22 = vmax.f32 %v766_v3, 0.0  ;;  %v1613_v5 = vadd.f32 %v5321_v30, %v1512_v59  ;;  %v1296_v54 = vadd.f32 %v5336_v1, %v1196_v14 }
  0xf0   : > { %v1664_v17 = vmul.f32 %v4443_v35, %v7024_v10  ;;  %v1764_v50 = vmul.f32 %v4470_v46, %v7004_v31  ;;  %v1712_v24 = vadd.f32 %v1680_v13, %v1612_v16  ;;  %v1395_v47 = vadd.f32 %v1363_v28, %v1295_v15 }
  0xf1   : > { %904 = vst.msk [vmem:[#allocation2 + $0x148] sm:$0xff] %vm885_vm1, %v797_v61  ;;  %905 = vst.msk [vmem:[#allocation2 + $0x150] sm:$0xff] %vm885_vm1, %v798_v22  ;;  %v5490_v6 = vmul.f32 %v4435_v29, %v5358_v60  ;;  %v5494_v30 = vmul.f32 %v4456_v40, %v5360_v8  ;;  %v1713_v1 = vadd.f32 %v5326_v11, %v1613_v5 }
  0xf2   : > { %v1396_v23 = vadd.f32 %v5340_v62, %v1296_v54  ;;  %v749_v31 = vmul.f32 %v6992_v18, %v715_v7  ;;  %v750_v16 = vmul.f32 %v6992_v18, %v716_v38  ;;  %v1812_v55 = vadd.f32 %v1780_v39, %v1712_v24  ;;  %v7027_v38 = vld [vmem:[#allocation15_spill] sm:$0xff] }
  0xf3   : > { %v1495_v61 = vadd.f32 %v1463_v25, %v1395_v47  ;;  %v5502_v22 = vmul.f32 %v4486_v53, %v5362_v32  ;;  %v5506_v13 = vmul.f32 %v4440_v34, %v5179_v33  ;;  %v1813_v52 = vadd.f32 %v5330_v27, %v1713_v1 }
  0xf4   : > { %v1496_v11 = vadd.f32 %v5347_v49, %v1396_v23  ;;  %v781_v28 = vmax.f32 %v749_v31, 0.0  ;;  %v782_v62 = vmax.f32 %v750_v16, 0.0  ;;  %v5512_v7 = vmul.f32 %v4443_v35, %v5181_v58  ;;  %v7032_v16 = vld [vmem:[#allocation25_spill] sm:$0xff] }
  0xf5   : > { %v1596_v0 = vadd.f32 %v1564_v36, %v1495_v61  ;;  %v5516_v45 = vmul.f32 %v4470_v46, %v5183_v51  ;;  %v5520_v4 = vmul.f32 %v4435_v29, %v5427_v41  ;;  %3859 = vmatprep.subr.mxu0 %v1813_v52  ;;  %v5527_v27 = vmul.f32 %v4456_v40, %v5429_v63  ;;  %v7033_v52 = vld [vmem:[#allocation26_spill] sm:$0xff] }
  0xf6   : > { %v1597_v33 = vadd.f32 %v5351_v9, %v1496_v11  ;;  %888 = vst.msk [vmem:[#allocation2 + $0x48] sm:$0xff] %vm885_vm1, %v781_v28  ;;  %889 = vst.msk [vmem:[#allocation2 + $0x50] sm:$0xff] %vm885_vm1, %v782_v62  ;;  %v5531_v58 = vmul.f32 %v4486_v53, %v5431_v42  ;;  %v5535_v51 = vmul.f32 %v4440_v34, %v5249_v12  ;;  %v7030_v24 = vmov 0.0   ;;  %v7035_v28 = vld [vmem:[#allocation14_spill] sm:$0xff]  ;;  %v7045_v42 = vld [vmem:[#allocation28_spill] sm:$0xff] }
  0xf7   : > { %v1696_v49 = vadd.f32 %v1664_v17, %v1596_v0  ;;  %v5539_v9 = vmul.f32 %v4443_v35, %v5251_v56  ;;  %v5543_v36 = vmul.f32 %v4470_v46, %v5253_v57  ;;  %v5547_v39 = vmul.f32 %v4435_v29, %v5353_v44 }
  0xf8   : > { %v1697_v15 = vadd.f32 %v5399_v26, %v1597_v33  ;;  %v5550_v3 = vld [vmem:[#allocation2 + $0x14f] sm:$0xff]  ;;  %v5558_v56 = vmul.f32 %v4456_v40, %v5355_v43  ;;  %v5562_v57 = vmul.f32 %v4486_v53, %v5377_v19  ;;  %v5566_v14 = vmul.f32 %v4440_v34, %v5164_v48  ;;  %v5574_v54 = vld [vmem:[#allocation2 + $0x147] sm:$0xff]  ;;  %v7031_v48 = vld [vmem:[#allocation18_spill] sm:$0xff] }
  0xf9   : > { %7025 = vst [vmem:[#allocation30_spill] sm:$0xff] %v5543_v36  ;;  %7026 = vst [vmem:[#allocation21_spill] sm:$0xff] %v5550_v3  ;;  %v5552_v59 = vld [vmem:[#allocation2 + $0x150] sm:$0xff]  ;;  %v1796_v25 = vadd.f32 %v1764_v50, %v1696_v49  ;;  %v978_v26 = vmul.f32 %v4424_v20, %v5550_v3  ;;  %v5576_v10 = vld [vmem:[#allocation2 + $0x148] sm:$0xff]  ;;  %v977_v47 = vmul.f32 %v4424_v20, %v5574_v54 }
  0xfa   : > { %v5554_v12 = vld [vmem:[#allocation2 + $0x151] sm:$0xff]  ;;  %v1078_v37 = vmul.f32 %v4427_v21, %v5552_v59  ;;  %7028 = vst [vmem:[#allocation22_spill] sm:$0xff] %v5576_v10  ;;  %v5578_v17 = vld [vmem:[#allocation2 + $0x149] sm:$0xff]  ;;  %v1797_v50 = vadd.f32 %v7031_v48, %v1697_v15  ;;  %v1077_v1 = vmul.f32 %v4427_v21, %v5576_v10  ;;  %2165 = vst.msk [vmem:[#allocation2 + $0x140] sm:$0xff] %vm811_vm0, %v7030_v24 }
  0xfb   : > { %v1178_v5 = vmul.f32 %v7027_v38, %v5554_v12  ;;  %7029 = vst [vmem:[#allocation32_spill] sm:$0xff] %v5578_v17  ;;  %2168 = vst.msk [vmem:[#allocation2 + $0x158] sm:$0xff] %vm811_vm0, %v7030_v24  ;;  %v1177_v23 = vmul.f32 %v7027_v38, %v5578_v17  ;;  %v5599_v61 = vmul.f32 %v4443_v35, %v7032_v16  ;;  %v7036_v33 = vld [vmem:[#allocation20_spill] sm:$0xff] }
  0xfc   : > { %2699 = vst.msk [vmem:[#allocation2 + $0x158] sm:$0xff] %vm811_vm0, %v7030_v24  ;;  %2166 = vst.msk [vmem:[#allocation2 + $0x148] sm:$0xff] %vm811_vm0, %v7030_v24  ;;  %v1110_v31 = vadd.f32 %v1078_v37, %v978_v26  ;;  %v5603_v11 = vmul.f32 %v4470_v46, %v7033_v52  ;;  %v1261_v62 = vmul.f32 %v4435_v29, %v7035_v28  ;;  %3860 = vmatpush3.msra.mxu0 %v1797_v50  ;;  %v7037_v15 = vld [vmem:[#allocation40_spill] sm:$0xff]  ;;  %v7038_v37 = vld [vmem:[#allocation42_spill] sm:$0xff] }
  0xfd   : > { %2167 = vst.msk [vmem:[#allocation2 + $0x150] sm:$0xff] %vm811_vm0, %v7030_v24  ;;  %3230 = vst.msk [vmem:[#allocation2 + $0x158] sm:$0xff] %vm811_vm0, %v7030_v24  ;;  %v1109_v0 = vadd.f32 %v1077_v1, %v977_v47  ;;  %v5617_v49 = vmul.f32 %v4456_v40, %v7036_v33  ;;  %v976_v26 = vmul.f32 %v4424_v20, %v7037_v15  ;;  %3861 = vmatprep.subr.mxu0 %v1812_v55  ;;  %v5629_v47 = vld [vmem:[#allocation2 + $0x4f] sm:$0xff]  ;;  %v7040_v15 = vld [vmem:[#allocation27_spill] sm:$0xff] }
  0xfe   : > { %7034 = vst [vmem:[#allocation33_spill] sm:$0xff] %v5603_v11  ;;  %2696 = vst.msk [vmem:[#allocation2 + $0x140] sm:$0xff] %vm811_vm0, %v7030_v24  ;;  %v1076_v48 = vmul.f32 %v4427_v21, %v7038_v37  ;;  %v1210_v50 = vadd.f32 %v1178_v5, %v1110_v31  ;;  %v5631_v1 = vld [vmem:[#allocation2 + $0x50] sm:$0xff]  ;;  %v5641_v33 = vmul.f32 %v4440_v34, %v7040_v15  ;;  %v7041_v28 = vld [vmem:[#allocation39_spill] sm:$0xff]  ;;  %3862 = vmatpush3.msra.mxu0 %v1796_v25 }
  0xff   : > { %2697 = vst.msk [vmem:[#allocation2 + $0x148] sm:$0xff] %vm811_vm0, %v7030_v24  ;;  %2698 = vst.msk [vmem:[#allocation2 + $0x150] sm:$0xff] %vm811_vm0, %v7030_v24  ;;  %v5633_v16 = vld [vmem:[#allocation2 + $0x51] sm:$0xff]  ;;  %v1176_v19 = vmul.f32 %v7027_v38, %v7041_v28  ;;  %v962_v55 = vmul.f32 %v4424_v20, %v5629_v47  ;;  %v1062_v5 = vmul.f32 %v4427_v21, %v5631_v1  ;;  %v5653_v44 = vld [vmem:[#allocation2 + $0x48] sm:$0xff] }
 0x100   : > { %3227 = vst.msk [vmem:[#allocation2 + $0x140] sm:$0xff] %vm811_vm0, %v7030_v24  ;;  %3228 = vst.msk [vmem:[#allocation2 + $0x148] sm:$0xff] %vm811_vm0, %v7030_v24  ;;  %v7039_v52 = vld [vmem:[#allocation29_spill] sm:$0xff]  ;;  %v1162_v31 = vmul.f32 %v7027_v38, %v5633_v16  ;;  %v1209_v43 = vadd.f32 %v1177_v23, %v1109_v0  ;;  %v1310_v25 = vadd.f32 %v5490_v6, %v1210_v50 }
 0x101   : > { %3229 = vst.msk [vmem:[#allocation2 + $0x150] sm:$0xff] %vm811_vm0, %v7030_v24  ;;  %v5637_v37 = vmul.f32 %v4486_v53, %v7039_v52  ;;  %v5651_v52 = vld [vmem:[#allocation2 + $0x47] sm:$0xff]  ;;  %7043 = vst [vmem:[#allocation35_spill] sm:$0xff] %v5653_v44  ;;  %v1061_v17 = vmul.f32 %v4427_v21, %v5653_v44  ;;  %v1094_v6 = vadd.f32 %v1062_v5, %v962_v55 }
 0x102   : > { %7042 = vst [vmem:[#allocation24_spill] sm:$0xff] %v5651_v52  ;;  %v5655_v15 = vld [vmem:[#allocation2 + $0x49] sm:$0xff]  ;;  %2136 = vst.msk [vmem:[#allocation2 + $0x58] sm:$0xff] %vm811_vm0, %v7030_v24  ;;  %v961_v28 = vmul.f32 %v4424_v20, %v5651_v52  ;;  %v1309_v0 = vadd.f32 %v5547_v39, %v1209_v43  ;;  %v1108_v50 = vadd.f32 %v1076_v48, %v976_v26 }
 0x103   : > { %7044 = vst [vmem:[#allocation36_spill] sm:$0xff] %v5655_v15  ;;  %v1161_v23 = vmul.f32 %v7027_v38, %v5655_v15  ;;  %2667 = vst.msk [vmem:[#allocation2 + $0x58] sm:$0xff] %vm811_vm0, %v7030_v24  ;;  %v1276_v44 = vmul.f32 %v4435_v29, %v5550_v3  ;;  %v713_v15 = vld [vmem:[%s4399_s24] sm:$0xff]  ;;  %v714_v52 = vld [vmem:[%s4399_s24 + $0x8] sm:$0xff]  ;;  %v1410_v36 = vadd.f32 %v5494_v30, %v1310_v25 }
 0x104   : > { %2134 = vst.msk [vmem:[#allocation2 + $0x48] sm:$0xff] %vm811_vm0, %v7030_v24  ;;  %2133 = vst.msk [vmem:[#allocation2 + $0x40] sm:$0xff] %vm811_vm0, %v7030_v24  ;;  %v1093_v10 = vadd.f32 %v1061_v17, %v961_v28  ;;  %v1662_v11 = vmul.f32 %v4443_v35, %v7045_v42  ;;  %v1762_v55 = vmul.f32 %v4470_v46, %v7022_v2 }
 0x105   : > { %2135 = vst.msk [vmem:[#allocation2 + $0x50] sm:$0xff] %vm811_vm0, %v7030_v24  ;;  %3198 = vst.msk [vmem:[#allocation2 + $0x58] sm:$0xff] %vm811_vm0, %v7030_v24  ;;  %v1194_v5 = vadd.f32 %v1162_v31, %v1094_v6  ;;  %v1409_v43 = vadd.f32 %v5558_v56, %v1309_v0  ;;  %v1208_v39 = vadd.f32 %v1176_v19, %v1108_v50 }
 0x106   : > { %v1376_v26 = vmul.f32 %v4456_v40, %v5552_v59  ;;  %v1510_v48 = vadd.f32 %v5502_v22, %v1410_v36  ;;  %v1193_v3 = vadd.f32 %v1161_v23, %v1093_v10  ;;  %v747_v24 = vmul.f32 %v6992_v18, %v713_v15  ;;  %v7047_v15 = vld [vmem:[#allocation43_spill] sm:$0xff] }
 0x107   : > { %v748_v30 = vmul.f32 %v6992_v18, %v714_v52  ;;  %v1294_v17 = vadd.f32 %v5520_v4, %v1194_v5  ;;  %v1509_v42 = vadd.f32 %v5562_v57, %v1409_v43  ;;  %v1308_v28 = vadd.f32 %v1276_v44, %v1208_v39  ;;  %v7049_v39 = vld [vmem:[#allocation33_spill] sm:$0xff] }
 0x108   : > { %v1476_v2 = vmul.f32 %v4486_v53, %v5554_v12  ;;  %v1611_v19 = vadd.f32 %v5506_v13, %v1510_v48  ;;  %v1293_v56 = vadd.f32 %v1261_v62, %v1193_v3  ;;  %v779_v31 = vmax.f32 %v747_v24, 0.0  ;;  %v7046_v24 = vld [vmem:[#allocation41_spill] sm:$0xff]  ;;  %v7050_v48 = vld [vmem:[#allocation34_spill] sm:$0xff] }
 0x109   : > { %v780_v25 = vmax.f32 %v748_v30, 0.0  ;;  %v1394_v22 = vadd.f32 %v5527_v27, %v1294_v17  ;;  %v1610_v36 = vadd.f32 %v5566_v14, %v1509_v42  ;;  %v1408_v10 = vadd.f32 %v1376_v26, %v1308_v28  ;;  %v7051_v30 = vld [vmem:[#allocation22_spill] sm:$0xff] }
 0x10a   : > { %v1577_v18 = vmul.f32 %v4440_v34, %v5358_v60  ;;  %v1711_v4 = vadd.f32 %v5512_v7, %v1611_v19  ;;  %v1393_v44 = vadd.f32 %v5617_v49, %v1293_v56  ;;  %v1677_v57 = vmul.f32 %v4443_v35, %v5360_v8  ;;  %886 = vst.msk [vmem:[#allocation2 + $0x28] sm:$0xff] %vm885_vm1, %v779_v31  ;;  %v7052_v17 = vld [vmem:[#allocation30_spill] sm:$0xff]  ;;  %v7053_v31 = vld [vmem:[#allocation32_spill] sm:$0xff] }
 0x10b   : > { %v1777_v13 = vmul.f32 %v4470_v46, %v5362_v32  ;;  %887 = vst.msk [vmem:[#allocation2 + $0x30] sm:$0xff] %vm885_vm1, %v780_v25  ;;  %v1494_v27 = vadd.f32 %v5531_v58, %v1394_v22  ;;  %v1508_v3 = vadd.f32 %v1476_v2, %v1408_v10  ;;  %v5712_v60 = vmul.f32 %v4435_v29, %v5629_v47 }
 0x10c   : > { %v5716_v7 = vmul.f32 %v4456_v40, %v5631_v1  ;;  %v1811_v8 = vadd.f32 %v5516_v45, %v1711_v4  ;;  %v1710_v14 = vadd.f32 %v5599_v61, %v1610_v36  ;;  %v1493_v32 = vadd.f32 %v5637_v37, %v1393_v44 }
 0x10d   : > { %v975_v62 = vmul.f32 %v4424_v20, %v7046_v24  ;;  %v1595_v58 = vadd.f32 %v5535_v51, %v1494_v27  ;;  %v1609_v49 = vadd.f32 %v1577_v18, %v1508_v3  ;;  %v5726_v52 = vmul.f32 %v4486_v53, %v5633_v16  ;;  %v7048_v51 = vld [vmem:[#allocation44_spill] sm:$0xff] }
 0x10e   : > { %v1075_v23 = vmul.f32 %v4427_v21, %v7047_v15  ;;  %3863 = vmatprep.subr.mxu0 %v1811_v8  ;;  %v1594_v45 = vadd.f32 %v5641_v33, %v1493_v32  ;;  %v5733_v61 = vmul.f32 %v4440_v34, %v5427_v41  ;;  %v5737_v37 = vmul.f32 %v4443_v35, %v5429_v63 }
 0x10f   : > { %v1175_v6 = vmul.f32 %v7027_v38, %v7048_v51  ;;  %v1695_v0 = vadd.f32 %v5539_v9, %v1595_v58  ;;  %v1709_v50 = vadd.f32 %v1677_v57, %v1609_v49  ;;  %v1275_v43 = vmul.f32 %v4435_v29, %v5574_v54  ;;  %v7057_v49 = vld [vmem:[#allocation17_spill] sm:$0xff] }
 0x110   : > { %v1107_v5 = vadd.f32 %v1075_v23, %v975_v62  ;;  %v1810_v33 = vadd.f32 %v7049_v39, %v1710_v14  ;;  %v1694_v26 = vadd.f32 %v1662_v11, %v1594_v45  ;;  %v5747_v41 = vmul.f32 %v4470_v46, %v7050_v48  ;;  %v7055_v14 = vld [vmem:[#allocation19_spill] sm:$0xff]  ;;  %v7056_v62 = vld [vmem:[#allocation16_spill] sm:$0xff]  ;;  %v7061_v48 = vld [vmem:[#allocation46_spill] sm:$0xff] }
 0x111   : > { %v1375_v63 = vmul.f32 %v4456_v40, %v7051_v30  ;;  %v1795_v42 = vadd.f32 %v7052_v17, %v1695_v0  ;;  %v1809_v28 = vadd.f32 %v1777_v13, %v1709_v50  ;;  %v1475_v25 = vmul.f32 %v4486_v53, %v7053_v31  ;;  %v5763_v18 = vld [vmem:[#allocation2 + $0x27] sm:$0xff] }
 0x112   : > { %v924_v2 = vld [vmem:[#allocation2 + $0x2f] sm:$0xff]  ;;  %v1207_v56 = vadd.f32 %v1175_v6, %v1107_v5  ;;  %v1794_v11 = vadd.f32 %v1762_v55, %v1694_v26  ;;  %v7054_v57 = vmov 0.0   ;;  %v959_v55 = vmul.f32 %v4424_v20, %v5763_v18  ;;  %v7059_v5 = vld [vmem:[#allocation35_spill] sm:$0xff] }
 0x113   : > { %v5752_v9 = vld [vmem:[#allocation2 + $0x30] sm:$0xff]  ;;  %v960_v22 = vmul.f32 %v4424_v20, %v924_v2  ;;  %v5765_v4 = vld [vmem:[#allocation2 + $0x28] sm:$0xff]  ;;  %3864 = vmatpush3.msra.mxu0 %v1795_v42  ;;  %2129 = vst.msk [vmem:[#allocation2 + $0x20] sm:$0xff] %vm811_vm0, %v7054_v57  ;;  %v1576_v32 = vmul.f32 %v4440_v34, %v7055_v14  ;;  %v1676_v58 = vmul.f32 %v4443_v35, %v7056_v62  ;;  %v7062_v42 = vld [vmem:[#allocation47_spill] sm:$0xff] }
 0x114   : > { %v5754_v19 = vld [vmem:[#allocation2 + $0x31] sm:$0xff]  ;;  %v1060_v36 = vmul.f32 %v4427_v21, %v5752_v9  ;;  %v5767_v44 = vld [vmem:[#allocation2 + $0x29] sm:$0xff]  ;;  %v1307_v13 = vadd.f32 %v1275_v43, %v1207_v56  ;;  %v1059_v27 = vmul.f32 %v4427_v21, %v5765_v4  ;;  %3865 = vmatprep.subr.mxu0 %v1810_v33  ;;  %v1776_v23 = vmul.f32 %v4470_v46, %v7057_v49 }
 0x115   : > { %v1160_v10 = vmul.f32 %v7027_v38, %v5754_v19  ;;  %2132 = vst.msk [vmem:[#allocation2 + $0x38] sm:$0xff] %vm811_vm0, %v7054_v57  ;;  %v1159_v3 = vmul.f32 %v7027_v38, %v5767_v44  ;;  %2130 = vst.msk [vmem:[#allocation2 + $0x28] sm:$0xff] %vm811_vm0, %v7054_v57  ;;  %3866 = vmatpush3.msra.mxu0 %v1794_v11  ;;  %v7058_v0 = vld [vmem:[#allocation24_spill] sm:$0xff]  ;;  %v1359_v43 = vmul.f32 %v4456_v40, %v7059_v5  ;;  %v7060_v33 = vld [vmem:[#allocation45_spill] sm:$0xff] }
 0x116   : > { %2663 = vst.msk [vmem:[#allocation2 + $0x38] sm:$0xff] %vm811_vm0, %v7054_v57  ;;  %2131 = vst.msk [vmem:[#allocation2 + $0x30] sm:$0xff] %vm811_vm0, %v7054_v57  ;;  %v1092_v8 = vadd.f32 %v1060_v36, %v960_v22  ;;  %v1407_v45 = vadd.f32 %v1375_v63, %v1307_v13  ;;  %v1091_v6 = vadd.f32 %v1059_v27, %v959_v55  ;;  %3867 = vmatprep.subr.mxu0 %v1809_v28  ;;  %v7063_v22 = vld [vmem:[#allocation36_spill] sm:$0xff]  ;;  %v7064_v13 = vld [vmem:[#allocation14_spill] sm:$0xff] }
 0x117   : > { %3194 = vst.msk [vmem:[#allocation2 + $0x38] sm:$0xff] %vm811_vm0, %v7054_v57  ;;  %v1259_v50 = vmul.f32 %v4435_v29, %v7058_v0  ;;  %v974_v26 = vmul.f32 %v4424_v20, %v7060_v33  ;;  %v1074_v17 = vmul.f32 %v4427_v21, %v7061_v48  ;;  %v1174_v56 = vmul.f32 %v7027_v38, %v7062_v42  ;;  %v7066_v14 = vld [vmem:[#allocation40_spill] sm:$0xff]  ;;  %v7067_v48 = vld [vmem:[#allocation29_spill] sm:$0xff] }
 0x118   : > { %v1192_v39 = vadd.f32 %v1160_v10, %v1092_v8  ;;  %v1507_v11 = vadd.f32 %v1475_v25, %v1407_v45  ;;  %v1191_v63 = vadd.f32 %v1159_v3, %v1091_v6  ;;  %v1459_v36 = vmul.f32 %v4486_v53, %v7063_v22  ;;  %v7065_v10 = vld [vmem:[#allocation20_spill] sm:$0xff]  ;;  %v7068_v3 = vld [vmem:[#allocation42_spill] sm:$0xff] }
 0x119   : > { %v1560_v55 = vmul.f32 %v4440_v34, %v7064_v13  ;;  %v1660_v27 = vmul.f32 %v4443_v35, %v7065_v10  ;;  %v1106_v8 = vadd.f32 %v1074_v17, %v974_v26  ;;  %v1274_v62 = vmul.f32 %v4435_v29, %v7066_v14  ;;  %v7069_v13 = vld [vmem:[#allocation48_spill] sm:$0xff]  ;;  %v7071_v10 = vld [vmem:[#allocation39_spill] sm:$0xff] }
 0x11a   : > { %v1292_v28 = vadd.f32 %v5712_v60, %v1192_v39  ;;  %v1608_v49 = vadd.f32 %v1576_v32, %v1507_v11  ;;  %v1291_v33 = vadd.f32 %v1259_v50, %v1191_v63  ;;  %v1760_v25 = vmul.f32 %v4470_v46, %v7067_v48  ;;  %v7070_v39 = vld [vmem:[#allocation54_spill] sm:$0xff]  ;;  %v7072_v50 = vld [vmem:[#allocation21_spill] sm:$0xff] }
 0x11b   : > { %v1374_v45 = vmul.f32 %v4456_v40, %v7068_v3  ;;  %v1206_v42 = vadd.f32 %v1174_v56, %v1106_v8  ;;  %v958_v60 = vmul.f32 %v4424_v20, %v7069_v13  ;;  %v1058_v26 = vmul.f32 %v4427_v21, %v7070_v39  ;;  %v7073_v63 = vld [vmem:[#allocation49_spill] sm:$0xff] }
 0x11c   : > { %v1392_v6 = vadd.f32 %v5716_v7, %v1292_v28  ;;  %v1391_v17 = vadd.f32 %v1359_v43, %v1291_v33  ;;  %v1474_v32 = vmul.f32 %v4486_v53, %v7071_v10  ;;  %v1575_v11 = vmul.f32 %v4440_v34, %v7072_v50 }
 0x11d   : > { %v1158_v14 = vmul.f32 %v7027_v38, %v7073_v63  ;;  %v1306_v7 = vadd.f32 %v1274_v62, %v1206_v42  ;;  %v1090_v56 = vadd.f32 %v1058_v26, %v958_v60  ;;  %v1258_v28 = vmul.f32 %v4435_v29, %v924_v2  ;;  %v7074_v2 = vld [vmem:[#allocation50_spill] sm:$0xff] }
 0x11e   : > { %v1492_v48 = vadd.f32 %v5726_v52, %v1392_v6  ;;  %v1708_v8 = vadd.f32 %v1676_v58, %v1608_v49  ;;  %v1491_v3 = vadd.f32 %v1459_v36, %v1391_v17  ;;  %v1675_v43 = vmul.f32 %v4443_v35, %v5552_v59  ;;  %v7075_v36 = vld [vmem:[#allocation51_spill] sm:$0xff] }
 0x11f   : > { %v1775_v33 = vmul.f32 %v4470_v46, %v5554_v12  ;;  %v1406_v39 = vadd.f32 %v1374_v45, %v1306_v7  ;;  %v1190_v10 = vadd.f32 %v1158_v14, %v1090_v56  ;;  %v1358_v50 = vmul.f32 %v4456_v40, %v5752_v9  ;;  %v7077_v7 = vld [vmem:[#allocation53_spill] sm:$0xff]  ;;  %v7079_v56 = vld [vmem:[#allocation56_spill] sm:$0xff] }
 0x120   : > { %v1593_v13 = vadd.f32 %v5733_v61, %v1492_v48  ;;  %v1592_v52 = vadd.f32 %v1560_v55, %v1491_v3  ;;  %v1458_v62 = vmul.f32 %v4486_v53, %v5754_v19  ;;  %v973_v58 = vmul.f32 %v4424_v20, %v7074_v2  ;;  %v7076_v61 = vld [vmem:[#allocation52_spill] sm:$0xff] }
 0x121   : > { %v1073_v59 = vmul.f32 %v4427_v21, %v7075_v36  ;;  %v1506_v12 = vadd.f32 %v1474_v32, %v1406_v39  ;;  %v1290_v6 = vadd.f32 %v1258_v28, %v1190_v10  ;;  %v1173_v45 = vmul.f32 %v7027_v38, %v7076_v61  ;;  %v1834_v61 = vld [vmem:[%s6972_s4 + $0x60] sm:$0xff] }
 0x122   : > { %v1693_v49 = vadd.f32 %v5737_v37, %v1593_v13  ;;  %v1808_v42 = vadd.f32 %v1776_v23, %v1708_v8  ;;  %v1692_v60 = vadd.f32 %v1660_v27, %v1592_v52  ;;  %v1273_v55 = vmul.f32 %v4435_v29, %v7046_v24 }
 0x123   : > { %v1105_v9 = vadd.f32 %v1073_v59, %v973_v58  ;;  %v1607_v26 = vadd.f32 %v1575_v11, %v1506_v12  ;;  %v1390_v17 = vadd.f32 %v1358_v50, %v1290_v6  ;;  %v1559_v63 = vmul.f32 %v4440_v34, %v5629_v47  ;;  %v7078_v47 = vld [vmem:[#allocation55_spill] sm:$0xff]  ;;  %v1832_v12 = vld [vmem:[%s6972_s4 + $0x50] sm:$0xff]  ;;  %v1835_v6 = vld [vmem:[%s6972_s4 + $0x68] sm:$0xff] }
 0x124   : > { %v1793_v19 = vadd.f32 %v5747_v41, %v1693_v49  ;;  %v1792_v14 = vadd.f32 %v1760_v25, %v1692_v60  ;;  %v1373_v32 = vmul.f32 %v4456_v40, %v7047_v15  ;;  %v1659_v27 = vmul.f32 %v4443_v35, %v5631_v1  ;;  %v1830_v59 = vld [vmem:[%s6972_s4 + $0x40] sm:$0xff]  ;;  %v1833_v49 = vld [vmem:[%s6972_s4 + $0x58] sm:$0xff] }
 0x125   : > { %v1205_v37 = vadd.f32 %v1173_v45, %v1105_v9  ;;  %v1707_v48 = vadd.f32 %v1675_v43, %v1607_v26  ;;  %v1490_v23 = vadd.f32 %v1458_v62, %v1390_v17  ;;  %v957_v24 = vmul.f32 %v4424_v20, %v7077_v7  ;;  %v1837_v45 = vld [vmem:[%s6972_s4 + $0x78] sm:$0xff]  ;;  %v1943_v60 = vld [vmem:[%s7080_s3] sm:$0xf]  ;;  %s3842_s3 = sshll.u32 %s7087_s23, 6 }
 0x126   : > { %3868 = vmatpush3.msra.mxu0 %v1793_v19  ;;  %v1473_v11 = vmul.f32 %v4486_v53, %v7048_v51  ;;  %v1057_v25 = vmul.f32 %v4427_v21, %v7078_v47  ;;  %v1157_v15 = vmul.f32 %v7027_v38, %v7079_v56  ;;  %v1759_v1 = vmul.f32 %v4470_v46, %v5633_v16 }
 0x127   : > { %3869 = vmatprep.subr.mxu0 %v1808_v42  ;;  %v1305_v41 = vadd.f32 %v1273_v55, %v1205_v37  ;;  %v1807_v28 = vadd.f32 %v1775_v33, %v1707_v48  ;;  %v1591_v8 = vadd.f32 %v1559_v63, %v1490_v23  ;;  %v1574_v20 = vmul.f32 %v4440_v34, %v5574_v54  ;;  %v1836_v42 = vld [vmem:[%s6972_s4 + $0x70] sm:$0xff] }
 0x128   : > { %3870 = vmatpush3.msra.mxu0 %v1792_v14  ;;  %v1089_v43 = vadd.f32 %v1057_v25, %v957_v24  ;;  %v1257_v51 = vmul.f32 %v4435_v29, %v5763_v18  ;;  %v1674_v38 = vmul.f32 %v4443_v35, %v7051_v30  ;;  %v1357_v33 = vmul.f32 %v4456_v40, %v5765_v4 }
 0x129   : > { %v1405_v3 = vadd.f32 %v1373_v32, %v1305_v41  ;;  %3871 = vmatprep.subr.mxu0 %v1807_v28  ;;  %v1691_v13 = vadd.f32 %v1659_v27, %v1591_v8  ;;  %v1774_v50 = vmul.f32 %v4470_v46, %v7053_v31  ;;  %v1457_v52 = vmul.f32 %v4486_v53, %v5767_v44  ;;  %v1822_v53 = vld [vmem:[%s6972_s4] sm:$0xff] }
 0x12a   : > { %v1189_v39 = vadd.f32 %v1157_v15, %v1089_v43  ;;  %v1558_v62 = vmul.f32 %v4440_v34, %v7058_v0  ;;  %v1658_v40 = vmul.f32 %v4443_v35, %v7059_v5  ;;  %v1758_v31 = vmul.f32 %v4470_v46, %v7063_v22  ;;  %v1825_v34 = vld [vmem:[%s6972_s4 + $0x18] sm:$0xff]  ;;  %v1824_v35 = vld [vmem:[%s6972_s4 + $0x10] sm:$0xff]  ;;  %v1827_v46 = vld [vmem:[%s6972_s4 + $0x28] sm:$0xff]  ;;  %3935 = vmatprep.subr.msk.mxu1 %vm1968_vm2, %v1943_v60 }
 0x12b   : > { %v1505_v21 = vadd.f32 %v1473_v11, %v1405_v3  ;;  %v1791_v10 = vadd.f32 %v1759_v1, %v1691_v13  ;;  %v1826_v44 = vld [vmem:[%s6972_s4 + $0x20] sm:$0xff]  ;;  %v1829_v0 = vld [vmem:[%s6972_s4 + $0x38] sm:$0xff]  ;;  %v1828_v5 = vld [vmem:[%s6972_s4 + $0x30] sm:$0xff]  ;;  %3936 = vmatpush3.msk.msra.mxu1 %vm1968_vm2, %v1943_v60 }
 0x12c   : > { %v1289_v54 = vadd.f32 %v1257_v51, %v1189_v39  ;;  %v1831_v22 = vld [vmem:[%s6972_s4 + $0x48] sm:$0xff]  ;;  %v2460_v13 = vld [vmem:[%s6810_s9] sm:$0xff] }
 0x12d   : > { %v1606_v16 = vadd.f32 %v1574_v20, %v1505_v21  ;;  %3872 = vmatpush3.msra.mxu0 %v1791_v10  ;;  %v2208_v20 = vld [vmem:[#allocation2 + $0x7] sm:$0xff]  ;;  %3949 = vmatprep.subr.mxu1 %v2460_v13  ;;  %v2206_v60 = vld [vmem:[%s6809_s8 + $0x4] sm:$0x7] }
 0x12e   : > { %v1389_v18 = vadd.f32 %v1357_v33, %v1289_v54  ;;  %2656 = vst.msk [vmem:[#allocation2] sm:$0xff] %vm811_vm0, %v7054_v57  ;;  %v2236_v43 = vld [vmem:[#allocation2 + $0x8] sm:$0xff]  ;;  %v5962_v33 = vld [vmem:[%s7081_s5] ss:$0 sm:$0xff] }
 0x12f   : > { %v1706_v29 = vadd.f32 %v1674_v38, %v1606_v16  ;;  %v2264_v51 = vld [vmem:[#allocation2 + $0x9] sm:$0xff]  ;;  %v5967_v16 = vld [vmem:[%s7082_s25] ss:$0 sm:$0xff]  ;;  %s3817_s25 = sld [smem:[#allocation5 + $0x1]] }
 0x130   : > { %v1489_v2 = vadd.f32 %v1457_v52, %v1389_v18  ;;  %2657 = vst.msk [vmem:[#allocation2 + $0x8] sm:$0xff] %vm811_vm0, %v7054_v57  ;;  %2658 = vst.msk [vmem:[#allocation2 + $0x10] sm:$0xff] %vm811_vm0, %v7054_v57  ;;  %v5947_v21 = vld [vmem:[#allocation2 + $0x127] sm:$0xff]  ;;  %v2205_v54 = vld [vmem:[%s6809_s8] sm:$0x7]  ;;  %v5973_v52 = vstv %s2107_s30  ;;  %s6773_s30 = scalar_lea.vmem %s6823_s22, %s3842_s3 }
 0x131   : > { %v1806_v30 = vadd.f32 %v1774_v50, %v1706_v29  ;;  %2692 = vst.msk [vmem:[#allocation2 + $0x120] sm:$0xff] %vm811_vm0, %v7054_v57  ;;  %v5951_v38 = vld [vmem:[#allocation2 + $0x128] sm:$0xff] }
 0x132   : > { %v1590_v4 = vadd.f32 %v1558_v62, %v1489_v2  ;;  %v5953_v39 = vld [vmem:[#allocation2 + $0x129] sm:$0xff] }
 0x133   : > { %3873 = vmatprep.subr.mxu0 %v1806_v30  ;;  %2693 = vst.msk [vmem:[#allocation2 + $0x128] sm:$0xff] %vm811_vm0, %v7054_v57  ;;  %2694 = vst.msk [vmem:[#allocation2 + $0x130] sm:$0xff] %vm811_vm0, %v7054_v57  ;;  %v7083_v30 = vld [vmem:[#allocation11_spill] sm:$0xff] }
 0x134   : > { %v1690_v58 = vadd.f32 %v1658_v40, %v1590_v4  ;;  %v5980_v2 = vrot.slane %v2205_v54, %v7083_v30 }
 0x136   : > { %v1790_v36 = vadd.f32 %v1758_v31, %v1690_v58  ;;  %v7084_v31 = vld [vmem:[#allocation12_spill] sm:$0xff] }
 0x137   : > { %v5988_v58 = vrot.slane %v2205_v54, %v7084_v31 }
 0x138   : > { %3874 = vmatpush3.msra.mxu0 %v1790_v36 }
 0x139   : > { %1903 = vmatmul.mubr.f32.vlgmr.msra.gmra.mxu0 %v1822_v53 }
 0x13a   : > { %1907 = vmatprep.mubr.f32.mxu0 %v1825_v34 }
 0x13d   : > { %1908 = vmatmul.mubr.f32.gmra.mxu0 %v1824_v35  ;;  %v2220_v35 = vmul.f32 %v5980_v2, %v2208_v20 }
 0x13e   : > { %1912 = vmatprep.mubr.f32.mxu0 %v1827_v46 }
 0x141   : > { %1913 = vmatmul.mubr.f32.gmra.mxu0 %v1826_v44 }
 0x142   : > { %1917 = vmatprep.mubr.f32.mxu0 %v1829_v0  ;;  %v2248_v0 = vmul.f32 %v5988_v58, %v2236_v43 }
 0x145   : > { %1918 = vmatmul.mubr.f32.gmra.mxu0 %v1828_v5  ;;  %v7085_v5 = vld [vmem:[#allocation13_spill] sm:$0xff] }
 0x146   : > { %1922 = vmatprep.mubr.f32.mxu0 %v1831_v22  ;;  %v5997_v22 = vrot.slane %v2205_v54, %v7085_v5 }
 0x149   : > { %1923 = vmatmul.mubr.f32.gmra.mxu0 %v1830_v59 }
 0x14a   : > { %1927 = vmatprep.mubr.f32.mxu0 %v1833_v49 }
 0x14d   : > { %1928 = vmatmul.mubr.f32.gmra.mxu0 %v1832_v12 }
 0x14e   : > { %1932 = vmatprep.mubr.f32.mxu0 %v1835_v6 }
 0x151   : > { %1933 = vmatmul.mubr.f32.gmra.mxu0 %v1834_v61 }
 0x152   : > { %1937 = vmatprep.mubr.f32.mxu0 %v1837_v45  ;;  %v2256_v45 = vadd.f32 %v2248_v0, %v2220_v35 }
 0x155   : > { %1938 = vmatmul.mubr.f32.gmra.mxu0 %v1836_v42  ;;  %v2276_v42 = vmul.f32 %v5997_v22, %v2264_v51 }
 0x1f9   : > { %v3875_v9 = vpop.f32.mrf.mxu0 }
 0x1fb   : > { %v3876_v55 = vpop.f32.mrf.mxu0 }
 0x1fc   : > { %v3877_v19 = vadd.f32 %v3876_v55, %v3875_v9 }
 0x1fd   : > { %v3878_v26 = vpop.f32.mrf.mxu0 }
 0x1fe   : > { %3937 = vmatprep.mubr.msk.f32.mxu1 %vm885_vm1, %v3877_v19  ;;  %v2207_v19 = vld [vmem:[%s6809_s8 + $0x8] sm:$0x7] }
 0x1ff   : > { %v3879_v17 = vpop.f32.mrf.mxu0 }
 0x200   : > { %v3880_v63 = vadd.f32 %v3879_v17, %v3878_v26 }
 0x201   : > { %v3881_v14 = vpop.f32.mrf.mxu0 }
 0x202   : > { %3938 = vmatmul.mubr.msk.f32.vlgmr.msra.gmra.mxu1 %vm885_vm1, %v3880_v63 }
 0x203   : > { %v3882_v37 = vpop.f32.mrf.mxu0  ;;  %3950 = vmatpush3.msra.mxu1 %v2460_v13 }
 0x204   : > { %v3883_v32 = vadd.f32 %v3882_v37, %v3881_v14 }
 0x205   : > { %v3884_v48 = vpop.f32.mrf.mxu0 }
 0x206   : > { %3940 = vmatprep.mubr.msk.f32.mxu1 %vm885_vm1, %v3883_v32 }
 0x207   : > { %v3885_v23 = vpop.f32.mrf.mxu0 }
 0x208   : > { %v3886_v27 = vadd.f32 %v3885_v23, %v3884_v48  ;;  %v2284_v48 = vadd.f32 %v2276_v42, %v2256_v45  ;;  %v6023_v23 = vrot.slane %v2206_v60, %v7083_v30 }
 0x209   : > { %v3887_v7 = vpop.f32.mrf.mxu0 }
 0x20a   : > { %3941 = vmatmul.mubr.msk.f32.gmra.mxu1 %vm885_vm1, %v3886_v27 }
 0x20b   : > { %v3888_v24 = vpop.f32.mrf.mxu0 }
 0x20c   : > { %v3889_v41 = vadd.f32 %v3888_v24, %v3887_v7 }
 0x20d   : > { %v3890_v11 = vpop.f32.mrf.mxu0 }
 0x20e   : > { %3943 = vmatprep.mubr.msk.f32.mxu1 %vm885_vm1, %v3889_v41  ;;  %v6032_v41 = vrot.slane %v2206_v60, %v7084_v31 }
 0x20f   : > { %v3891_v47 = vpop.f32.mrf.mxu0 }
 0x210   : > { %v3892_v25 = vadd.f32 %v3891_v47, %v3890_v11  ;;  %v6035_v47 = vrot.slane %v2206_v60, %v7085_v5 }
 0x211   : > { %v3893_v56 = vpop.f32.mrf.mxu0 }
 0x212   : > { %3944 = vmatmul.mubr.msk.f32.gmra.mxu1 %vm885_vm1, %v3892_v25 }
 0x213   : > { %v3894_v15 = vpop.f32.mrf.mxu0 }
 0x214   : > { %v3895_v28 = vadd.f32 %v3894_v15, %v3893_v56 }
 0x215   : > { %v3896_v8 = vpop.f32.mrf.mxu0 }
 0x216   : > { %3946 = vmatprep.mubr.msk.f32.mxu1 %vm885_vm1, %v3895_v28  ;;  %v6044_v28 = vrot.slane %v2207_v19, %v7083_v30 }
 0x217   : > { %v3897_v1 = vpop.f32.mrf.mxu0 }
 0x218   : > { %v3898_v3 = vadd.f32 %v3897_v1, %v3896_v8  ;;  %v6053_v8 = vrot.slane %v2207_v19, %v7084_v31  ;;  %v6056_v1 = vrot.slane %v2207_v19, %v7085_v5 }
 0x21a   : > { %3947 = vmatmul.mubr.msk.f32.gmra.mxu1 %vm885_vm1, %v3898_v3 }
 0x2c2   : > { %v3939_v10 = vpop.f32.mrf.mxu1 }
 0x2c3   : > { %v2085_v50 = vmul.f32 %v3939_v10, %v5962_v33 }
 0x2c4   : > { %v2038_v29 = vpop.f32.mrf.mxu1 }
 0x2c5   : > { %v5976_v18 = vadd.f32 %v5967_v16, %v2085_v50  ;;  %v2084_v62 = vmul.f32 %v5962_v33, %v2038_v29 }
 0x2c7   : > { %v2110_v40 = vmul.f32 %v5973_v52, %v5976_v18  ;;  %v5985_v4 = vadd.f32 %v5967_v16, %v2084_v62 }
 0x2c9   : > { %v2118_v36 = vmax.f32 %v2110_v40, 0.0  ;;  %v2109_v53 = vmul.f32 %v5973_v52, %v5985_v4 }
 0x2ca   : > { %v3942_v34 = vpop.f32.mrf.mxu1 }
 0x2cb   : > { %2198 = vst.msk [vmem:[#allocation2 + $0x48] sm:$0xff] %vm811_vm0, %v2118_v36  ;;  %v2117_v46 = vmax.f32 %v2109_v53, 0.0  ;;  %v2087_v44 = vmul.f32 %v3942_v34, %v5962_v33 }
 0x2cc   : > { %v2048_v59 = vpop.f32.mrf.mxu1 }
 0x2cd   : > { %2197 = vst.msk [vmem:[#allocation2 + $0x28] sm:$0xff] %vm811_vm0, %v2117_v46  ;;  %v6001_v49 = vadd.f32 %v5967_v16, %v2087_v44  ;;  %v2086_v12 = vmul.f32 %v5962_v33, %v2048_v59 }
 0x2cf   : > { %v2112_v6 = vmul.f32 %v5973_v52, %v6001_v49  ;;  %v6007_v61 = vadd.f32 %v5967_v16, %v2086_v12 }
 0x2d1   : > { %v2120_v9 = vmax.f32 %v2112_v6, 0.0  ;;  %v2111_v55 = vmul.f32 %v5973_v52, %v6007_v61 }
 0x2d2   : > { %v3945_v26 = vpop.f32.mrf.mxu1  ;;  %v2376_v17 = vld [vmem:[#allocation2 + $0x47] sm:$0xff] }
 0x2d3   : > { %v2404_v63 = vld [vmem:[#allocation2 + $0x48] sm:$0xff]  ;;  %2200 = vst.msk [vmem:[#allocation2 + $0x88] sm:$0xff] %vm811_vm0, %v2120_v9  ;;  %v2119_v37 = vmax.f32 %v2111_v55, 0.0  ;;  %v2089_v32 = vmul.f32 %v3945_v26, %v5962_v33  ;;  %2664 = vst.msk [vmem:[#allocation2 + $0x40] sm:$0xff] %vm811_vm0, %v7054_v57  ;;  %v2222_v29 = vmul.f32 %v2376_v17, %v5980_v2  ;;  %v2305_v44 = vmul.f32 %v2376_v17, %v6023_v23 }
 0x2d4   : > { %v6018_v14 = vld [vmem:[#allocation2 + $0x49] sm:$0xff]  ;;  %v2058_v27 = vpop.f32.mrf.mxu1  ;;  %v2250_v62 = vmul.f32 %v2404_v63, %v5988_v58  ;;  %v2388_v9 = vmul.f32 %v6044_v28, %v2376_v17  ;;  %v2416_v19 = vmul.f32 %v6053_v8, %v2404_v63 }
 0x2d5   : > { %2665 = vst.msk [vmem:[#allocation2 + $0x48] sm:$0xff] %vm811_vm0, %v7054_v57  ;;  %2666 = vst.msk [vmem:[#allocation2 + $0x50] sm:$0xff] %vm811_vm0, %v7054_v57  ;;  %v2209_v7 = vld [vmem:[#allocation2 + $0x27] sm:$0xff]  ;;  %v6039_v25 = vadd.f32 %v5967_v16, %v2089_v32  ;;  %v2088_v56 = vmul.f32 %v5962_v33, %v2058_v27  ;;  %v2278_v17 = vmul.f32 %v6018_v14, %v5997_v22 }
 0x2d6   : > { %v2320_v24 = vld [vmem:[#allocation2 + $0x28] sm:$0xff]  ;;  %2199 = vst.msk [vmem:[#allocation2 + $0x68] sm:$0xff] %vm811_vm0, %v2119_v37  ;;  %v2304_v15 = vmul.f32 %v6023_v23, %v2209_v7  ;;  %2660 = vst.msk [vmem:[#allocation2 + $0x20] sm:$0xff] %vm811_vm0, %v7054_v57  ;;  %v2221_v3 = vmul.f32 %v5980_v2, %v2209_v7  ;;  %v2258_v0 = vadd.f32 %v2250_v62, %v2222_v29 }
 0x2d7   : > { %v2348_v11 = vld [vmem:[#allocation2 + $0x29] sm:$0xff]  ;;  %v2249_v20 = vmul.f32 %v2320_v24, %v5988_v58  ;;  %v2114_v43 = vmul.f32 %v5973_v52, %v6039_v25  ;;  %v6063_v51 = vadd.f32 %v5967_v16, %v2088_v56  ;;  %v2332_v10 = vmul.f32 %v6032_v41, %v2320_v24 }
 0x2d8   : > { %2661 = vst.msk [vmem:[#allocation2 + $0x28] sm:$0xff] %vm811_vm0, %v7054_v57  ;;  %2662 = vst.msk [vmem:[#allocation2 + $0x30] sm:$0xff] %vm811_vm0, %v7054_v57  ;;  %v2312_v13 = vadd.f32 %v2304_v15, %v2284_v48  ;;  %v2277_v54 = vmul.f32 %v2348_v11, %v5997_v22  ;;  %v2360_v34 = vmul.f32 %v6035_v47, %v2348_v11 }
 0x2d9   : > { %v2257_v50 = vadd.f32 %v2249_v20, %v2221_v3  ;;  %v2122_v40 = vmax.f32 %v2114_v43, 0.0  ;;  %v2113_v36 = vmul.f32 %v5973_v52, %v6063_v51  ;;  %v2333_v37 = vmul.f32 %v2404_v63, %v6032_v41 }
 0x2da   : > { %v2340_v53 = vadd.f32 %v2332_v10, %v2312_v13  ;;  %v3948_v35 = vpop.f32.mrf.mxu1  ;;  %v6073_v59 = vld [vmem:[#allocation2 + $0x87] sm:$0xff]  ;;  %v2444_v56 = vmul.f32 %v6056_v1, %v6018_v14  ;;  %v2361_v15 = vmul.f32 %v6018_v14, %v6035_v47  ;;  %v2286_v3 = vadd.f32 %v2278_v17, %v2258_v0 }
 0x2db   : > { %v2285_v46 = vadd.f32 %v2277_v54, %v2257_v50  ;;  %v6075_v12 = vld [vmem:[#allocation2 + $0x88] sm:$0xff]  ;;  %2202 = vst.msk [vmem:[#allocation2 + $0xc8] sm:$0xff] %vm811_vm0, %v2122_v40  ;;  %v2121_v45 = vmax.f32 %v2113_v36, 0.0  ;;  %v2091_v42 = vmul.f32 %v3948_v35, %v5962_v33  ;;  %2672 = vst.msk [vmem:[#allocation2 + $0x80] sm:$0xff] %vm811_vm0, %v7054_v57 }
 0x2dc   : > { %v6077_v6 = vld [vmem:[#allocation2 + $0x89] sm:$0xff]  ;;  %v2368_v60 = vadd.f32 %v2360_v34, %v2340_v53  ;;  %v2068_v55 = vpop.f32.mrf.mxu1  ;;  %v2418_v17 = vmul.f32 %v6053_v8, %v6075_v12 }
 0x2dd   : > { %2673 = vst.msk [vmem:[#allocation2 + $0x88] sm:$0xff] %vm811_vm0, %v7054_v57  ;;  %2674 = vst.msk [vmem:[#allocation2 + $0x90] sm:$0xff] %vm811_vm0, %v7054_v57  ;;  %v2313_v26 = vadd.f32 %v2305_v44, %v2285_v46  ;;  %v2377_v32 = vld [vmem:[#allocation2 + $0x67] sm:$0xff]  ;;  %v6094_v7 = vadd.f32 %v5967_v16, %v2091_v42  ;;  %v2090_v24 = vmul.f32 %v5962_v33, %v2068_v55 }
 0x2de   : > { %v2405_v48 = vld [vmem:[#allocation2 + $0x68] sm:$0xff]  ;;  %2201 = vst.msk [vmem:[#allocation2 + $0xa8] sm:$0xff] %vm811_vm0, %v2121_v45  ;;  %v2396_v11 = vadd.f32 %v2388_v9, %v2368_v60  ;;  %2668 = vst.msk [vmem:[#allocation2 + $0x60] sm:$0xff] %vm811_vm0, %v7054_v57  ;;  %v2306_v33 = vmul.f32 %v2377_v32, %v6023_v23  ;;  %v2389_v10 = vmul.f32 %v6044_v28, %v2377_v32 }
 0x2df   : > { %v2433_v27 = vld [vmem:[#allocation2 + $0x69] sm:$0xff]  ;;  %v2341_v63 = vadd.f32 %v2333_v37, %v2313_v26  ;;  %v2116_v20 = vmul.f32 %v5973_v52, %v6094_v7  ;;  %v6111_v43 = vadd.f32 %v5967_v16, %v2090_v24  ;;  %v2417_v54 = vmul.f32 %v6053_v8, %v2405_v48 }
 0x2e0   : > { %2669 = vst.msk [vmem:[#allocation2 + $0x68] sm:$0xff] %vm811_vm0, %v7054_v57  ;;  %2670 = vst.msk [vmem:[#allocation2 + $0x70] sm:$0xff] %vm811_vm0, %v7054_v57  ;;  %v2424_v13 = vadd.f32 %v2416_v19, %v2396_v11  ;;  %v2314_v29 = vadd.f32 %v2306_v33, %v2286_v3  ;;  %v2334_v62 = vmul.f32 %v2405_v48, %v6032_v41 }
 0x2e1   : > { %v2369_v50 = vadd.f32 %v2361_v15, %v2341_v63  ;;  %v2124_v40 = vmax.f32 %v2116_v20, 0.0  ;;  %v2115_v14 = vmul.f32 %v5973_v52, %v6111_v43  ;;  %v2362_v53 = vmul.f32 %v2433_v27, %v6035_v47 }
 0x2e2   : > { %v2452_v36 = vadd.f32 %v2444_v56, %v2424_v13  ;;  %v2342_v35 = vadd.f32 %v2334_v62, %v2314_v29  ;;  %v2223_v16 = vmul.f32 %v2377_v32, %v5980_v2  ;;  %v2251_v46 = vmul.f32 %v2405_v48, %v5988_v58  ;;  %v6121_v44 = vld [vmem:[#allocation2 + $0xc7] sm:$0xff] }
 0x2e3   : > { %v2397_v34 = vadd.f32 %v2389_v10, %v2369_v50  ;;  %v6123_v0 = vld [vmem:[#allocation2 + $0xc8] sm:$0xff]  ;;  %2204 = vst.msk [vmem:[#allocation2 + $0x108] sm:$0xff] %vm811_vm0, %v2124_v40  ;;  %v2123_v42 = vmax.f32 %v2115_v14, 0.0  ;;  %v2445_v52 = vmul.f32 %v6056_v1, %v2433_v27  ;;  %v2390_v60 = vmul.f32 %v6044_v28, %v6073_v59  ;;  %2680 = vst.msk [vmem:[#allocation2 + $0xc0] sm:$0xff] %vm811_vm0, %v7054_v57 }
 0x2e4   : > { %v6125_v45 = vld [vmem:[#allocation2 + $0xc9] sm:$0xff]  ;;  %3951 = vmatprep.mubr.msk.f32.mxu1 %vm811_vm0, %v2452_v36  ;;  %v2370_v55 = vadd.f32 %v2362_v53, %v2342_v35  ;;  %v2259_v19 = vadd.f32 %v2251_v46, %v2223_v16  ;;  %v2279_v26 = vmul.f32 %v2433_v27, %v5997_v22  ;;  %v2307_v24 = vmul.f32 %v6073_v59, %v6023_v23 }
 0x2e5   : > { %2681 = vst.msk [vmem:[#allocation2 + $0xc8] sm:$0xff] %vm811_vm0, %v7054_v57  ;;  %2682 = vst.msk [vmem:[#allocation2 + $0xd0] sm:$0xff] %vm811_vm0, %v7054_v57  ;;  %v2425_v9 = vadd.f32 %v2417_v54, %v2397_v34  ;;  %v2379_v37 = vld [vmem:[#allocation2 + $0xa7] sm:$0xff]  ;;  %v2224_v11 = vmul.f32 %v6073_v59, %v5980_v2  ;;  %v2252_v15 = vmul.f32 %v6075_v12, %v5988_v58 }
 0x2e6   : > { %v2407_v32 = vld [vmem:[#allocation2 + $0xa8] sm:$0xff]  ;;  %2203 = vst.msk [vmem:[#allocation2 + $0xe8] sm:$0xff] %vm811_vm0, %v2123_v42  ;;  %2676 = vst.msk [vmem:[#allocation2 + $0xa0] sm:$0xff] %vm811_vm0, %v7054_v57  ;;  %v2398_v56 = vadd.f32 %v2390_v60, %v2370_v55  ;;  %v2287_v63 = vadd.f32 %v2279_v26, %v2259_v19  ;;  %v2446_v3 = vmul.f32 %v6056_v1, %v6077_v6 }
 0x2e7   : > { %v2435_v48 = vld [vmem:[#allocation2 + $0xa9] sm:$0xff]  ;;  %v2453_v27 = vadd.f32 %v2445_v52, %v2425_v9  ;;  %v2335_v59 = vmul.f32 %v6075_v12, %v6032_v41  ;;  %v2280_v33 = vmul.f32 %v6077_v6, %v5997_v22  ;;  %v2260_v10 = vadd.f32 %v2252_v15, %v2224_v11 }
 0x2e8   : > { %2677 = vst.msk [vmem:[#allocation2 + $0xa8] sm:$0xff] %vm811_vm0, %v7054_v57  ;;  %2678 = vst.msk [vmem:[#allocation2 + $0xb0] sm:$0xff] %vm811_vm0, %v7054_v57  ;;  %v2426_v20 = vadd.f32 %v2418_v17, %v2398_v56  ;;  %v2315_v13 = vadd.f32 %v2307_v24, %v2287_v63  ;;  %v2308_v50 = vmul.f32 %v2379_v37, %v6023_v23 }
 0x2e9   : > { %3952 = vmatmul.mubr.msk.f32.vlgmr.msra.gmra.mxu1 %vm811_vm0, %v2453_v27  ;;  %v2363_v54 = vmul.f32 %v6077_v6, %v6035_v47  ;;  %v2225_v29 = vmul.f32 %v2379_v37, %v5980_v2  ;;  %v2253_v62 = vmul.f32 %v2407_v32, %v5988_v58  ;;  %v2391_v12 = vmul.f32 %v6044_v28, %v2379_v37 }
 0x2ea   : > { %v2454_v40 = vadd.f32 %v2446_v3, %v2426_v20  ;;  %v2343_v14 = vadd.f32 %v2335_v59, %v2315_v13  ;;  %v2288_v36 = vadd.f32 %v2280_v33, %v2260_v10  ;;  %v2382_v53 = vld [vmem:[#allocation2 + $0x107] sm:$0xff]  ;;  %v2419_v16 = vmul.f32 %v6053_v8, %v2407_v32 }
 0x2eb   : > { %v6167_v34 = vld [vmem:[#allocation2 + $0x108] sm:$0xff]  ;;  %v2336_v46 = vmul.f32 %v2407_v32, %v6032_v41  ;;  %v2261_v42 = vadd.f32 %v2253_v62, %v2225_v29  ;;  %v2281_v6 = vmul.f32 %v2435_v48, %v5997_v22  ;;  %2688 = vst.msk [vmem:[#allocation2 + $0x100] sm:$0xff] %vm811_vm0, %v7054_v57  ;;  %v2226_v26 = vmul.f32 %v6121_v44, %v5980_v2 }
 0x2ec   : > { %v6169_v35 = vld [vmem:[#allocation2 + $0x109] sm:$0xff]  ;;  %3954 = vmatprep.mubr.msk.f32.mxu1 %vm811_vm0, %v2454_v40  ;;  %v2371_v52 = vadd.f32 %v2363_v54, %v2343_v14  ;;  %v2316_v60 = vadd.f32 %v2308_v50, %v2288_v36  ;;  %v2254_v37 = vmul.f32 %v6123_v0, %v5988_v58  ;;  %v2447_v32 = vmul.f32 %v6056_v1, %v2435_v48 }
 0x2ed   : > { %2689 = vst.msk [vmem:[#allocation2 + $0x108] sm:$0xff] %vm811_vm0, %v7054_v57  ;;  %2690 = vst.msk [vmem:[#allocation2 + $0x110] sm:$0xff] %vm811_vm0, %v7054_v57  ;;  %v2381_v9 = vld [vmem:[#allocation2 + $0xe7] sm:$0xff]  ;;  %v2364_v17 = vmul.f32 %v2435_v48, %v6035_v47  ;;  %v2289_v24 = vadd.f32 %v2281_v6, %v2261_v42  ;;  %v2309_v11 = vmul.f32 %v6121_v44, %v6023_v23 }
 0x2ee   : > { %v2409_v55 = vld [vmem:[#allocation2 + $0xe8] sm:$0xff]  ;;  %2684 = vst.msk [vmem:[#allocation2 + $0xe0] sm:$0xff] %vm811_vm0, %v7054_v57  ;;  %v2399_v27 = vadd.f32 %v2391_v12, %v2371_v52  ;;  %v2344_v56 = vadd.f32 %v2336_v46, %v2316_v60  ;;  %v2262_v63 = vadd.f32 %v2254_v37, %v2226_v26  ;;  %v2282_v15 = vmul.f32 %v6125_v45, %v5997_v22 }
 0x2ef   : > { %v2437_v19 = vld [vmem:[#allocation2 + $0xe9] sm:$0xff]  ;;  %v2392_v48 = vmul.f32 %v6044_v28, %v6121_v44  ;;  %v2317_v3 = vadd.f32 %v2309_v11, %v2289_v24  ;;  %v2337_v59 = vmul.f32 %v6123_v0, %v6032_v41  ;;  %v2310_v33 = vmul.f32 %v2381_v9, %v6023_v23 }
 0x2f0   : > { %2685 = vst.msk [vmem:[#allocation2 + $0xe8] sm:$0xff] %vm811_vm0, %v7054_v57  ;;  %2686 = vst.msk [vmem:[#allocation2 + $0xf0] sm:$0xff] %vm811_vm0, %v7054_v57  ;;  %v2427_v20 = vadd.f32 %v2419_v16, %v2399_v27  ;;  %v2372_v13 = vadd.f32 %v2364_v17, %v2344_v56  ;;  %v2420_v10 = vmul.f32 %v6053_v8, %v6123_v0 }
 0x2f1   : > { %v2290_v50 = vadd.f32 %v2282_v15, %v2262_v63  ;;  %v2345_v54 = vadd.f32 %v2337_v59, %v2317_v3  ;;  %v2365_v29 = vmul.f32 %v6125_v45, %v6035_v47  ;;  %v2338_v62 = vmul.f32 %v2409_v55, %v6032_v41 }
 0x2f2   : > { %v2227_v44 = vmul.f32 %v2381_v9, %v5980_v2  ;;  %v2455_v40 = vadd.f32 %v2447_v32, %v2427_v20  ;;  %v2400_v14 = vadd.f32 %v2392_v48, %v2372_v13  ;;  %v2255_v36 = vmul.f32 %v2409_v55, %v5988_v58  ;;  %v2767_v13 = vld [vmem:[#allocation2 + $0x8] sm:$0xff] }
 0x2f3   : > { %v2318_v12 = vadd.f32 %v2310_v33, %v2290_v50  ;;  %v2448_v16 = vmul.f32 %v6056_v1, %v6125_v45  ;;  %v2373_v46 = vadd.f32 %v2365_v29, %v2345_v54  ;;  %v2393_v0 = vmul.f32 %v6044_v28, %v2381_v9 }
 0x2f4   : > { %v2366_v42 = vmul.f32 %v2437_v19, %v6035_v47  ;;  %3955 = vmatmul.mubr.msk.f32.gmra.mxu1 %vm811_vm0, %v2455_v40  ;;  %v2428_v6 = vadd.f32 %v2420_v10, %v2400_v14  ;;  %v2263_v60 = vadd.f32 %v2255_v36, %v2227_v44  ;;  %v2283_v2 = vmul.f32 %v2437_v19, %v5997_v22  ;;  %v2795_v10 = vld [vmem:[#allocation2 + $0x9] sm:$0xff] }
 0x2f5   : > { %v2346_v52 = vadd.f32 %v2338_v62, %v2318_v12  ;;  %v2401_v26 = vadd.f32 %v2393_v0, %v2373_v46  ;;  %v2421_v37 = vmul.f32 %v6053_v8, %v2409_v55  ;;  %v2394_v58 = vmul.f32 %v6044_v28, %v2382_v53  ;;  %3189 = vst.msk [vmem:[#allocation2 + $0x10] sm:$0xff] %vm811_vm0, %v7054_v57  ;;  %v2991_v62 = vld [vmem:[%s6815_s14] sm:$0xff]  ;;  %v6265_v40 = vld [vmem:[#allocation2 + $0x128] sm:$0xff] }
 0x2f6   : > { %v2456_v32 = vadd.f32 %v2448_v16, %v2428_v6  ;;  %v2291_v45 = vadd.f32 %v2283_v2, %v2263_v60  ;;  %v2311_v24 = vmul.f32 %v2382_v53, %v6023_v23  ;;  %v2449_v11 = vmul.f32 %v6056_v1, %v2437_v19  ;;  %3963 = vmatprep.subr.mxu1 %v2991_v62  ;;  %v6263_v44 = vld [vmem:[#allocation2 + $0x127] sm:$0xff]  ;;  %v6278_v12 = vld [vmem:[%s6811_s10] ss:$0 sm:$0xff] }
 0x2f7   : > { %v2374_v17 = vadd.f32 %v2366_v42, %v2346_v52  ;;  %v2429_v9 = vadd.f32 %v2421_v37, %v2401_v26  ;;  %v2422_v56 = vmul.f32 %v6053_v8, %v6167_v34  ;;  %v2339_v55 = vmul.f32 %v6167_v34, %v6032_v41  ;;  %3964 = vmatpush3.msra.mxu1 %v2991_v62  ;;  %v6267_v14 = vld [vmem:[#allocation2 + $0x129] sm:$0xff]  ;;  %v6283_v16 = vld [vmem:[%s6812_s11] ss:$0 sm:$0xff] }
 0x2f8   : > { %3957 = vmatprep.mubr.msk.f32.mxu1 %vm811_vm0, %v2456_v32  ;;  %v2319_v22 = vadd.f32 %v2311_v24, %v2291_v45  ;;  %v2395_v15 = vmul.f32 %v6044_v28, %v5947_v21  ;;  %v2450_v23 = vmul.f32 %v6056_v1, %v6169_v35  ;;  %v2367_v19 = vmul.f32 %v6169_v35, %v6035_v47  ;;  %v2736_v47 = vld [vmem:[%s6814_s13] sm:$0x7] }
 0x2f9   : > { %v2402_v27 = vadd.f32 %v2394_v58, %v2374_v17  ;;  %v2457_v63 = vadd.f32 %v2449_v11, %v2429_v9  ;;  %v2423_v33 = vmul.f32 %v6053_v8, %v5951_v38  ;;  %v2451_v21 = vmul.f32 %v6056_v1, %v5953_v39  ;;  %v2739_v38 = vld [vmem:[#allocation2 + $0x7] sm:$0xff]  ;;  %3223 = vst.msk [vmem:[#allocation2 + $0x120] sm:$0xff] %vm811_vm0, %v7054_v57 }
 0x2fa   : > { %v2347_v53 = vadd.f32 %v2339_v55, %v2319_v22  ;;  %v6241_v35 = vrot.slane %v2736_v47, %v7083_v30  ;;  %v6244_v20 = vrot.slane %v2736_v47, %v7084_v31  ;;  %v6248_v39 = vrot.slane %v2736_v47, %v7085_v5  ;;  %3187 = vst.msk [vmem:[#allocation2] sm:$0xff] %vm811_vm0, %v7054_v57  ;;  %v2737_v22 = vld [vmem:[%s6814_s13 + $0x4] sm:$0x7] }
 0x2fb   : > { %v2430_v48 = vadd.f32 %v2422_v56, %v2402_v27  ;;  %3958 = vmatmul.mubr.msk.f32.gmra.mxu1 %vm811_vm0, %v2457_v63  ;;  %3188 = vst.msk [vmem:[#allocation2 + $0x8] sm:$0xff] %vm811_vm0, %v7054_v57  ;;  %3224 = vst.msk [vmem:[#allocation2 + $0x128] sm:$0xff] %vm811_vm0, %v7054_v57  ;;  %v6286_v0 = vstv %s2620_s6  ;;  %v6288_v42 = vstv %s3817_s25  ;;  %s3151_s6 = sld [smem:[#allocation7]] }
 0x2fc   : > { %v2375_v59 = vadd.f32 %v2367_v19, %v2347_v53  ;;  %v2751_v8 = vmul.f32 %v6241_v35, %v2739_v38  ;;  %v2779_v1 = vmul.f32 %v6244_v20, %v2767_v13  ;;  %v2807_v50 = vmul.f32 %v6248_v39, %v2795_v10  ;;  %3225 = vst.msk [vmem:[#allocation2 + $0x130] sm:$0xff] %vm811_vm0, %v7054_v57  ;;  %s3828_s25 = sld [smem:[#allocation7 + $0x1]] }
 0x2fd   : > { %v2458_v3 = vadd.f32 %v2450_v23, %v2430_v48  ;;  %v2623_v2 = vmul.f32 %v6286_v0, %v5976_v18  ;;  %v2622_v58 = vmul.f32 %v6286_v0, %v5985_v4  ;;  %v2625_v55 = vmul.f32 %v6286_v0, %v6001_v49  ;;  %v2738_v49 = vld [vmem:[%s6814_s13 + $0x8] sm:$0x7] }
 0x2fe   : > { %v2403_v41 = vadd.f32 %v2395_v15, %v2375_v59  ;;  %v2787_v54 = vadd.f32 %v2779_v1, %v2751_v8  ;;  %v2624_v19 = vmul.f32 %v6286_v0, %v6007_v61  ;;  %v2627_v61 = vmul.f32 %v6286_v0, %v6039_v25 }
 0x2ff   : > { %3960 = vmatprep.mubr.msk.f32.mxu1 %vm811_vm0, %v2458_v3  ;;  %v6346_v38 = vrot.slane %v2737_v22, %v7084_v31  ;;  %v6363_v62 = vrot.slane %v2738_v49, %v7083_v30 }
 0x300   : > { %v2431_v28 = vadd.f32 %v2423_v33, %v2403_v41  ;;  %v6258_v29 = vadd.f32 %v2807_v50, %v2787_v54  ;;  %v6332_v41 = vrot.slane %v2737_v22, %v7083_v30  ;;  %v6350_v54 = vrot.slane %v2737_v22, %v7085_v5 }
 0x302   : > { %v2459_v34 = vadd.f32 %v2451_v21, %v2431_v28  ;;  %v2626_v21 = vmul.f32 %v6286_v0, %v6063_v51 }
 0x304   : > { %3961 = vmatmul.mubr.msk.f32.gmra.mxu1 %vm811_vm0, %v2459_v34 }
 0x3a9   : > { %v3953_v36 = vpop.f32.mrf.mxu1 }
 0x3aa   : > { %v2598_v46 = vmul.f32 %v3953_v36, %v6278_v12 }
 0x3ab   : > { %v2551_v6 = vpop.f32.mrf.mxu1 }
 0x3ac   : > { %v6291_v52 = vadd.f32 %v6283_v16, %v2598_v46  ;;  %v2597_v60 = vmul.f32 %v6278_v12, %v2551_v6 }
 0x3ae   : > { %v2633_v26 = vmul.f32 %v6288_v42, %v6291_v52  ;;  %v6299_v37 = vadd.f32 %v6283_v16, %v2597_v60 }
 0x3b0   : > { %v2641_v32 = vadd.f32 %v2633_v26, %v2623_v2  ;;  %v2632_v17 = vmul.f32 %v6288_v42, %v6299_v37 }
 0x3b2   : > { %v2649_v45 = vmax.f32 %v2641_v32, 0.0  ;;  %v2640_v24 = vadd.f32 %v2632_v17, %v2622_v58  ;;  %v6376_v32 = vrot.slane %v2738_v49, %v7084_v31  ;;  %v6379_v17 = vrot.slane %v2738_v49, %v7085_v5 }
 0x3b4   : > { %2729 = vst.msk [vmem:[#allocation2 + $0x48] sm:$0xff] %vm811_vm0, %v2649_v45  ;;  %v2648_v9 = vmax.f32 %v2640_v24, 0.0  ;;  %v3956_v11 = vpop.f32.mrf.mxu1 }
 0x3b5   : > { %v2600_v18 = vmul.f32 %v3956_v11, %v6278_v12 }
 0x3b6   : > { %2728 = vst.msk [vmem:[#allocation2 + $0x28] sm:$0xff] %vm811_vm0, %v2648_v9  ;;  %v2561_v27 = vpop.f32.mrf.mxu1 }
 0x3b7   : > { %v6309_v56 = vadd.f32 %v6283_v16, %v2600_v18  ;;  %v2599_v4 = vmul.f32 %v6278_v12, %v2561_v27 }
 0x3b9   : > { %v2635_v63 = vmul.f32 %v6288_v42, %v6309_v56  ;;  %v6320_v15 = vadd.f32 %v6283_v16, %v2599_v4 }
 0x3bb   : > { %v2907_v48 = vld [vmem:[#allocation2 + $0x47] sm:$0xff]  ;;  %v2643_v3 = vadd.f32 %v2635_v63, %v2625_v55  ;;  %v2634_v59 = vmul.f32 %v6288_v42, %v6320_v15  ;;  %v3959_v33 = vpop.f32.mrf.mxu1 }
 0x3bc   : > { %v2935_v23 = vld [vmem:[#allocation2 + $0x48] sm:$0xff]  ;;  %3195 = vst.msk [vmem:[#allocation2 + $0x40] sm:$0xff] %vm811_vm0, %v7054_v57  ;;  %v2602_v28 = vmul.f32 %v3959_v33, %v6278_v12  ;;  %v2753_v27 = vmul.f32 %v2907_v48, %v6241_v35  ;;  %v2919_v55 = vmul.f32 %v6363_v62, %v2907_v48 }
 0x3bd   : > { %v6322_v53 = vld [vmem:[#allocation2 + $0x49] sm:$0xff]  ;;  %v2651_v13 = vmax.f32 %v2643_v3, 0.0  ;;  %v2642_v1 = vadd.f32 %v2634_v59, %v2624_v19  ;;  %v2571_v10 = vpop.f32.mrf.mxu1  ;;  %v2781_v4 = vmul.f32 %v2935_v23, %v6244_v20  ;;  %v2836_v19 = vmul.f32 %v2907_v48, %v6332_v41 }
 0x3be   : > { %3196 = vst.msk [vmem:[#allocation2 + $0x48] sm:$0xff] %vm811_vm0, %v7054_v57  ;;  %3197 = vst.msk [vmem:[#allocation2 + $0x50] sm:$0xff] %vm811_vm0, %v7054_v57  ;;  %v2823_v34 = vld [vmem:[#allocation2 + $0x27] sm:$0xff]  ;;  %v6359_v25 = vadd.f32 %v6283_v16, %v2602_v28  ;;  %v2601_v51 = vmul.f32 %v6278_v12, %v2571_v10  ;;  %v2947_v49 = vmul.f32 %v6376_v32, %v2935_v23 }
 0x3bf   : > { %v2851_v47 = vld [vmem:[#allocation2 + $0x28] sm:$0xff]  ;;  %v2835_v50 = vmul.f32 %v6332_v41, %v2823_v34  ;;  %3191 = vst.msk [vmem:[#allocation2 + $0x20] sm:$0xff] %vm811_vm0, %v7054_v57  ;;  %v2752_v36 = vmul.f32 %v2823_v34, %v6241_v35  ;;  %2731 = vst.msk [vmem:[#allocation2 + $0x88] sm:$0xff] %vm811_vm0, %v2651_v13  ;;  %v2650_v46 = vmax.f32 %v2642_v1, 0.0  ;;  %v2975_v1 = vmul.f32 %v6379_v17, %v6322_v53 }
 0x3c0   : > { %v2879_v8 = vld [vmem:[#allocation2 + $0x29] sm:$0xff]  ;;  %v2863_v60 = vmul.f32 %v6346_v38, %v2851_v47  ;;  %v2780_v2 = vmul.f32 %v2851_v47, %v6244_v20  ;;  %v2637_v26 = vmul.f32 %v6288_v42, %v6359_v25  ;;  %v6373_v58 = vadd.f32 %v6283_v16, %v2601_v51 }
 0x3c1   : > { %3192 = vst.msk [vmem:[#allocation2 + $0x28] sm:$0xff] %vm811_vm0, %v7054_v57  ;;  %3193 = vst.msk [vmem:[#allocation2 + $0x30] sm:$0xff] %vm811_vm0, %v7054_v57  ;;  %v2843_v6 = vadd.f32 %v2835_v50, %v6258_v29  ;;  %v2891_v29 = vmul.f32 %v6350_v54, %v2879_v8  ;;  %v2808_v9 = vmul.f32 %v2879_v8, %v6248_v39 }
 0x3c2   : > { %2730 = vst.msk [vmem:[#allocation2 + $0x68] sm:$0xff] %vm811_vm0, %v2650_v46  ;;  %v2788_v24 = vadd.f32 %v2780_v2, %v2752_v36  ;;  %v2645_v11 = vadd.f32 %v2637_v26, %v2627_v61  ;;  %v2636_v18 = vmul.f32 %v6288_v42, %v6373_v58  ;;  %v2864_v47 = vmul.f32 %v2935_v23, %v6346_v38 }
 0x3c3   : > { %v2871_v45 = vadd.f32 %v2863_v60, %v2843_v6  ;;  %v2789_v10 = vadd.f32 %v2781_v4, %v2753_v27  ;;  %v2629_v6 = vmul.f32 %v6286_v0, %v6094_v7  ;;  %v2892_v60 = vmul.f32 %v6322_v53, %v6350_v54 }
 0x3c4   : > { %v2816_v63 = vadd.f32 %v2808_v9, %v2788_v24  ;;  %v2653_v3 = vmax.f32 %v2645_v11, 0.0  ;;  %v2644_v59 = vadd.f32 %v2636_v18, %v2626_v21  ;;  %v3962_v33 = vpop.f32.mrf.mxu1  ;;  %v2809_v9 = vmul.f32 %v6322_v53, %v6248_v39 }
 0x3c5   : > { %v2899_v22 = vadd.f32 %v2891_v29, %v2871_v45  ;;  %v2604_v61 = vmul.f32 %v3962_v33, %v6278_v12  ;;  %v2628_v7 = vmul.f32 %v6286_v0, %v6111_v43 }
 0x3c6   : > { %v2844_v34 = vadd.f32 %v2836_v19, %v2816_v63  ;;  %2733 = vst.msk [vmem:[#allocation2 + $0xc8] sm:$0xff] %vm811_vm0, %v2653_v3  ;;  %v2652_v8 = vmax.f32 %v2644_v59, 0.0  ;;  %v2581_v13 = vpop.f32.mrf.mxu1  ;;  %v6396_v48 = vld [vmem:[#allocation2 + $0x87] sm:$0xff]  ;;  %v2817_v53 = vadd.f32 %v2809_v9, %v2789_v10 }
 0x3c7   : > { %v2927_v28 = vadd.f32 %v2919_v55, %v2899_v22  ;;  %v6398_v21 = vld [vmem:[#allocation2 + $0x88] sm:$0xff]  ;;  %v6403_v51 = vadd.f32 %v6283_v16, %v2604_v61  ;;  %v2603_v36 = vmul.f32 %v6278_v12, %v2581_v13  ;;  %3203 = vst.msk [vmem:[#allocation2 + $0x80] sm:$0xff] %vm811_vm0, %v7054_v57 }
 0x3c8   : > { %v6400_v50 = vld [vmem:[#allocation2 + $0x89] sm:$0xff]  ;;  %v2872_v46 = vadd.f32 %v2864_v47, %v2844_v34  ;;  %2732 = vst.msk [vmem:[#allocation2 + $0xa8] sm:$0xff] %vm811_vm0, %v2652_v8  ;;  %v2866_v9 = vmul.f32 %v6398_v21, %v6346_v38 }
 0x3c9   : > { %v2955_v23 = vadd.f32 %v2947_v49, %v2927_v28  ;;  %3204 = vst.msk [vmem:[#allocation2 + $0x88] sm:$0xff] %vm811_vm0, %v7054_v57  ;;  %3205 = vst.msk [vmem:[#allocation2 + $0x90] sm:$0xff] %vm811_vm0, %v7054_v57  ;;  %v2908_v12 = vld [vmem:[#allocation2 + $0x67] sm:$0xff]  ;;  %v2639_v45 = vmul.f32 %v6288_v42, %v6403_v51  ;;  %v6420_v29 = vadd.f32 %v6283_v16, %v2603_v36 }
 0x3ca   : > { %v2936_v2 = vld [vmem:[#allocation2 + $0x68] sm:$0xff]  ;;  %3199 = vst.msk [vmem:[#allocation2 + $0x60] sm:$0xff] %vm811_vm0, %v7054_v57  ;;  %v2900_v11 = vadd.f32 %v2892_v60, %v2872_v46  ;;  %v2920_v16 = vmul.f32 %v6363_v62, %v2908_v12  ;;  %v2837_v4 = vmul.f32 %v2908_v12, %v6332_v41  ;;  %v2754_v19 = vmul.f32 %v2908_v12, %v6241_v35 }
 0x3cb   : > { %v2964_v26 = vld [vmem:[#allocation2 + $0x69] sm:$0xff]  ;;  %v2983_v24 = vadd.f32 %v2975_v1, %v2955_v23  ;;  %v2647_v18 = vadd.f32 %v2639_v45, %v2629_v6  ;;  %v2638_v27 = vmul.f32 %v6288_v42, %v6420_v29  ;;  %v2948_v55 = vmul.f32 %v6376_v32, %v2936_v2 }
 0x3cc   : > { %3200 = vst.msk [vmem:[#allocation2 + $0x68] sm:$0xff] %vm811_vm0, %v7054_v57  ;;  %3201 = vst.msk [vmem:[#allocation2 + $0x70] sm:$0xff] %vm811_vm0, %v7054_v57  ;;  %v2928_v22 = vadd.f32 %v2920_v16, %v2900_v11  ;;  %v2865_v63 = vmul.f32 %v2936_v2, %v6346_v38  ;;  %v2845_v3 = vadd.f32 %v2837_v4, %v2817_v53 }
 0x3cd   : > { %3965 = vmatprep.mubr.msk.f32.mxu1 %vm811_vm0, %v2983_v24  ;;  %v2655_v43 = vmax.f32 %v2647_v18, 0.0  ;;  %v2646_v0 = vadd.f32 %v2638_v27, %v2628_v7  ;;  %v2782_v59 = vmul.f32 %v2936_v2, %v6244_v20  ;;  %v6441_v33 = vld [vmem:[#allocation2 + $0xc7] sm:$0xff]  ;;  %v2976_v28 = vmul.f32 %v6379_v17, %v2964_v26 }
 0x3ce   : > { %v6443_v42 = vld [vmem:[#allocation2 + $0xc8] sm:$0xff]  ;;  %v2956_v61 = vadd.f32 %v2948_v55, %v2928_v22  ;;  %v2893_v34 = vmul.f32 %v2964_v26, %v6350_v54  ;;  %v2810_v47 = vmul.f32 %v2964_v26, %v6248_v39  ;;  %3211 = vst.msk [vmem:[#allocation2 + $0xc0] sm:$0xff] %vm811_vm0, %v7054_v57  ;;  %v2873_v13 = vadd.f32 %v2865_v63, %v2845_v3 }
 0x3cf   : > { %v6445_v49 = vld [vmem:[#allocation2 + $0xc9] sm:$0xff]  ;;  %2735 = vst.msk [vmem:[#allocation2 + $0x108] sm:$0xff] %vm811_vm0, %v2655_v43  ;;  %v2654_v8 = vmax.f32 %v2646_v0, 0.0  ;;  %v2790_v1 = vadd.f32 %v2782_v59, %v2754_v19  ;;  %v2755_v46 = vmul.f32 %v6396_v48, %v6241_v35  ;;  %v2921_v60 = vmul.f32 %v6363_v62, %v6396_v48 }
 0x3d0   : > { %3212 = vst.msk [vmem:[#allocation2 + $0xc8] sm:$0xff] %vm811_vm0, %v7054_v57  ;;  %3213 = vst.msk [vmem:[#allocation2 + $0xd0] sm:$0xff] %vm811_vm0, %v7054_v57  ;;  %v2910_v10 = vld [vmem:[#allocation2 + $0xa7] sm:$0xff]  ;;  %v2984_v6 = vadd.f32 %v2976_v28, %v2956_v61  ;;  %v2901_v12 = vadd.f32 %v2893_v34, %v2873_v13  ;;  %v2838_v26 = vmul.f32 %v6396_v48, %v6332_v41 }
 0x3d1   : > { %v2938_v36 = vld [vmem:[#allocation2 + $0xa8] sm:$0xff]  ;;  %3207 = vst.msk [vmem:[#allocation2 + $0xa0] sm:$0xff] %vm811_vm0, %v7054_v57  ;;  %2734 = vst.msk [vmem:[#allocation2 + $0xe8] sm:$0xff] %vm811_vm0, %v2654_v8  ;;  %v2818_v2 = vadd.f32 %v2810_v47, %v2790_v1  ;;  %v2783_v45 = vmul.f32 %v6398_v21, %v6244_v20  ;;  %v2949_v24 = vmul.f32 %v6376_v32, %v6398_v21 }
 0x3d2   : > { %v2966_v23 = vld [vmem:[#allocation2 + $0xa9] sm:$0xff]  ;;  %3966 = vmatmul.mubr.msk.f32.vlgmr.msra.gmra.mxu1 %vm811_vm0, %v2984_v6  ;;  %v2811_v7 = vmul.f32 %v6400_v50, %v6248_v39  ;;  %v2929_v11 = vadd.f32 %v2921_v60, %v2901_v12  ;;  %v2839_v27 = vmul.f32 %v2910_v10, %v6332_v41  ;;  %v2977_v48 = vmul.f32 %v6379_v17, %v6400_v50 }
 0x3d3   : > { %3208 = vst.msk [vmem:[#allocation2 + $0xa8] sm:$0xff] %vm811_vm0, %v7054_v57  ;;  %3209 = vst.msk [vmem:[#allocation2 + $0xb0] sm:$0xff] %vm811_vm0, %v7054_v57  ;;  %v2846_v16 = vadd.f32 %v2838_v26, %v2818_v2  ;;  %v2791_v18 = vadd.f32 %v2783_v45, %v2755_v46  ;;  %v2894_v53 = vmul.f32 %v6400_v50, %v6350_v54 }
 0x3d4   : > { %v2756_v4 = vmul.f32 %v2910_v10, %v6241_v35  ;;  %v2784_v22 = vmul.f32 %v2938_v36, %v6244_v20  ;;  %v2957_v55 = vadd.f32 %v2949_v24, %v2929_v11  ;;  %v2922_v63 = vmul.f32 %v6363_v62, %v2910_v10 }
 0x3d5   : > { %v2874_v21 = vadd.f32 %v2866_v9, %v2846_v16  ;;  %v2819_v19 = vadd.f32 %v2811_v7, %v2791_v18  ;;  %v2867_v43 = vmul.f32 %v2938_v36, %v6346_v38  ;;  %v2812_v3 = vmul.f32 %v2966_v23, %v6248_v39 }
 0x3d6   : > { %v2792_v0 = vadd.f32 %v2784_v22, %v2756_v4  ;;  %v2757_v59 = vmul.f32 %v6441_v33, %v6241_v35  ;;  %v2913_v61 = vld [vmem:[#allocation2 + $0x107] sm:$0xff]  ;;  %v2985_v34 = vadd.f32 %v2977_v48, %v2957_v55  ;;  %v2785_v13 = vmul.f32 %v6443_v42, %v6244_v20 }
 0x3d7   : > { %v6491_v28 = vld [vmem:[#allocation2 + $0x108] sm:$0xff]  ;;  %v2902_v47 = vadd.f32 %v2894_v53, %v2874_v21  ;;  %v2847_v8 = vadd.f32 %v2839_v27, %v2819_v19  ;;  %3219 = vst.msk [vmem:[#allocation2 + $0x100] sm:$0xff] %vm811_vm0, %v7054_v57  ;;  %v2950_v1 = vmul.f32 %v6376_v32, %v2938_v36  ;;  %v2840_v46 = vmul.f32 %v6441_v33, %v6332_v41 }
 0x3d8   : > { %v6493_v50 = vld [vmem:[#allocation2 + $0x109] sm:$0xff]  ;;  %v2820_v10 = vadd.f32 %v2812_v3, %v2792_v0  ;;  %3968 = vmatprep.mubr.msk.f32.mxu1 %vm811_vm0, %v2985_v34  ;;  %v2895_v45 = vmul.f32 %v2966_v23, %v6350_v54  ;;  %v2868_v24 = vmul.f32 %v6443_v42, %v6346_v38  ;;  %v2793_v9 = vadd.f32 %v2785_v13, %v2757_v59 }
 0x3d9   : > { %3220 = vst.msk [vmem:[#allocation2 + $0x108] sm:$0xff] %vm811_vm0, %v7054_v57  ;;  %3221 = vst.msk [vmem:[#allocation2 + $0x110] sm:$0xff] %vm811_vm0, %v7054_v57  ;;  %v2912_v6 = vld [vmem:[#allocation2 + $0xe7] sm:$0xff]  ;;  %v2930_v2 = vadd.f32 %v2922_v63, %v2902_v47  ;;  %v2875_v26 = vadd.f32 %v2867_v43, %v2847_v8  ;;  %v2813_v7 = vmul.f32 %v6445_v49, %v6248_v39 }
 0x3da   : > { %v2940_v60 = vld [vmem:[#allocation2 + $0xe8] sm:$0xff]  ;;  %3215 = vst.msk [vmem:[#allocation2 + $0xe0] sm:$0xff] %vm811_vm0, %v7054_v57  ;;  %v2848_v36 = vadd.f32 %v2840_v46, %v2820_v10  ;;  %v2841_v11 = vmul.f32 %v2912_v6, %v6332_v41  ;;  %v2978_v18 = vmul.f32 %v6379_v17, %v2966_v23  ;;  %v2923_v48 = vmul.f32 %v6363_v62, %v6441_v33 }
 0x3db   : > { %v2968_v12 = vld [vmem:[#allocation2 + $0xe9] sm:$0xff]  ;;  %v2958_v16 = vadd.f32 %v2950_v1, %v2930_v2  ;;  %v2903_v27 = vadd.f32 %v2895_v45, %v2875_v26  ;;  %v2896_v4 = vmul.f32 %v6445_v49, %v6350_v54  ;;  %v2821_v22 = vadd.f32 %v2813_v7, %v2793_v9 }
 0x3dc   : > { %3216 = vst.msk [vmem:[#allocation2 + $0xe8] sm:$0xff] %vm811_vm0, %v7054_v57  ;;  %3217 = vst.msk [vmem:[#allocation2 + $0xf0] sm:$0xff] %vm811_vm0, %v7054_v57  ;;  %v2876_v53 = vadd.f32 %v2868_v24, %v2848_v36  ;;  %v2758_v57 = vmul.f32 %v2912_v6, %v6241_v35  ;;  %v2951_v63 = vmul.f32 %v6376_v32, %v6443_v42 }
 0x3dd   : > { %v2986_v55 = vadd.f32 %v2978_v18, %v2958_v16  ;;  %v2931_v21 = vadd.f32 %v2923_v48, %v2903_v27  ;;  %v2786_v19 = vmul.f32 %v2940_v60, %v6244_v20  ;;  %v2924_v23 = vmul.f32 %v6363_v62, %v2912_v6 }
 0x3de   : > { %v2904_v43 = vadd.f32 %v2896_v4, %v2876_v53  ;;  %v2849_v0 = vadd.f32 %v2841_v11, %v2821_v22  ;;  %v2869_v33 = vmul.f32 %v2940_v60, %v6346_v38  ;;  %v2979_v59 = vmul.f32 %v6379_v17, %v6445_v49  ;;  %v3267_v4 = vld [vmem:[%s6819_s18] sm:$0x7] }
 0x3df   : > { %3969 = vmatmul.mubr.msk.f32.gmra.mxu1 %vm811_vm0, %v2986_v55  ;;  %v2959_v3 = vadd.f32 %v2951_v63, %v2931_v21  ;;  %v2794_v35 = vadd.f32 %v2786_v19, %v2758_v57  ;;  %v2814_v34 = vmul.f32 %v2968_v12, %v6248_v39  ;;  %v2952_v42 = vmul.f32 %v6376_v32, %v2940_v60 }
 0x3e0   : > { %v2932_v47 = vadd.f32 %v2924_v23, %v2904_v43  ;;  %v2877_v8 = vadd.f32 %v2869_v33, %v2849_v0  ;;  %v2897_v20 = vmul.f32 %v2968_v12, %v6350_v54  ;;  %v2842_v10 = vmul.f32 %v2913_v61, %v6332_v41  ;;  %v3298_v0 = vld [vmem:[#allocation2 + $0x8] sm:$0xff] }
 0x3e1   : > { %v2987_v13 = vadd.f32 %v2979_v59, %v2959_v3  ;;  %v2822_v1 = vadd.f32 %v2814_v34, %v2794_v35  ;;  %v2980_v6 = vmul.f32 %v6379_v17, %v2968_v12  ;;  %v2925_v26 = vmul.f32 %v6363_v62, %v2913_v61 }
 0x3e2   : > { %v2960_v46 = vadd.f32 %v2952_v42, %v2932_v47  ;;  %v2905_v2 = vadd.f32 %v2897_v20, %v2877_v8  ;;  %v2870_v39 = vmul.f32 %v6491_v28, %v6346_v38  ;;  %v2953_v24 = vmul.f32 %v6376_v32, %v6491_v28  ;;  %v3326_v47 = vld [vmem:[#allocation2 + $0x9] sm:$0xff] }
 0x3e3   : > { %3971 = vmatprep.mubr.msk.f32.mxu1 %vm811_vm0, %v2987_v13  ;;  %v2850_v49 = vadd.f32 %v2842_v10, %v2822_v1  ;;  %v2898_v41 = vmul.f32 %v6493_v50, %v6350_v54  ;;  %v2926_v12 = vmul.f32 %v6363_v62, %v6263_v44  ;;  %v2981_v9 = vmul.f32 %v6379_v17, %v6493_v50  ;;  %v3522_v44 = vld [vmem:[%s6820_s19] sm:$0xff] }
 0x3e4   : > { %v2988_v60 = vadd.f32 %v2980_v6, %v2960_v46  ;;  %v2933_v45 = vadd.f32 %v2925_v26, %v2905_v2  ;;  %v2954_v38 = vmul.f32 %v6376_v32, %v6265_v40  ;;  %v2982_v28 = vmul.f32 %v6379_v17, %v6267_v14  ;;  %3977 = vmatprep.subr.mxu1 %v3522_v44  ;;  %v6563_v40 = vld [vmem:[%s6816_s15] ss:$0 sm:$0xff]  ;;  %v3268_v6 = vld [vmem:[%s6819_s18 + $0x4] sm:$0x7] }
 0x3e5   : > { %v2878_v36 = vadd.f32 %v2870_v39, %v2850_v49  ;;  %3978 = vmatpush3.msra.mxu1 %v3522_v44  ;;  %v6568_v62 = vld [vmem:[%s6817_s16] ss:$0 sm:$0xff]  ;;  %v6571_v17 = vstv %s3151_s6  ;;  %v6573_v50 = vstv %s3828_s25  ;;  %v6594_v43 = vrot.slane %v3267_v4, %v7083_v30 }
 0x3e6   : > { %3972 = vmatmul.mubr.msk.f32.gmra.mxu1 %vm811_vm0, %v2988_v60  ;;  %v2961_v61 = vadd.f32 %v2953_v24, %v2933_v45  ;;  %v3154_v22 = vmul.f32 %v6571_v17, %v6291_v52  ;;  %v3153_v21 = vmul.f32 %v6571_v17, %v6299_v37  ;;  %v6597_v23 = vrot.slane %v3267_v4, %v7084_v31  ;;  %v3270_v52 = vld [vmem:[#allocation2 + $0x7] sm:$0xff] }
 0x3e7   : > { %v2906_v7 = vadd.f32 %v2898_v41, %v2878_v36  ;;  %v3282_v35 = vmul.f32 %v6594_v43, %v3270_v52  ;;  %v6603_v34 = vrot.slane %v3267_v4, %v7085_v5  ;;  %v3156_v2 = vmul.f32 %v6571_v17, %v6309_v56  ;;  %v3269_v60 = vld [vmem:[%s6819_s18 + $0x8] sm:$0x7] }
 0x3e8   : > { %v2989_v11 = vadd.f32 %v2981_v9, %v2961_v61  ;;  %v3310_v37 = vmul.f32 %v6597_v23, %v3298_v0  ;;  %v3155_v26 = vmul.f32 %v6571_v17, %v6320_v15  ;;  %v3158_v45 = vmul.f32 %v6571_v17, %v6359_v25 }
 0x3e9   : > { %v2934_v16 = vadd.f32 %v2926_v12, %v2906_v7  ;;  %v3338_v1 = vmul.f32 %v6603_v34, %v3326_v47  ;;  %v3157_v24 = vmul.f32 %v6571_v17, %v6373_v58  ;;  %v6632_v36 = vrot.slane %v3268_v6, %v7083_v30 }
 0x3ea   : > { %3974 = vmatprep.mubr.msk.f32.mxu1 %vm811_vm0, %v2989_v11  ;;  %v3318_v13 = vadd.f32 %v3310_v37, %v3282_v35  ;;  %v6637_v7 = vrot.slane %v3268_v6, %v7084_v31 }
 0x3eb   : > { %v2962_v54 = vadd.f32 %v2954_v38, %v2934_v16  ;;  %v6640_v38 = vrot.slane %v3268_v6, %v7085_v5  ;;  %v6645_v16 = vrot.slane %v3269_v60, %v7083_v30 }
 0x3ec   : > { %v3346_v56 = vadd.f32 %v3338_v1, %v3318_v13 }
 0x3ed   : > { %v2990_v18 = vadd.f32 %v2982_v28, %v2962_v54  ;;  %v6648_v28 = vrot.slane %v3269_v60, %v7084_v31 }
 0x3ef   : > { %3975 = vmatmul.mubr.msk.f32.gmra.mxu1 %vm811_vm0, %v2990_v18 }
 0x492   : > { %v3967_v14 = vpop.f32.mrf.mxu1 }
 0x493   : > { %v3129_v32 = vmul.f32 %v3967_v14, %v6563_v40 }
 0x494   : > { %v3082_v27 = vpop.f32.mrf.mxu1 }
 0x495   : > { %v6576_v48 = vadd.f32 %v6568_v62, %v3129_v32  ;;  %v3128_v53 = vmul.f32 %v6563_v40, %v3082_v27 }
 0x497   : > { %v3164_v57 = vmul.f32 %v6573_v50, %v6576_v48  ;;  %v6587_v55 = vadd.f32 %v6568_v62, %v3128_v53 }
 0x499   : > { %v3172_v63 = vadd.f32 %v3164_v57, %v3154_v22  ;;  %v3163_v19 = vmul.f32 %v6573_v50, %v6587_v55 }
 0x49b   : > { %v3180_v33 = vmax.f32 %v3172_v63, 0.0  ;;  %v3171_v3 = vadd.f32 %v3163_v19, %v3153_v21  ;;  %v6659_v21 = vrot.slane %v3269_v60, %v7085_v5 }
 0x49d   : > { %3260 = vst.msk [vmem:[#allocation2 + $0x48] sm:$0xff] %vm811_vm0, %v3180_v33  ;;  %v3179_v59 = vmax.f32 %v3171_v3, 0.0 }
 0x49f   : > { %3259 = vst.msk [vmem:[#allocation2 + $0x28] sm:$0xff] %vm811_vm0, %v3179_v59  ;;  %v3970_v42 = vpop.f32.mrf.mxu1 }
 0x4a0   : > { %v3131_v8 = vmul.f32 %v3970_v42, %v6563_v40 }
 0x4a1   : > { %v3092_v20 = vpop.f32.mrf.mxu1 }
 0x4a2   : > { %v6609_v10 = vadd.f32 %v6568_v62, %v3131_v8  ;;  %v3130_v46 = vmul.f32 %v6563_v40, %v3092_v20 }
 0x4a4   : > { %v3166_v49 = vmul.f32 %v6573_v50, %v6609_v10  ;;  %v6622_v39 = vadd.f32 %v6568_v62, %v3130_v46  ;;  %v3438_v30 = vld [vmem:[#allocation2 + $0x47] sm:$0xff] }
 0x4a5   : > { %v3466_v57 = vld [vmem:[#allocation2 + $0x48] sm:$0xff]  ;;  %v3450_v59 = vmul.f32 %v6645_v16, %v3438_v30  ;;  %v3367_v5 = vmul.f32 %v3438_v30, %v6632_v36  ;;  %v3284_v37 = vmul.f32 %v3438_v30, %v6594_v43 }
 0x4a6   : > { %v3174_v15 = vadd.f32 %v3166_v49, %v3156_v2  ;;  %v3165_v41 = vmul.f32 %v6573_v50, %v6622_v39  ;;  %v3973_v12 = vpop.f32.mrf.mxu1  ;;  %v3354_v61 = vld [vmem:[#allocation2 + $0x27] sm:$0xff]  ;;  %v3312_v13 = vmul.f32 %v3466_v57, %v6597_v23  ;;  %v3395_v46 = vmul.f32 %v3466_v57, %v6637_v7 }
 0x4a7   : > { %v3382_v9 = vld [vmem:[#allocation2 + $0x28] sm:$0xff]  ;;  %v3133_v25 = vmul.f32 %v3973_v12, %v6563_v40  ;;  %v3366_v58 = vmul.f32 %v6632_v36, %v3354_v61  ;;  %v3283_v14 = vmul.f32 %v3354_v61, %v6594_v43  ;;  %v3478_v60 = vmul.f32 %v6648_v28, %v3466_v57 }
 0x4a8   : > { %v3410_v11 = vld [vmem:[#allocation2 + $0x29] sm:$0xff]  ;;  %v3182_v54 = vmax.f32 %v3174_v15, 0.0  ;;  %v3173_v18 = vadd.f32 %v3165_v41, %v3155_v26  ;;  %v3102_v44 = vpop.f32.mrf.mxu1  ;;  %v3311_v32 = vmul.f32 %v3382_v9, %v6597_v23  ;;  %v3394_v22 = vmul.f32 %v6637_v7, %v3382_v9 }
 0x4a9   : > { %v6653_v27 = vadd.f32 %v6568_v62, %v3133_v25  ;;  %v3132_v53 = vmul.f32 %v6563_v40, %v3102_v44  ;;  %v3374_v4 = vadd.f32 %v3366_v58, %v3346_v56  ;;  %v3339_v19 = vmul.f32 %v3410_v11, %v6603_v34  ;;  %v3494_v20 = vld [vmem:[#allocation2 + $0x49] sm:$0xff] }
 0x4aa   : > { %3262 = vst.msk [vmem:[#allocation2 + $0x88] sm:$0xff] %vm811_vm0, %v3182_v54  ;;  %v3181_v31 = vmax.f32 %v3173_v18, 0.0  ;;  %v3319_v63 = vadd.f32 %v3311_v32, %v3283_v14  ;;  %v3422_v3 = vmul.f32 %v6640_v38, %v3410_v11  ;;  %v3506_v9 = vmul.f32 %v6659_v21, %v3494_v20 }
 0x4ab   : > { %v3168_v52 = vmul.f32 %v6573_v50, %v6653_v27  ;;  %v6665_v0 = vadd.f32 %v6568_v62, %v3132_v53  ;;  %v3402_v33 = vadd.f32 %v3394_v22, %v3374_v4  ;;  %v3320_v25 = vadd.f32 %v3312_v13, %v3284_v37 }
 0x4ac   : > { %3261 = vst.msk [vmem:[#allocation2 + $0x68] sm:$0xff] %vm811_vm0, %v3181_v31  ;;  %v3347_v35 = vadd.f32 %v3339_v19, %v3319_v63  ;;  %v3160_v54 = vmul.f32 %v6571_v17, %v6403_v51  ;;  %v3340_v53 = vmul.f32 %v3494_v20, %v6603_v34  ;;  %v3159_v4 = vmul.f32 %v6571_v17, %v6420_v29 }
 0x4ad   : > { %v3176_v47 = vadd.f32 %v3168_v52, %v3158_v45  ;;  %v3167_v42 = vmul.f32 %v6573_v50, %v6665_v0  ;;  %v3430_v8 = vadd.f32 %v3422_v3, %v3402_v33  ;;  %v3423_v45 = vmul.f32 %v3494_v20, %v6640_v38 }
 0x4ae   : > { %v3375_v1 = vadd.f32 %v3367_v5, %v3347_v35  ;;  %v3348_v57 = vadd.f32 %v3340_v53, %v3320_v25 }
 0x4af   : > { %v3184_v6 = vmax.f32 %v3176_v47, 0.0  ;;  %v3175_v2 = vadd.f32 %v3167_v42, %v3157_v24  ;;  %v3976_v26 = vpop.f32.mrf.mxu1  ;;  %v3458_v49 = vadd.f32 %v3450_v59, %v3430_v8 }
 0x4b0   : > { %v3135_v56 = vmul.f32 %v3976_v26, %v6563_v40  ;;  %v3403_v15 = vadd.f32 %v3395_v46, %v3375_v1 }
 0x4b1   : > { %3264 = vst.msk [vmem:[#allocation2 + $0xc8] sm:$0xff] %vm811_vm0, %v3184_v6  ;;  %v3183_v41 = vmax.f32 %v3175_v2, 0.0  ;;  %v3112_v12 = vpop.f32.mrf.mxu1  ;;  %v3486_v61 = vadd.f32 %v3478_v60, %v3458_v49  ;;  %v3440_v52 = vld [vmem:[#allocation2 + $0x87] sm:$0xff] }
 0x4b2   : > { %v6682_v58 = vadd.f32 %v6568_v62, %v3135_v56  ;;  %v3134_v24 = vmul.f32 %v6563_v40, %v3112_v12  ;;  %v3431_v11 = vadd.f32 %v3423_v45, %v3403_v15  ;;  %v3468_v33 = vld [vmem:[#allocation2 + $0x88] sm:$0xff]  ;;  %v3286_v1 = vmul.f32 %v3440_v52, %v6594_v43 }
 0x4b3   : > { %3263 = vst.msk [vmem:[#allocation2 + $0xa8] sm:$0xff] %vm811_vm0, %v3183_v41  ;;  %v3514_v18 = vadd.f32 %v3506_v9, %v3486_v61  ;;  %v3439_v44 = vld [vmem:[#allocation2 + $0x67] sm:$0xff]  ;;  %v3314_v46 = vmul.f32 %v3468_v33, %v6597_v23  ;;  %v3452_v60 = vmul.f32 %v6645_v16, %v3440_v52  ;;  %v3369_v15 = vmul.f32 %v3440_v52, %v6632_v36 }
 0x4b4   : > { %v3467_v14 = vld [vmem:[#allocation2 + $0x68] sm:$0xff]  ;;  %v3170_v22 = vmul.f32 %v6573_v50, %v6682_v58  ;;  %v6694_v40 = vadd.f32 %v6568_v62, %v3134_v24  ;;  %v3451_v30 = vmul.f32 %v6645_v16, %v3439_v44  ;;  %v3368_v63 = vmul.f32 %v3439_v44, %v6632_v36 }
 0x4b5   : > { %v3495_v32 = vld [vmem:[#allocation2 + $0x69] sm:$0xff]  ;;  %3979 = vmatprep.mubr.msk.f32.mxu1 %vm811_vm0, %v3514_v18  ;;  %v3479_v51 = vmul.f32 %v6648_v28, %v3467_v14  ;;  %v3285_v62 = vmul.f32 %v3439_v44, %v6594_v43  ;;  %v3396_v59 = vmul.f32 %v3467_v14, %v6637_v7  ;;  %v3313_v5 = vmul.f32 %v3467_v14, %v6597_v23 }
 0x4b6   : > { %v3507_v31 = vmul.f32 %v6659_v21, %v3495_v32  ;;  %v3178_v19 = vadd.f32 %v3170_v22, %v3160_v54  ;;  %v3169_v29 = vmul.f32 %v6573_v50, %v6694_v40  ;;  %v3459_v17 = vadd.f32 %v3451_v30, %v3431_v11  ;;  %v3496_v13 = vld [vmem:[#allocation2 + $0x89] sm:$0xff] }
 0x4b7   : > { %v3376_v3 = vadd.f32 %v3368_v63, %v3348_v57  ;;  %v3424_v35 = vmul.f32 %v3495_v32, %v6640_v38  ;;  %v3341_v8 = vmul.f32 %v3495_v32, %v6603_v34  ;;  %v3321_v50 = vadd.f32 %v3313_v5, %v3285_v62 }
 0x4b8   : > { %v3186_v37 = vmax.f32 %v3178_v19, 0.0  ;;  %v3177_v47 = vadd.f32 %v3169_v29, %v3159_v4  ;;  %v3487_v42 = vadd.f32 %v3479_v51, %v3459_v17  ;;  %v3480_v41 = vmul.f32 %v6648_v28, %v3468_v33  ;;  %v3442_v25 = vld [vmem:[#allocation2 + $0xc7] sm:$0xff] }
 0x4b9   : > { %v3404_v20 = vadd.f32 %v3396_v59, %v3376_v3  ;;  %v3349_v56 = vadd.f32 %v3341_v8, %v3321_v50  ;;  %v3322_v12 = vadd.f32 %v3314_v46, %v3286_v1  ;;  %v3342_v61 = vmul.f32 %v3496_v13, %v6603_v34  ;;  %v3470_v53 = vld [vmem:[#allocation2 + $0xc8] sm:$0xff] }
 0x4ba   : > { %3266 = vst.msk [vmem:[#allocation2 + $0x108] sm:$0xff] %vm811_vm0, %v3186_v37  ;;  %v3185_v6 = vmax.f32 %v3177_v47, 0.0  ;;  %v3515_v2 = vadd.f32 %v3507_v31, %v3487_v42  ;;  %v3441_v26 = vld [vmem:[#allocation2 + $0xa7] sm:$0xff]  ;;  %v3508_v11 = vmul.f32 %v6659_v21, %v3496_v13  ;;  %v3397_v18 = vmul.f32 %v3468_v33, %v6637_v7 }
 0x4bb   : > { %v3432_v49 = vadd.f32 %v3424_v35, %v3404_v20  ;;  %v3469_v45 = vld [vmem:[#allocation2 + $0xa8] sm:$0xff]  ;;  %v3370_v9 = vmul.f32 %v3441_v26, %v6632_v36  ;;  %v3377_v54 = vadd.f32 %v3369_v15, %v3349_v56  ;;  %v3425_v14 = vmul.f32 %v3496_v13, %v6640_v38 }
 0x4bc   : > { %3265 = vst.msk [vmem:[#allocation2 + $0xe8] sm:$0xff] %vm811_vm0, %v3185_v6  ;;  %3980 = vmatmul.mubr.msk.f32.vlgmr.msra.gmra.mxu1 %vm811_vm0, %v3515_v2  ;;  %v3497_v44 = vld [vmem:[#allocation2 + $0xa9] sm:$0xff]  ;;  %v3350_v32 = vadd.f32 %v3342_v61, %v3322_v12  ;;  %v3287_v4 = vmul.f32 %v3441_v26, %v6594_v43  ;;  %v3315_v22 = vmul.f32 %v3469_v45, %v6597_v23 }
 0x4bd   : > { %v3460_v24 = vadd.f32 %v3452_v60, %v3432_v49  ;;  %v3405_v51 = vadd.f32 %v3397_v18, %v3377_v54  ;;  %v3453_v31 = vmul.f32 %v6645_v16, %v3441_v26  ;;  %v3454_v57 = vmul.f32 %v6645_v16, %v3442_v25  ;;  %v3498_v29 = vld [vmem:[#allocation2 + $0xc9] sm:$0xff] }
 0x4be   : > { %v3378_v63 = vadd.f32 %v3370_v9, %v3350_v32  ;;  %v3398_v19 = vmul.f32 %v3469_v45, %v6637_v7  ;;  %v3323_v17 = vadd.f32 %v3315_v22, %v3287_v4  ;;  %v3343_v52 = vmul.f32 %v3497_v44, %v6603_v34 }
 0x4bf   : > { %v3488_v30 = vadd.f32 %v3480_v41, %v3460_v24  ;;  %v3433_v62 = vadd.f32 %v3425_v14, %v3405_v51  ;;  %v3288_v3 = vmul.f32 %v3442_v25, %v6594_v43  ;;  %v3316_v59 = vmul.f32 %v3470_v53, %v6597_v23 }
 0x4c0   : > { %v3406_v35 = vadd.f32 %v3398_v19, %v3378_v63  ;;  %v3426_v5 = vmul.f32 %v3497_v44, %v6640_v38  ;;  %v3351_v37 = vadd.f32 %v3343_v52, %v3323_v17  ;;  %v3371_v47 = vmul.f32 %v3442_v25, %v6632_v36  ;;  %v3445_v52 = vld [vmem:[#allocation2 + $0x127] sm:$0xff] }
 0x4c1   : > { %v3516_v33 = vadd.f32 %v3508_v11, %v3488_v30  ;;  %v3461_v42 = vadd.f32 %v3453_v31, %v3433_v62  ;;  %v3481_v8 = vmul.f32 %v6648_v28, %v3469_v45  ;;  %v3324_v50 = vadd.f32 %v3316_v59, %v3288_v3  ;;  %v3500_v3 = vld [vmem:[#allocation2 + $0x109] sm:$0xff] }
 0x4c2   : > { %v3344_v1 = vmul.f32 %v3498_v29, %v6603_v34  ;;  %v3509_v46 = vmul.f32 %v6659_v21, %v3497_v44  ;;  %v3434_v6 = vadd.f32 %v3426_v5, %v3406_v35  ;;  %v3379_v2 = vadd.f32 %v3371_v47, %v3351_v37 }
 0x4c3   : > { %3982 = vmatprep.mubr.msk.f32.mxu1 %vm811_vm0, %v3516_v33  ;;  %v3443_v20 = vld [vmem:[#allocation2 + $0xe7] sm:$0xff]  ;;  %v3399_v26 = vmul.f32 %v3470_v53, %v6637_v7  ;;  %v3489_v49 = vadd.f32 %v3481_v8, %v3461_v42  ;;  %v3482_v60 = vmul.f32 %v6648_v28, %v3470_v53  ;;  %v3427_v45 = vmul.f32 %v3498_v29, %v6640_v38 }
 0x4c4   : > { %v3471_v13 = vld [vmem:[#allocation2 + $0xe8] sm:$0xff]  ;;  %v3352_v56 = vadd.f32 %v3344_v1, %v3324_v50  ;;  %v3372_v15 = vmul.f32 %v3443_v20, %v6632_v36  ;;  %v3462_v41 = vadd.f32 %v3454_v57, %v3434_v6  ;;  %v3289_v11 = vmul.f32 %v3443_v20, %v6594_v43 }
 0x4c5   : > { %v3407_v12 = vadd.f32 %v3399_v26, %v3379_v2  ;;  %v3499_v61 = vld [vmem:[#allocation2 + $0xe9] sm:$0xff]  ;;  %v3400_v9 = vmul.f32 %v3471_v13, %v6637_v7  ;;  %v3517_v25 = vadd.f32 %v3509_v46, %v3489_v49  ;;  %v3317_v54 = vmul.f32 %v3471_v13, %v6597_v23 }
 0x4c6   : > { %v3380_v24 = vadd.f32 %v3372_v15, %v3352_v56  ;;  %v3490_v18 = vadd.f32 %v3482_v60, %v3462_v41  ;;  %v3510_v44 = vmul.f32 %v6659_v21, %v3498_v29  ;;  %v3455_v32 = vmul.f32 %v6645_v16, %v3443_v20  ;;  %v3444_v53 = vld [vmem:[#allocation2 + $0x107] sm:$0xff]  ;;  %v3838_v60 = vld [vmem:[%s6822_s21] ss:$0 sm:$0xff] }
 0x4c7   : > { %v3435_v14 = vadd.f32 %v3427_v45, %v3407_v12  ;;  %3983 = vmatmul.mubr.msk.f32.gmra.mxu1 %vm811_vm0, %v3517_v25  ;;  %v3428_v22 = vmul.f32 %v3499_v61, %v6640_v38  ;;  %v3325_v30 = vadd.f32 %v3317_v54, %v3289_v11  ;;  %v3345_v51 = vmul.f32 %v3499_v61, %v6603_v34  ;;  %v3472_v23 = vld [vmem:[#allocation2 + $0x108] sm:$0xff] }
 0x4c8   : > { %v3408_v4 = vadd.f32 %v3400_v9, %v3380_v24  ;;  %v3518_v31 = vadd.f32 %v3510_v44, %v3490_v18  ;;  %v3483_v43 = vmul.f32 %v6648_v28, %v3471_v13  ;;  %v3456_v19 = vmul.f32 %v6645_v16, %v3444_v53  ;;  %v3473_v42 = vld [vmem:[#allocation2 + $0x128] sm:$0xff] }
 0x4c9   : > { %v3463_v57 = vadd.f32 %v3455_v32, %v3435_v14  ;;  %v3353_v29 = vadd.f32 %v3345_v51, %v3325_v30  ;;  %v3373_v17 = vmul.f32 %v3444_v53, %v6632_v36  ;;  %v3511_v62 = vmul.f32 %v6659_v21, %v3499_v61  ;;  %v3501_v50 = vld [vmem:[#allocation2 + $0x129] sm:$0xff] }
 0x4ca   : > { %v3436_v63 = vadd.f32 %v3428_v22, %v3408_v4  ;;  %3985 = vmatprep.mubr.msk.f32.mxu1 %vm811_vm0, %v3518_v31  ;;  %v3484_v34 = vmul.f32 %v6648_v28, %v3472_v23  ;;  %v3401_v5 = vmul.f32 %v3472_v23, %v6637_v7  ;;  %v3457_v47 = vmul.f32 %v6645_v16, %v3445_v52 }
 0x4cb   : > { %v3491_v33 = vadd.f32 %v3483_v43, %v3463_v57  ;;  %v3381_v35 = vadd.f32 %v3373_v17, %v3353_v29  ;;  %v3512_v36 = vmul.f32 %v6659_v21, %v3500_v3  ;;  %v3429_v13 = vmul.f32 %v3500_v3, %v6640_v38  ;;  %v3837_v38 = vld [vmem:[%s6821_s20] ss:$0 sm:$0xff] }
 0x4cc   : > { %v3464_v59 = vadd.f32 %v3456_v19, %v3436_v63  ;;  %v3485_v6 = vmul.f32 %v6648_v28, %v3473_v42  ;;  %v3513_v16 = vmul.f32 %v6659_v21, %v3501_v50 }
 0x4cd   : > { %v3519_v37 = vadd.f32 %v3511_v62, %v3491_v33  ;;  %v3409_v20 = vadd.f32 %v3401_v5, %v3381_v35 }
 0x4ce   : > { %v3492_v8 = vadd.f32 %v3484_v34, %v3464_v59 }
 0x4cf   : > { %3986 = vmatmul.mubr.msk.f32.gmra.mxu1 %vm811_vm0, %v3519_v37  ;;  %v3437_v46 = vadd.f32 %v3429_v13, %v3409_v20 }
 0x4d0   : > { %v3520_v1 = vadd.f32 %v3512_v36, %v3492_v8 }
 0x4d1   : > { %v3465_v7 = vadd.f32 %v3457_v47, %v3437_v46 }
 0x4d2   : > { %3988 = vmatprep.mubr.msk.f32.mxu1 %vm811_vm0, %v3520_v1 }
 0x4d3   : > { %v3493_v2 = vadd.f32 %v3485_v6, %v3465_v7 }
 0x4d5   : > { %v3521_v26 = vadd.f32 %v3513_v16, %v3493_v2 }
 0x4d7   : > { %3989 = vmatmul.mubr.msk.f32.gmra.mxu1 %vm811_vm0, %v3521_v26 }
 0x57c   : > { %v3981_v49 = vpop.f32.mrf.mxu1 }
 0x57d   : > { %v3660_v56 = vmul.f32 %v3981_v49, %v3837_v38 }
 0x57e   : > { %v3613_v28 = vpop.f32.mrf.mxu1 }
 0x57f   : > { %v3675_v15 = vadd.f32 %v3838_v60, %v3660_v56  ;;  %v3659_v41 = vmul.f32 %v3837_v38, %v3613_v28 }
 0x581   : > { %v3683_v21 = vadd.f32 %v3675_v15, %v6576_v48  ;;  %v3674_v12 = vadd.f32 %v3838_v60, %v3659_v41 }
 0x583   : > { %v3691_v45 = vmul.f32 0.5, %v3683_v21  ;;  %v3682_v61 = vadd.f32 %v3674_v12, %v6587_v55 }
 0x585   : > { %3699 = vst.msk [vmem:[%s6773_s30 + $0x8] sm:$0xff] %vm811_vm0, %v3691_v45  ;;  %v3690_v9 = vmul.f32 0.5, %v3682_v61 }
 0x587   : > { %3698 = vst.msk [vmem:[%s6773_s30] sm:$0xff] %vm811_vm0, %v3690_v9  ;;  %v3984_v25 = vpop.f32.mrf.mxu1 }
 0x588   : > { %v3662_v48 = vmul.f32 %v3984_v25, %v3837_v38 }
 0x589   : > { %v3623_v24 = vpop.f32.mrf.mxu1 }
 0x58a   : > { %v3677_v11 = vadd.f32 %v3838_v60, %v3662_v48  ;;  %v3661_v54 = vmul.f32 %v3837_v38, %v3623_v24 }
 0x58c   : > { %v3685_v18 = vadd.f32 %v3677_v11, %v6609_v10  ;;  %v3676_v44 = vadd.f32 %v3838_v60, %v3661_v54 }
 0x58e   : > { %v3693_v14 = vmul.f32 0.5, %v3685_v18  ;;  %v3684_v32 = vadd.f32 %v3676_v44, %v6622_v39 }
 0x58f   : > { %v3987_v53 = vpop.f32.mrf.mxu1 }
 0x590   : > { %v3664_v55 = vmul.f32 %v3987_v53, %v3837_v38  ;;  %3701 = vst.msk [vmem:[%s6773_s30 + $0x18] sm:$0xff] %vm811_vm0, %v3693_v14  ;;  %v3692_v4 = vmul.f32 0.5, %v3684_v32 }
 0x591   : > { %v3633_v22 = vpop.f32.mrf.mxu1 }
 0x592   : > { %v3679_v30 = vadd.f32 %v3838_v60, %v3664_v55  ;;  %v3663_v51 = vmul.f32 %v3837_v38, %v3633_v22  ;;  %3700 = vst.msk [vmem:[%s6773_s30 + $0x10] sm:$0xff] %vm811_vm0, %v3692_v4 }
 0x594   : > { %v3687_v31 = vadd.f32 %v3679_v30, %v6653_v27  ;;  %v3678_v10 = vadd.f32 %v3838_v60, %v3663_v51 }
 0x596   : > { %v3695_v57 = vmul.f32 0.5, %v3687_v31  ;;  %v3686_v43 = vadd.f32 %v3678_v10, %v6665_v0 }
 0x597   : > { %v3990_v23 = vpop.f32.mrf.mxu1 }
 0x598   : > { %3703 = vst.msk [vmem:[%s6773_s30 + $0x28] sm:$0xff] %vm811_vm0, %v3695_v57  ;;  %v3694_v39 = vmul.f32 0.5, %v3686_v43  ;;  %v3666_v63 = vmul.f32 %v3990_v23, %v3837_v38 }
 0x599   : > { %v3643_v19 = vpop.f32.mrf.mxu1 }
 0x59a   : > { %3702 = vst.msk [vmem:[%s6773_s30 + $0x20] sm:$0xff] %vm811_vm0, %v3694_v39  ;;  %v3681_v29 = vadd.f32 %v3838_v60, %v3666_v63  ;;  %v3665_v17 = vmul.f32 %v3837_v38, %v3643_v19 }
 0x59c   : > { %v3689_v52 = vadd.f32 %v3681_v29, %v6682_v58  ;;  %v3680_v33 = vadd.f32 %v3838_v60, %v3665_v17 }
 0x59e   : > { %v3697_v27 = vmul.f32 0.5, %v3689_v52  ;;  %v3688_v62 = vadd.f32 %v3680_v33, %v6694_v40 }
 0x5a0   : > { %3705 = vst.msk [vmem:[%s6773_s30 + $0x38] sm:$0xff] %vm811_vm0, %v3697_v27  ;;  %v3696_v3 = vmul.f32 0.5, %v3688_v62 }
 0x5a2   : > { %3704 = vst.msk [vmem:[%s6773_s30 + $0x30] sm:$0xff] %vm811_vm0, %v3696_v3 }
 0x5a3 PF: > { %s36_s0 = sadd.s32 1, %s4065_s0  }
 0x5a4   : > { %p33_p5 = scmp.ge.s32.totalorder %s36_s0, 4  }
 0x5a6   :  { %35 = sbr.rel (!%p33_p5) target bundleno = 17 (0x11), region = 149 }
 0x5ab   :  { %3727 = vsyncpa [#allocation6], 1 }
 0x5ac   :  { %3729 = vsyncpa [#allocation6 + $0x1], 1 }
 0x5ad   :  { %3730 = vsyncpa [#allocation8], 1 }

</bundles_post_ra>
